<compile_context>
chip_gen: v5e
topology: v5e:2x2
jax: 0.10.0
libtpu: 0.0.40
codegen_flags: <defaults>
</compile_context>

<pallas_src>
import functools

import jax
import jax.numpy as jnp
from jax.experimental import pallas as pl
from jax.experimental.pallas import tpu as pltpu

EPS = 1e-5
TM = 512  # flat-M tile for the channel-major kernels (multiple of 128)


def _round_up(x, m):
    return ((x + m - 1) // m) * m


# ----------------- kernel A: bn1 batch stats of h1 = conv1(x) -----------------

def _stats1_kernel(xt_ref, w1t_ref, st_ref):
    i = pl.program_id(0)
    h1t = jnp.dot(w1t_ref[...], xt_ref[...], preferred_element_type=jnp.float32)
    s = jnp.sum(h1t, axis=1, keepdims=True)
    ss = jnp.sum(h1t * h1t, axis=1, keepdims=True)

    @pl.when(i == 0)
    def _():
        st_ref[...] = jnp.zeros_like(st_ref)

    st_ref[...] += jnp.concatenate([s, ss], axis=1)


def conv1_stats(xT, w1T, tm):
    cin, mpad = xT.shape
    cw = w1T.shape[0]
    return pl.pallas_call(
        _stats1_kernel,
        out_shape=jax.ShapeDtypeStruct((cw, 2), jnp.float32),
        grid=(mpad // tm,),
        in_specs=[pl.BlockSpec((cin, tm), lambda i: (0, i)),
                  pl.BlockSpec((cw, cin), lambda i: (0, 0))],
        out_specs=pl.BlockSpec((cw, 2), lambda i: (0, 0)),
        compiler_params=pltpu.CompilerParams(dimension_semantics=("arbitrary",)),
    )(xT, w1T)


# ------ kernel B: fused conv1 -> bn1 -> relu -> conv2 (+ bn2 partial stats) ----

def _mid_kernel(xm_ref, x0_ref, xp_ref, w1_ref, s1_ref, b1_ref, msk_ref, w2_ref,
                h2_ref, st_ref, a1_ref, *, H, W, HP, WP2, Cin, Cw):
    d = pl.program_id(1)
    nd = pl.num_programs(1)

    # Loop-invariant operands: load once, reuse for all three planes.
    w1 = w1_ref[...]
    s1 = s1_ref[...]
    b1 = b1_ref[...]
    msk = msk_ref[...]

    # conv1 + folded bn1 + relu on the three D planes (d-1, d, d+1).  The 1-voxel
    # H/W zero-halo is enforced with the static interior mask, the D halo with
    # the d==0 / d==D-1 checks (the clamped planes are zeroed out).
    for k, xr in enumerate((xm_ref, x0_ref, xp_ref)):
        xpl = xr[0, 0].reshape(HP * WP2, Cin)
        h1 = jnp.dot(xpl, w1, preferred_element_type=jnp.float32)
        a1 = jnp.maximum(h1 * s1 + b1, 0.0) * msk
        if k == 0:
            a1 = jnp.where(d > 0, a1, 0.0)
        elif k == 2:
            a1 = jnp.where(d < nd - 1, a1, 0.0)
        a1_ref[k] = a1.reshape(HP, WP2, Cw)

    # In-VMEM im2col: gather the 27 shifted windows of the padded activation and
    # do one MXU matmul for the whole 3x3x3 conv of this output plane.
    taps = []
    for kd in range(3):
        for kh in range(3):
            for kw in range(3):
                t = a1_ref[kd, kh:kh + H, kw:kw + W, :]
                taps.append(t.reshape(H * W, Cw))
    patches = jnp.concatenate(taps, axis=1)                       # (H*W, 27*Cw)
    h2 = jnp.dot(patches, w2_ref[...], preferred_element_type=jnp.float32)
    h2_ref[0, 0] = h2

    # per-plane partial bn2 statistics (reduced on host over the tiny grid)
    s = jnp.sum(h2, axis=0, keepdims=True)
    ss = jnp.sum(h2 * h2, axis=0, keepdims=True)
    st_ref[0, 0] = jnp.concatenate([s, ss], axis=0)


def fused_conv1_bn1_relu_conv2(xp, w1m, s1, b1, msk, w2m, H, W):
    N, D, HP, WP2, Cin = xp.shape
    Cw = w1m.shape[1]
    kernel = functools.partial(_mid_kernel, H=H, W=W, HP=HP, WP2=WP2,
                               Cin=Cin, Cw=Cw)

    def xspec(dmap):
        return pl.BlockSpec((1, 1, HP, WP2, Cin),
                            lambda n, d: (n, dmap(d), 0, 0, 0))

    return pl.pallas_call(
        kernel,
        out_shape=(jax.ShapeDtypeStruct((N, D, H * W, Cw), jnp.float32),
                   jax.ShapeDtypeStruct((N, D, 2, Cw), jnp.float32)),
        grid=(N, D),
        in_specs=[
            xspec(lambda d: jnp.maximum(d - 1, 0)),
            xspec(lambda d: d),
            xspec(lambda d: jnp.minimum(d + 1, D - 1)),
            pl.BlockSpec((Cin, Cw), lambda n, d: (0, 0)),
            pl.BlockSpec((1, Cw), lambda n, d: (0, 0)),
            pl.BlockSpec((1, Cw), lambda n, d: (0, 0)),
            pl.BlockSpec((HP * WP2, 1), lambda n, d: (0, 0)),
            pl.BlockSpec((27 * Cw, Cw), lambda n, d: (0, 0)),
        ],
        out_specs=(pl.BlockSpec((1, 1, H * W, Cw), lambda n, d: (n, d, 0, 0)),
                   pl.BlockSpec((1, 1, 2, Cw), lambda n, d: (n, d, 0, 0))),
        scratch_shapes=[pltpu.VMEM((3, HP, WP2, Cw), jnp.float32)],
        compiler_params=pltpu.CompilerParams(
            dimension_semantics=("parallel", "parallel")),
    )(xp, xp, xp, w1m, s1, b1, msk, w2m)


# ------ kernel C: bn3 batch stats of h3 = conv3(relu(bn2(h2))) (channel-major) -

def _stats3_kernel(h2t_ref, s2_ref, b2_ref, w3t_ref, st_ref, *, m_valid, tm):
    i = pl.program_id(0)
    a2 = jnp.maximum(h2t_ref[...] * s2_ref[...] + b2_ref[...], 0.0)
    col = i * tm + jax.lax.broadcasted_iota(jnp.int32, (1, tm), 1)
    a2 = jnp.where(col < m_valid, a2, 0.0)          # mask the padded tail rows
    h3 = jnp.dot(w3t_ref[...], a2, preferred_element_type=jnp.float32)
    s = jnp.sum(h3, axis=1, keepdims=True)
    ss = jnp.sum(h3 * h3, axis=1, keepdims=True)

    @pl.when(i == 0)
    def _():
        st_ref[...] = jnp.zeros_like(st_ref)

    st_ref[...] += jnp.concatenate([s, ss], axis=1)


def conv3_stats(h2T, s2, b2, w3T, tm, m_valid):
    cw, mpad = h2T.shape
    cout = w3T.shape[0]
    kernel = functools.partial(_stats3_kernel, m_valid=m_valid, tm=tm)
    return pl.pallas_call(
        kernel,
        out_shape=jax.ShapeDtypeStruct((cout, 2), jnp.float32),
        grid=(mpad // tm,),
        in_specs=[pl.BlockSpec((cw, tm), lambda i: (0, i)),
                  pl.BlockSpec((cw, 1), lambda i: (0, 0)),
                  pl.BlockSpec((cw, 1), lambda i: (0, 0)),
                  pl.BlockSpec((cout, cw), lambda i: (0, 0))],
        out_specs=pl.BlockSpec((cout, 2), lambda i: (0, 0)),
        compiler_params=pltpu.CompilerParams(dimension_semantics=("arbitrary",)),
    )(h2T, s2, b2, w3T)


# ------ kernel D: fused bn2 -> relu -> conv3 -> bn3 -> +identity -> relu -------

def _final_kernel(h2t_ref, xt_ref, s2_ref, b2_ref, w3t_ref, s3_ref, b3_ref, o_ref):
    a2 = jnp.maximum(h2t_ref[...] * s2_ref[...] + b2_ref[...], 0.0)
    h3 = jnp.dot(w3t_ref[...], a2, preferred_element_type=jnp.float32)
    o_ref[...] = jnp.maximum(h3 * s3_ref[...] + b3_ref[...] + xt_ref[...], 0.0)


def fused_conv3_bn3_add_relu(h2T, xT, s2, b2, w3T, s3, b3, tm):
    cw, mpad = h2T.shape
    cout = w3T.shape[0]
    return pl.pallas_call(
        _final_kernel,
        out_shape=jax.ShapeDtypeStruct((cout, mpad), jnp.float32),
        grid=(mpad // tm,),
        in_specs=[pl.BlockSpec((cw, tm), lambda i: (0, i)),
                  pl.BlockSpec((cout, tm), lambda i: (0, i)),
                  pl.BlockSpec((cw, 1), lambda i: (0, 0)),
                  pl.BlockSpec((cw, 1), lambda i: (0, 0)),
                  pl.BlockSpec((cout, cw), lambda i: (0, 0)),
                  pl.BlockSpec((cout, 1), lambda i: (0, 0)),
                  pl.BlockSpec((cout, 1), lambda i: (0, 0))],
        out_specs=pl.BlockSpec((cout, tm), lambda i: (0, i)),
        compiler_params=pltpu.CompilerParams(dimension_semantics=("parallel",)),
    )(h2T, xT, s2, b2, w3T, s3, b3)


# --------------------------------- wrapper ------------------------------------

def bottleneck_forward(x_ncdhw, params):
    N, Cin, D, H, W = x_ncdhw.shape
    Cw = params["w1"].shape[0]             # width
    Cout = params["w3"].shape[0]           # planes * expansion
    assert Cout == Cin, "residual add requires inplanes == planes*4 (downsample=None)"

    M = N * D * H * W
    tm = min(TM, _round_up(M, 128))        # adapt tile to tiny problems
    mpad = _round_up(M, tm)

    HP = H + 2
    WP2 = _round_up(W + 2, 8)              # sublane-align the padded W extent

    # ---- layouts (cheap XLA glue; no 27x im2col blow-up anywhere) ----
    x_ndhwc = jnp.transpose(x_ncdhw, (0, 2, 3, 4, 1))
    xp = jnp.pad(x_ndhwc, ((0, 0), (0, 0), (1, 1), (1, WP2 - W - 1), (0, 0)))
    xT = jnp.transpose(x_ncdhw, (1, 0, 2, 3, 4)).reshape(Cin, M)
    if mpad > M:
        xT = jnp.pad(xT, ((0, 0), (0, mpad - M)))

    w1T = params["w1"].reshape(Cw, Cin)                      # (Cw, Cin)
    w1m = jnp.transpose(w1T)                                 # (Cin, Cw)
    w2m = jnp.transpose(params["w2"], (2, 3, 4, 1, 0)).reshape(27 * Cw, Cw)
    w3T = params["w3"].reshape(Cout, Cw)                     # (Cout, Cw)

    hh = jnp.arange(HP)[:, None]
    ww = jnp.arange(WP2)[None, :]
    msk = (((hh >= 1) & (hh <= H) & (ww >= 1) & (ww <= W))
           .astype(jnp.float32).reshape(HP * WP2, 1))

    # ---- bn1 batch stats (fused reduction over conv1(x)) ----
    st1 = conv1_stats(xT, w1T, tm)                           # (Cw, 2)
    mean1 = st1[:, 0] / M
    var1 = jnp.maximum(st1[:, 1] / M - mean1 * mean1, 0.0)
    s1 = params["g1"] * jax.lax.rsqrt(var1 + EPS)
    t1 = params["b1"] - mean1 * s1

    # ---- conv1 -> bn1 -> relu -> conv2, one fused kernel, + bn2 partials ----
    h2, st2p = fused_conv1_bn1_relu_conv2(xp, w1m, s1[None, :], t1[None, :],
                                          msk, w2m, H, W)
    st2 = jnp.sum(st2p, axis=(0, 1))                         # (2, Cw)
    mean2 = st2[0] / M
    var2 = jnp.maximum(st2[1] / M - mean2 * mean2, 0.0)
    s2 = params["g2"] * jax.lax.rsqrt(var2 + EPS)
    t2 = params["b2"] - mean2 * s2

    h2T = jnp.transpose(h2.reshape(M, Cw))                   # (Cw, M)
    if mpad > M:
        h2T = jnp.pad(h2T, ((0, 0), (0, mpad - M)))

    # ---- bn3 batch stats (fused over conv3(relu(bn2(h2)))) ----
    st3 = conv3_stats(h2T, s2[:, None], t2[:, None], w3T, tm, M)
    mean3 = st3[:, 0] / M
    var3 = jnp.maximum(st3[:, 1] / M - mean3 * mean3, 0.0)
    s3 = params["g3"] * jax.lax.rsqrt(var3 + EPS)
    t3 = params["b3"] - mean3 * s3

    # ---- conv3 -> bn3 -> +identity -> relu, lane-dense (Cout, tile) stores ----
    outT = fused_conv3_bn3_add_relu(h2T, xT, s2[:, None], t2[:, None], w3T,
                                    s3[:, None], t3[:, None], tm)
    out = outT[:, :M].reshape(Cout, N, D, H, W)
    return jnp.transpose(out, (1, 0, 2, 3, 4))


# ---------------------------- pure-JAX reference -------------------------------

def _conv3d(x, w, pad):
    return jax.lax.conv_general_dilated(
        x, w, window_strides=(1, 1, 1), padding=pad,
        dimension_numbers=("NCDHW", "OIDHW", "NCDHW"))


def reference_forward(x, p):
    def bn(h, g, b):
        mean = h.mean(axis=(0, 2, 3, 4), keepdims=True)
        var = ((h - mean) ** 2).mean(axis=(0, 2, 3, 4), keepdims=True)
        return ((h - mean) / jnp.sqrt(var + EPS) * g.reshape(1, -1, 1, 1, 1)
                + b.reshape(1, -1, 1, 1, 1))

    h = _conv3d(x, p["w1"], [(0, 0)] * 3)
    h = jax.nn.relu(bn(h, p["g1"], p["b1"]))
    h = _conv3d(h, p["w2"], [(1, 1)] * 3)
    h = jax.nn.relu(bn(h, p["g2"], p["b2"]))
    h = _conv3d(h, p["w3"], [(0, 0)] * 3)
    h = bn(h, p["g3"], p["b3"])
    return jax.nn.relu(h + x)


# ------------------------------------ main --------------------------------------

if __name__ == "__main__":
    # Small shapes: Bottleneck(inplanes=16, planes=4) -> width=4, out=16.
    N, planes = 2, 4
    width = planes                      # base_width=64, groups=1
    inplanes = planes * 4               # Bottleneck.expansion == 4
    D = H = W = 8

    key = jax.random.PRNGKey(0)
    ks = jax.random.split(key, 10)
    x = jax.random.normal(ks[0], (N, inplanes, D, H, W), jnp.float32)
    params = {
        "w1": 0.1 * jax.random.normal(ks[1], (width, inplanes, 1, 1, 1), jnp.float32),
        "w2": 0.1 * jax.random.normal(ks[2], (width, width, 3, 3, 3), jnp.float32),
        "w3": 0.1 * jax.random.normal(ks[3], (inplanes, width, 1, 1, 1), jnp.float32),
        "g1": 1.0 + 0.1 * jax.random.normal(ks[4], (width,), jnp.float32),
        "b1": 0.1 * jax.random.normal(ks[5], (width,), jnp.float32),
        "g2": 1.0 + 0.1 * jax.random.normal(ks[6], (width,), jnp.float32),
        "b2": 0.1 * jax.random.normal(ks[7], (width,), jnp.float32),
        "g3": 1.0 + 0.1 * jax.random.normal(ks[8], (inplanes,), jnp.float32),
        "b3": 0.1 * jax.random.normal(ks[9], (inplanes,), jnp.float32),
    }

    out = jax.jit(bottleneck_forward)(x, params)
    out = jax.block_until_ready(out)

    ref = reference_forward(x, params)
    assert out.shape == (N, inplanes, D, H, W)
    max_err = float(jnp.max(jnp.abs(out - ref)))
    assert jnp.allclose(out, ref, atol=1e-3, rtol=1e-3), f"mismatch vs reference: {max_err}"

    # TODO(synk): stride > 1 and the optional `downsample` branch are not
    # exercised (module defaults stride=1, downsample=None); BatchNorm uses
    # training-mode batch statistics (biased variance), matching nn.BatchNorm3d
    # in train() -- eval-mode running stats would just swap the stats source.
    print("KERNEL_OK")
</pallas_src>

<mosaic_0001>
module attributes {stable_mosaic.version = 11 : i64} {
  func.func @_stats1_kernel(%arg0: i32, %arg1: memref<16x512xf32, #tpu.memory_space<vmem>>, %arg2: memref<4x16xf32, #tpu.memory_space<vmem>>, %arg3: memref<4x2xf32, #tpu.memory_space<vmem>>) attributes {dimension_semantics = [#tpu.dimension_semantics<arbitrary>], iteration_bounds = array<i64: 2>, scalar_prefetch = 0 : i64, scratch_operands = 0 : i64, tpu.core_type = #tpu.core_type<tc>, window_params = [{transform_indices = @transform_0, window_bounds = array<i64: 16, 512>}, {pipeline_mode = #tpu.pipeline_mode<synchronous>, transform_indices = @transform_1, window_bounds = array<i64: 4, 16>}, {pipeline_mode = #tpu.pipeline_mode<synchronous>, transform_indices = @transform_2, window_bounds = array<i64: 4, 2>}]} {
    %c0 = arith.constant 0 : index
    %c0_0 = arith.constant 0 : index
    %0 = vector.load %arg2[%c0, %c0_0] : memref<4x16xf32, #tpu.memory_space<vmem>>, vector<4x16xf32>
    %c0_1 = arith.constant 0 : index
    %c0_2 = arith.constant 0 : index
    %1 = vector.load %arg1[%c0_1, %c0_2] : memref<16x512xf32, #tpu.memory_space<vmem>>, vector<16x512xf32>
    %cst = arith.constant dense<0.000000e+00> : vector<4x512xf32>
    %2 = tpu.matmul %0, %1, %cst {dimension_numbers = #tpu.dot_dimension_numbers<[1], [0], [0], [1], [0, 0, 1, 1], [], []>} : vector<4x16xf32>, vector<16x512xf32>, vector<4x512xf32> -> vector<4x512xf32>
    %cst_3 = arith.constant dense<0.000000e+00> : vector<4xf32>
    %3 = vector.multi_reduction <add>, %2, %cst_3 [1] : vector<4x512xf32> to vector<4xf32>
    %4 = vector.shape_cast %3 : vector<4xf32> to vector<4x1xf32>
    %5 = arith.mulf %2, %2 : vector<4x512xf32>
    %cst_4 = arith.constant dense<0.000000e+00> : vector<4xf32>
    %6 = vector.multi_reduction <add>, %5, %cst_4 [1] : vector<4x512xf32> to vector<4xf32>
    %7 = vector.shape_cast %6 : vector<4xf32> to vector<4x1xf32>
    %c0_i32 = arith.constant 0 : i32
    %8 = arith.cmpi eq, %arg0, %c0_i32 : i32
    %9 = arith.extui %8 : i1 to i32
    %c0_i32_5 = arith.constant 0 : i32
    %10 = arith.cmpi ne, %9, %c0_i32_5 : i32
    scf.if %10 {
      %cst_10 = arith.constant 0.000000e+00 : f32
      %15 = vector.broadcast %cst_10 : f32 to vector<4x2xf32>
      %c0_11 = arith.constant 0 : index
      %c0_12 = arith.constant 0 : index
      %16 = vector.load %arg3[%c0_11, %c0_12] : memref<4x2xf32, #tpu.memory_space<vmem>>, vector<4x2xf32>
      tpu.vector_store %arg3[%c0_11, %c0_12], %15 {strides = array<i32>} : memref<4x2xf32, #tpu.memory_space<vmem>>, vector<4x2xf32>,
    } else {
    }
    %c0_6 = arith.constant 0 : index
    %c0_7 = arith.constant 0 : index
    %11 = vector.load %arg3[%c0_6, %c0_7] : memref<4x2xf32, #tpu.memory_space<vmem>>, vector<4x2xf32>
    %12 = tpu.concatenate %4, %7 in 1 : vector<4x1xf32>, vector<4x1xf32> -> vector<4x2xf32>
    %13 = arith.addf %11, %12 : vector<4x2xf32>
    %c0_8 = arith.constant 0 : index
    %c0_9 = arith.constant 0 : index
    %14 = vector.load %arg3[%c0_8, %c0_9] : memref<4x2xf32, #tpu.memory_space<vmem>>, vector<4x2xf32>
    tpu.vector_store %arg3[%c0_8, %c0_9], %13 {strides = array<i32>} : memref<4x2xf32, #tpu.memory_space<vmem>>, vector<4x2xf32>,
    return
  }
  func.func @transform_0(%arg0: i32) -> (i32, i32) {
    %c0_i32 = arith.constant 0 : i32
    %c0_i32_0 = arith.constant 0 : i32
    return %c0_i32, %arg0 : i32, i32
  }
  func.func @transform_1(%arg0: i32) -> (i32, i32) {
    %c0_i32 = arith.constant 0 : i32
    %c0_i32_0 = arith.constant 0 : i32
    %c0_i32_1 = arith.constant 0 : i32
    return %c0_i32, %c0_i32_0 : i32, i32
  }
  func.func @transform_2(%arg0: i32) -> (i32, i32) {
    %c0_i32 = arith.constant 0 : i32
    %c0_i32_0 = arith.constant 0 : i32
    %c0_i32_1 = arith.constant 0 : i32
    return %c0_i32, %c0_i32_0 : i32, i32
  }
}

module attributes {stable_mosaic.version = 11 : i64} {
  func.func @_mid_kernel(%arg0: i32, %arg1: i32, %arg2: memref<1x1x10x16x16xf32, #tpu.memory_space<vmem>>, %arg3: memref<1x1x10x16x16xf32, #tpu.memory_space<vmem>>, %arg4: memref<1x1x10x16x16xf32, #tpu.memory_space<vmem>>, %arg5: memref<16x4xf32, #tpu.memory_space<vmem>>, %arg6: memref<1x4xf32, #tpu.memory_space<vmem>>, %arg7: memref<1x4xf32, #tpu.memory_space<vmem>>, %arg8: memref<160x1xf32, #tpu.memory_space<vmem>>, %arg9: memref<108x4xf32, #tpu.memory_space<vmem>>, %arg10: memref<1x1x64x4xf32, #tpu.memory_space<vmem>>, %arg11: memref<1x1x2x4xf32, #tpu.memory_space<vmem>>, %arg12: memref<3x10x16x4xf32, #tpu.memory_space<vmem>>) attributes {dimension_semantics = [#tpu.dimension_semantics<parallel>, #tpu.dimension_semantics<parallel>], iteration_bounds = array<i64: 2, 8>, scalar_prefetch = 0 : i64, scratch_operands = 1 : i64, tpu.core_type = #tpu.core_type<tc>, window_params = [{transform_indices = @transform_0, window_bounds = array<i64: 1, 1, 10, 16, 16>}, {transform_indices = @transform_1, window_bounds = array<i64: 1, 1, 10, 16, 16>}, {transform_indices = @transform_2, window_bounds = array<i64: 1, 1, 10, 16, 16>}, {pipeline_mode = #tpu.pipeline_mode<synchronous>, transform_indices = @transform_3, window_bounds = array<i64: 16, 4>}, {pipeline_mode = #tpu.pipeline_mode<synchronous>, transform_indices = @transform_4, window_bounds = array<i64: 1, 4>}, {pipeline_mode = #tpu.pipeline_mode<synchronous>, transform_indices = @transform_5, window_bounds = array<i64: 1, 4>}, {pipeline_mode = #tpu.pipeline_mode<synchronous>, transform_indices = @transform_6, window_bounds = array<i64: 160, 1>}, {pipeline_mode = #tpu.pipeline_mode<synchronous>, transform_indices = @transform_7, window_bounds = array<i64: 108, 4>}, {transform_indices = @transform_8, window_bounds = array<i64: 1, 1, 64, 4>}, {transform_indices = @transform_9, window_bounds = array<i64: 1, 1, 2, 4>}]} {
    %c0 = arith.constant 0 : index
    %c0_0 = arith.constant 0 : index
    %0 = vector.load %arg5[%c0, %c0_0] : memref<16x4xf32, #tpu.memory_space<vmem>>, vector<16x4xf32>
    %c0_1 = arith.constant 0 : index
    %c0_2 = arith.constant 0 : index
    %1 = vector.load %arg6[%c0_1, %c0_2] : memref<1x4xf32, #tpu.memory_space<vmem>>, vector<1x4xf32>
    %c0_3 = arith.constant 0 : index
    %c0_4 = arith.constant 0 : index
    %2 = vector.load %arg7[%c0_3, %c0_4] : memref<1x4xf32, #tpu.memory_space<vmem>>, vector<1x4xf32>
    %c0_5 = arith.constant 0 : index
    %c0_6 = arith.constant 0 : index
    %3 = vector.load %arg8[%c0_5, %c0_6] : memref<160x1xf32, #tpu.memory_space<vmem>>, vector<160x1xf32>
    %c0_7 = arith.constant 0 : index
    %c0_8 = arith.constant 0 : index
    %c0_9 = arith.constant 0 : index
    %c0_10 = arith.constant 0 : index
    %c0_11 = arith.constant 0 : index
    %4 = vector.load %arg2[%c0_7, %c0_8, %c0_9, %c0_10, %c0_11] : memref<1x1x10x16x16xf32, #tpu.memory_space<vmem>>, vector<1x1x10x16x16xf32>
    %5 = vector.shape_cast %4 : vector<1x1x10x16x16xf32> to vector<10x16x16xf32>
    %6 = vector.shape_cast %5 : vector<10x16x16xf32> to vector<160x16xf32>
    %cst = arith.constant dense<0.000000e+00> : vector<160x4xf32>
    %7 = tpu.matmul %6, %0, %cst {dimension_numbers = #tpu.dot_dimension_numbers<[1], [0], [0], [1], [0, 0, 1, 1], [], []>} : vector<160x16xf32>, vector<16x4xf32>, vector<160x4xf32> -> vector<160x4xf32>
    %8 = vector.broadcast %1 : vector<1x4xf32> to vector<160x4xf32>
    %9 = arith.mulf %7, %8 : vector<160x4xf32>
    %10 = vector.broadcast %2 : vector<1x4xf32> to vector<160x4xf32>
    %11 = arith.addf %9, %10 : vector<160x4xf32>
    %cst_12 = arith.constant 0.000000e+00 : f32
    %12 = vector.broadcast %cst_12 : f32 to vector<160x4xf32>
    %13 = arith.maximumf %11, %12 : vector<160x4xf32>
    %14 = vector.broadcast %3 : vector<160x1xf32> to vector<160x4xf32>
    %15 = arith.mulf %13, %14 : vector<160x4xf32>
    %c0_i32 = arith.constant 0 : i32
    %16 = arith.cmpi sgt, %arg1, %c0_i32 : i32
    %cst_13 = arith.constant 0.000000e+00 : f32
    %17 = vector.broadcast %cst_13 : f32 to vector<160x4xf32>
    %18 = arith.select %16, %15, %17 : vector<160x4xf32>
    %19 = vector.shape_cast %18 : vector<160x4xf32> to vector<10x16x4xf32>
    %c0_14 = arith.constant 0 : index
    %c0_15 = arith.constant 0 : index
    %c0_16 = arith.constant 0 : index
    %c0_17 = arith.constant 0 : index
    %20 = vector.load %arg12[%c0_14, %c0_15, %c0_16, %c0_17] : memref<3x10x16x4xf32, #tpu.memory_space<vmem>>, vector<1x10x16x4xf32>
    %21 = vector.shape_cast %20 : vector<1x10x16x4xf32> to vector<10x16x4xf32>
    %22 = vector.shape_cast %19 : vector<10x16x4xf32> to vector<1x10x16x4xf32>
    tpu.vector_store %arg12[%c0_14, %c0_15, %c0_16, %c0_17], %22 {strides = array<i32>} : memref<3x10x16x4xf32, #tpu.memory_space<vmem>>, vector<1x10x16x4xf32>,
    %c0_18 = arith.constant 0 : index
    %c0_19 = arith.constant 0 : index
    %c0_20 = arith.constant 0 : index
    %c0_21 = arith.constant 0 : index
    %c0_22 = arith.constant 0 : index
    %23 = vector.load %arg3[%c0_18, %c0_19, %c0_20, %c0_21, %c0_22] : memref<1x1x10x16x16xf32, #tpu.memory_space<vmem>>, vector<1x1x10x16x16xf32>
    %24 = vector.shape_cast %23 : vector<1x1x10x16x16xf32> to vector<10x16x16xf32>
    %25 = vector.shape_cast %24 : vector<10x16x16xf32> to vector<160x16xf32>
    %cst_23 = arith.constant dense<0.000000e+00> : vector<160x4xf32>
    %26 = tpu.matmul %25, %0, %cst_23 {dimension_numbers = #tpu.dot_dimension_numbers<[1], [0], [0], [1], [0, 0, 1, 1], [], []>} : vector<160x16xf32>, vector<16x4xf32>, vector<160x4xf32> -> vector<160x4xf32>
    %27 = vector.broadcast %1 : vector<1x4xf32> to vector<160x4xf32>
    %28 = arith.mulf %26, %27 : vector<160x4xf32>
    %29 = vector.broadcast %2 : vector<1x4xf32> to vector<160x4xf32>
    %30 = arith.addf %28, %29 : vector<160x4xf32>
    %cst_24 = arith.constant 0.000000e+00 : f32
    %31 = vector.broadcast %cst_24 : f32 to vector<160x4xf32>
    %32 = arith.maximumf %30, %31 : vector<160x4xf32>
    %33 = vector.broadcast %3 : vector<160x1xf32> to vector<160x4xf32>
    %34 = arith.mulf %32, %33 : vector<160x4xf32>
    %35 = vector.shape_cast %34 : vector<160x4xf32> to vector<10x16x4xf32>
    %c1 = arith.constant 1 : index
    %c0_25 = arith.constant 0 : index
    %c0_26 = arith.constant 0 : index
    %c0_27 = arith.constant 0 : index
    %36 = vector.load %arg12[%c1, %c0_25, %c0_26, %c0_27] : memref<3x10x16x4xf32, #tpu.memory_space<vmem>>, vector<1x10x16x4xf32>
    %37 = vector.shape_cast %36 : vector<1x10x16x4xf32> to vector<10x16x4xf32>
    %38 = vector.shape_cast %35 : vector<10x16x4xf32> to vector<1x10x16x4xf32>
    tpu.vector_store %arg12[%c1, %c0_25, %c0_26, %c0_27], %38 {strides = array<i32>} : memref<3x10x16x4xf32, #tpu.memory_space<vmem>>, vector<1x10x16x4xf32>,
    %c0_28 = arith.constant 0 : index
    %c0_29 = arith.constant 0 : index
    %c0_30 = arith.constant 0 : index
    %c0_31 = arith.constant 0 : index
    %c0_32 = arith.constant 0 : index
    %39 = vector.load %arg4[%c0_28, %c0_29, %c0_30, %c0_31, %c0_32] : memref<1x1x10x16x16xf32, #tpu.memory_space<vmem>>, vector<1x1x10x16x16xf32>
    %40 = vector.shape_cast %39 : vector<1x1x10x16x16xf32> to vector<10x16x16xf32>
    %41 = vector.shape_cast %40 : vector<10x16x16xf32> to vector<160x16xf32>
    %cst_33 = arith.constant dense<0.000000e+00> : vector<160x4xf32>
    %42 = tpu.matmul %41, %0, %cst_33 {dimension_numbers = #tpu.dot_dimension_numbers<[1], [0], [0], [1], [0, 0, 1, 1], [], []>} : vector<160x16xf32>, vector<16x4xf32>, vector<160x4xf32> -> vector<160x4xf32>
    %43 = vector.broadcast %1 : vector<1x4xf32> to vector<160x4xf32>
    %44 = arith.mulf %42, %43 : vector<160x4xf32>
    %45 = vector.broadcast %2 : vector<1x4xf32> to vector<160x4xf32>
    %46 = arith.addf %44, %45 : vector<160x4xf32>
    %cst_34 = arith.constant 0.000000e+00 : f32
    %47 = vector.broadcast %cst_34 : f32 to vector<160x4xf32>
    %48 = arith.maximumf %46, %47 : vector<160x4xf32>
    %49 = vector.broadcast %3 : vector<160x1xf32> to vector<160x4xf32>
    %50 = arith.mulf %48, %49 : vector<160x4xf32>
    %c7_i32 = arith.constant 7 : i32
    %51 = arith.cmpi slt, %arg1, %c7_i32 : i32
    %cst_35 = arith.constant 0.000000e+00 : f32
    %52 = vector.broadcast %cst_35 : f32 to vector<160x4xf32>
    %53 = arith.select %51, %50, %52 : vector<160x4xf32>
    %54 = vector.shape_cast %53 : vector<160x4xf32> to vector<10x16x4xf32>
    %c2 = arith.constant 2 : index
    %c0_36 = arith.constant 0 : index
    %c0_37 = arith.constant 0 : index
    %c0_38 = arith.constant 0 : index
    %55 = vector.load %arg12[%c2, %c0_36, %c0_37, %c0_38] : memref<3x10x16x4xf32, #tpu.memory_space<vmem>>, vector<1x10x16x4xf32>
    %56 = vector.shape_cast %55 : vector<1x10x16x4xf32> to vector<10x16x4xf32>
    %57 = vector.shape_cast %54 : vector<10x16x4xf32> to vector<1x10x16x4xf32>
    tpu.vector_store %arg12[%c2, %c0_36, %c0_37, %c0_38], %57 {strides = array<i32>} : memref<3x10x16x4xf32, #tpu.memory_space<vmem>>, vector<1x10x16x4xf32>,
    %c0_39 = arith.constant 0 : index
    %c0_40 = arith.constant 0 : index
    %c0_41 = arith.constant 0 : index
    %c0_42 = arith.constant 0 : index
    %58 = vector.load %arg12[%c0_39, %c0_40, %c0_41, %c0_42] : memref<3x10x16x4xf32, #tpu.memory_space<vmem>>, vector<1x8x8x4xf32>
    %59 = vector.shape_cast %58 : vector<1x8x8x4xf32> to vector<8x8x4xf32>
    %60 = vector.shape_cast %59 : vector<8x8x4xf32> to vector<64x4xf32>
    %c0_43 = arith.constant 0 : index
    %c0_44 = arith.constant 0 : index
    %c1_45 = arith.constant 1 : index
    %c0_46 = arith.constant 0 : index
    %61 = vector.load %arg12[%c0_43, %c0_44, %c1_45, %c0_46] : memref<3x10x16x4xf32, #tpu.memory_space<vmem>>, vector<1x8x8x4xf32>
    %62 = vector.shape_cast %61 : vector<1x8x8x4xf32> to vector<8x8x4xf32>
    %63 = vector.shape_cast %62 : vector<8x8x4xf32> to vector<64x4xf32>
    %c0_47 = arith.constant 0 : index
    %c0_48 = arith.constant 0 : index
    %c2_49 = arith.constant 2 : index
    %c0_50 = arith.constant 0 : index
    %64 = vector.load %arg12[%c0_47, %c0_48, %c2_49, %c0_50] : memref<3x10x16x4xf32, #tpu.memory_space<vmem>>, vector<1x8x8x4xf32>
    %65 = vector.shape_cast %64 : vector<1x8x8x4xf32> to vector<8x8x4xf32>
    %66 = vector.shape_cast %65 : vector<8x8x4xf32> to vector<64x4xf32>
    %c0_51 = arith.constant 0 : index
    %c1_52 = arith.constant 1 : index
    %c0_53 = arith.constant 0 : index
    %c0_54 = arith.constant 0 : index
    %67 = vector.load %arg12[%c0_51, %c1_52, %c0_53, %c0_54] : memref<3x10x16x4xf32, #tpu.memory_space<vmem>>, vector<1x8x8x4xf32>
    %68 = vector.shape_cast %67 : vector<1x8x8x4xf32> to vector<8x8x4xf32>
    %69 = vector.shape_cast %68 : vector<8x8x4xf32> to vector<64x4xf32>
    %c0_55 = arith.constant 0 : index
    %c1_56 = arith.constant 1 : index
    %c1_57 = arith.constant 1 : index
    %c0_58 = arith.constant 0 : index
    %70 = vector.load %arg12[%c0_55, %c1_56, %c1_57, %c0_58] : memref<3x10x16x4xf32, #tpu.memory_space<vmem>>, vector<1x8x8x4xf32>
    %71 = vector.shape_cast %70 : vector<1x8x8x4xf32> to vector<8x8x4xf32>
    %72 = vector.shape_cast %71 : vector<8x8x4xf32> to vector<64x4xf32>
    %c0_59 = arith.constant 0 : index
    %c1_60 = arith.constant 1 : index
    %c2_61 = arith.constant 2 : index
    %c0_62 = arith.constant 0 : index
    %73 = vector.load %arg12[%c0_59, %c1_60, %c2_61, %c0_62] : memref<3x10x16x4xf32, #tpu.memory_space<vmem>>, vector<1x8x8x4xf32>
    %74 = vector.shape_cast %73 : vector<1x8x8x4xf32> to vector<8x8x4xf32>
    %75 = vector.shape_cast %74 : vector<8x8x4xf32> to vector<64x4xf32>
    %c0_63 = arith.constant 0 : index
    %c2_64 = arith.constant 2 : index
    %c0_65 = arith.constant 0 : index
    %c0_66 = arith.constant 0 : index
    %76 = vector.load %arg12[%c0_63, %c2_64, %c0_65, %c0_66] : memref<3x10x16x4xf32, #tpu.memory_space<vmem>>, vector<1x8x8x4xf32>
    %77 = vector.shape_cast %76 : vector<1x8x8x4xf32> to vector<8x8x4xf32>
    %78 = vector.shape_cast %77 : vector<8x8x4xf32> to vector<64x4xf32>
    %c0_67 = arith.constant 0 : index
    %c2_68 = arith.constant 2 : index
    %c1_69 = arith.constant 1 : index
    %c0_70 = arith.constant 0 : index
    %79 = vector.load %arg12[%c0_67, %c2_68, %c1_69, %c0_70] : memref<3x10x16x4xf32, #tpu.memory_space<vmem>>, vector<1x8x8x4xf32>
    %80 = vector.shape_cast %79 : vector<1x8x8x4xf32> to vector<8x8x4xf32>
    %81 = vector.shape_cast %80 : vector<8x8x4xf32> to vector<64x4xf32>
    %c0_71 = arith.constant 0 : index
    %c2_72 = arith.constant 2 : index
    %c2_73 = arith.constant 2 : index
    %c0_74 = arith.constant 0 : index
    %82 = vector.load %arg12[%c0_71, %c2_72, %c2_73, %c0_74] : memref<3x10x16x4xf32, #tpu.memory_space<vmem>>, vector<1x8x8x4xf32>
    %83 = vector.shape_cast %82 : vector<1x8x8x4xf32> to vector<8x8x4xf32>
    %84 = vector.shape_cast %83 : vector<8x8x4xf32> to vector<64x4xf32>
    %c1_75 = arith.constant 1 : index
    %c0_76 = arith.constant 0 : index
    %c0_77 = arith.constant 0 : index
    %c0_78 = arith.constant 0 : index
    %85 = vector.load %arg12[%c1_75, %c0_76, %c0_77, %c0_78] : memref<3x10x16x4xf32, #tpu.memory_space<vmem>>, vector<1x8x8x4xf32>
    %86 = vector.shape_cast %85 : vector<1x8x8x4xf32> to vector<8x8x4xf32>
    %87 = vector.shape_cast %86 : vector<8x8x4xf32> to vector<64x4xf32>
    %c1_79 = arith.constant 1 : index
    %c0_80 = arith.constant 0 : index
    %c1_81 = arith.constant 1 : index
    %c0_82 = arith.constant 0 : index
    %88 = vector.load %arg12[%c1_79, %c0_80, %c1_81, %c0_82] : memref<3x10x16x4xf32, #tpu.memory_space<vmem>>, vector<1x8x8x4xf32>
    %89 = vector.shape_cast %88 : vector<1x8x8x4xf32> to vector<8x8x4xf32>
    %90 = vector.shape_cast %89 : vector<8x8x4xf32> to vector<64x4xf32>
    %c1_83 = arith.constant 1 : index
    %c0_84 = arith.constant 0 : index
    %c2_85 = arith.constant 2 : index
    %c0_86 = arith.constant 0 : index
    %91 = vector.load %arg12[%c1_83, %c0_84, %c2_85, %c0_86] : memref<3x10x16x4xf32, #tpu.memory_space<vmem>>, vector<1x8x8x4xf32>
    %92 = vector.shape_cast %91 : vector<1x8x8x4xf32> to vector<8x8x4xf32>
    %93 = vector.shape_cast %92 : vector<8x8x4xf32> to vector<64x4xf32>
    %c1_87 = arith.constant 1 : index
    %c1_88 = arith.constant 1 : index
    %c0_89 = arith.constant 0 : index
    %c0_90 = arith.constant 0 : index
    %94 = vector.load %arg12[%c1_87, %c1_88, %c0_89, %c0_90] : memref<3x10x16x4xf32, #tpu.memory_space<vmem>>, vector<1x8x8x4xf32>
    %95 = vector.shape_cast %94 : vector<1x8x8x4xf32> to vector<8x8x4xf32>
    %96 = vector.shape_cast %95 : vector<8x8x4xf32> to vector<64x4xf32>
    %c1_91 = arith.constant 1 : index
    %c1_92 = arith.constant 1 : index
    %c1_93 = arith.constant 1 : index
    %c0_94 = arith.constant 0 : index
    %97 = vector.load %arg12[%c1_91, %c1_92, %c1_93, %c0_94] : memref<3x10x16x4xf32, #tpu.memory_space<vmem>>, vector<1x8x8x4xf32>
    %98 = vector.shape_cast %97 : vector<1x8x8x4xf32> to vector<8x8x4xf32>
    %99 = vector.shape_cast %98 : vector<8x8x4xf32> to vector<64x4xf32>
    %c1_95 = arith.constant 1 : index
    %c1_96 = arith.constant 1 : index
    %c2_97 = arith.constant 2 : index
    %c0_98 = arith.constant 0 : index
    %100 = vector.load %arg12[%c1_95, %c1_96, %c2_97, %c0_98] : memref<3x10x16x4xf32, #tpu.memory_space<vmem>>, vector<1x8x8x4xf32>
    %101 = vector.shape_cast %100 : vector<1x8x8x4xf32> to vector<8x8x4xf32>
    %102 = vector.shape_cast %101 : vector<8x8x4xf32> to vector<64x4xf32>
    %c1_99 = arith.constant 1 : index
    %c2_100 = arith.constant 2 : index
    %c0_101 = arith.constant 0 : index
    %c0_102 = arith.constant 0 : index
    %103 = vector.load %arg12[%c1_99, %c2_100, %c0_101, %c0_102] : memref<3x10x16x4xf32, #tpu.memory_space<vmem>>, vector<1x8x8x4xf32>
    %104 = vector.shape_cast %103 : vector<1x8x8x4xf32> to vector<8x8x4xf32>
    %105 = vector.shape_cast %104 : vector<8x8x4xf32> to vector<64x4xf32>
    %c1_103 = arith.constant 1 : index
    %c2_104 = arith.constant 2 : index
    %c1_105 = arith.constant 1 : index
    %c0_106 = arith.constant 0 : index
    %106 = vector.load %arg12[%c1_103, %c2_104, %c1_105, %c0_106] : memref<3x10x16x4xf32, #tpu.memory_space<vmem>>, vector<1x8x8x4xf32>
    %107 = vector.shape_cast %106 : vector<1x8x8x4xf32> to vector<8x8x4xf32>
    %108 = vector.shape_cast %107 : vector<8x8x4xf32> to vector<64x4xf32>
    %c1_107 = arith.constant 1 : index
    %c2_108 = arith.constant 2 : index
    %c2_109 = arith.constant 2 : index
    %c0_110 = arith.constant 0 : index
    %109 = vector.load %arg12[%c1_107, %c2_108, %c2_109, %c0_110] : memref<3x10x16x4xf32, #tpu.memory_space<vmem>>, vector<1x8x8x4xf32>
    %110 = vector.shape_cast %109 : vector<1x8x8x4xf32> to vector<8x8x4xf32>
    %111 = vector.shape_cast %110 : vector<8x8x4xf32> to vector<64x4xf32>
    %c2_111 = arith.constant 2 : index
    %c0_112 = arith.constant 0 : index
    %c0_113 = arith.constant 0 : index
    %c0_114 = arith.constant 0 : index
    %112 = vector.load %arg12[%c2_111, %c0_112, %c0_113, %c0_114] : memref<3x10x16x4xf32, #tpu.memory_space<vmem>>, vector<1x8x8x4xf32>
    %113 = vector.shape_cast %112 : vector<1x8x8x4xf32> to vector<8x8x4xf32>
    %114 = vector.shape_cast %113 : vector<8x8x4xf32> to vector<64x4xf32>
    %c2_115 = arith.constant 2 : index
    %c0_116 = arith.constant 0 : index
    %c1_117 = arith.constant 1 : index
    %c0_118 = arith.constant 0 : index
    %115 = vector.load %arg12[%c2_115, %c0_116, %c1_117, %c0_118] : memref<3x10x16x4xf32, #tpu.memory_space<vmem>>, vector<1x8x8x4xf32>
    %116 = vector.shape_cast %115 : vector<1x8x8x4xf32> to vector<8x8x4xf32>
    %117 = vector.shape_cast %116 : vector<8x8x4xf32> to vector<64x4xf32>
    %c2_119 = arith.constant 2 : index
    %c0_120 = arith.constant 0 : index
    %c2_121 = arith.constant 2 : index
    %c0_122 = arith.constant 0 : index
    %118 = vector.load %arg12[%c2_119, %c0_120, %c2_121, %c0_122] : memref<3x10x16x4xf32, #tpu.memory_space<vmem>>, vector<1x8x8x4xf32>
    %119 = vector.shape_cast %118 : vector<1x8x8x4xf32> to vector<8x8x4xf32>
    %120 = vector.shape_cast %119 : vector<8x8x4xf32> to vector<64x4xf32>
    %c2_123 = arith.constant 2 : index
    %c1_124 = arith.constant 1 : index
    %c0_125 = arith.constant 0 : index
    %c0_126 = arith.constant 0 : index
    %121 = vector.load %arg12[%c2_123, %c1_124, %c0_125, %c0_126] : memref<3x10x16x4xf32, #tpu.memory_space<vmem>>, vector<1x8x8x4xf32>
    %122 = vector.shape_cast %121 : vector<1x8x8x4xf32> to vector<8x8x4xf32>
    %123 = vector.shape_cast %122 : vector<8x8x4xf32> to vector<64x4xf32>
    %c2_127 = arith.constant 2 : index
    %c1_128 = arith.constant 1 : index
    %c1_129 = arith.constant 1 : index
    %c0_130 = arith.constant 0 : index
    %124 = vector.load %arg12[%c2_127, %c1_128, %c1_129, %c0_130] : memref<3x10x16x4xf32, #tpu.memory_space<vmem>>, vector<1x8x8x4xf32>
    %125 = vector.shape_cast %124 : vector<1x8x8x4xf32> to vector<8x8x4xf32>
    %126 = vector.shape_cast %125 : vector<8x8x4xf32> to vector<64x4xf32>
    %c2_131 = arith.constant 2 : index
    %c1_132 = arith.constant 1 : index
    %c2_133 = arith.constant 2 : index
    %c0_134 = arith.constant 0 : index
    %127 = vector.load %arg12[%c2_131, %c1_132, %c2_133, %c0_134] : memref<3x10x16x4xf32, #tpu.memory_space<vmem>>, vector<1x8x8x4xf32>
    %128 = vector.shape_cast %127 : vector<1x8x8x4xf32> to vector<8x8x4xf32>
    %129 = vector.shape_cast %128 : vector<8x8x4xf32> to vector<64x4xf32>
    %c2_135 = arith.constant 2 : index
    %c2_136 = arith.constant 2 : index
    %c0_137 = arith.constant 0 : index
    %c0_138 = arith.constant 0 : index
    %130 = vector.load %arg12[%c2_135, %c2_136, %c0_137, %c0_138] : memref<3x10x16x4xf32, #tpu.memory_space<vmem>>, vector<1x8x8x4xf32>
    %131 = vector.shape_cast %130 : vector<1x8x8x4xf32> to vector<8x8x4xf32>
    %132 = vector.shape_cast %131 : vector<8x8x4xf32> to vector<64x4xf32>
    %c2_139 = arith.constant 2 : index
    %c2_140 = arith.constant 2 : index
    %c1_141 = arith.constant 1 : index
    %c0_142 = arith.constant 0 : index
    %133 = vector.load %arg12[%c2_139, %c2_140, %c1_141, %c0_142] : memref<3x10x16x4xf32, #tpu.memory_space<vmem>>, vector<1x8x8x4xf32>
    %134 = vector.shape_cast %133 : vector<1x8x8x4xf32> to vector<8x8x4xf32>
    %135 = vector.shape_cast %134 : vector<8x8x4xf32> to vector<64x4xf32>
    %c2_143 = arith.constant 2 : index
    %c2_144 = arith.constant 2 : index
    %c2_145 = arith.constant 2 : index
    %c0_146 = arith.constant 0 : index
    %136 = vector.load %arg12[%c2_143, %c2_144, %c2_145, %c0_146] : memref<3x10x16x4xf32, #tpu.memory_space<vmem>>, vector<1x8x8x4xf32>
    %137 = vector.shape_cast %136 : vector<1x8x8x4xf32> to vector<8x8x4xf32>
    %138 = vector.shape_cast %137 : vector<8x8x4xf32> to vector<64x4xf32>
    %139 = tpu.concatenate %60, %63, %66, %69, %72, %75, %78, %81, %84, %87, %90, %93, %96, %99, %102, %105 in 1 : vector<64x4xf32>, vector<64x4xf32>, vector<64x4xf32>, vector<64x4xf32>, vector<64x4xf32>, vector<64x4xf32>, vector<64x4xf32>, vector<64x4xf32>, vector<64x4xf32>, vector<64x4xf32>, vector<64x4xf32>, vector<64x4xf32>, vector<64x4xf32>, vector<64x4xf32>, vector<64x4xf32>, vector<64x4xf32> -> vector<64x64xf32>
    %140 = tpu.concatenate %108, %111, %114, %117, %120, %123, %126, %129, %132, %135, %138 in 1 : vector<64x4xf32>, vector<64x4xf32>, vector<64x4xf32>, vector<64x4xf32>, vector<64x4xf32>, vector<64x4xf32>, vector<64x4xf32>, vector<64x4xf32>, vector<64x4xf32>, vector<64x4xf32>, vector<64x4xf32> -> vector<64x44xf32>
    %141 = tpu.concatenate %139, %140 in 1 : vector<64x64xf32>, vector<64x44xf32> -> vector<64x108xf32>
    %c0_147 = arith.constant 0 : index
    %c0_148 = arith.constant 0 : index
    %142 = vector.load %arg9[%c0_147, %c0_148] : memref<108x4xf32, #tpu.memory_space<vmem>>, vector<108x4xf32>
    %cst_149 = arith.constant dense<0.000000e+00> : vector<64x4xf32>
    %143 = tpu.matmul %141, %142, %cst_149 {dimension_numbers = #tpu.dot_dimension_numbers<[1], [0], [0], [1], [0, 0, 1, 1], [], []>} : vector<64x108xf32>, vector<108x4xf32>, vector<64x4xf32> -> vector<64x4xf32>
    %c0_150 = arith.constant 0 : index
    %c0_151 = arith.constant 0 : index
    %c0_152 = arith.constant 0 : index
    %c0_153 = arith.constant 0 : index
    %144 = vector.load %arg10[%c0_150, %c0_151, %c0_152, %c0_153] : memref<1x1x64x4xf32, #tpu.memory_space<vmem>>, vector<1x1x64x4xf32>
    %145 = vector.shape_cast %144 : vector<1x1x64x4xf32> to vector<64x4xf32>
    %146 = vector.shape_cast %143 : vector<64x4xf32> to vector<1x1x64x4xf32>
    tpu.vector_store %arg10[%c0_150, %c0_151, %c0_152, %c0_153], %146 {strides = array<i32>} : memref<1x1x64x4xf32, #tpu.memory_space<vmem>>, vector<1x1x64x4xf32>,
    %cst_154 = arith.constant dense<0.000000e+00> : vector<4xf32>
    %147 = vector.multi_reduction <add>, %143, %cst_154 [0] : vector<64x4xf32> to vector<4xf32>
    %148 = vector.shape_cast %147 : vector<4xf32> to vector<1x4xf32>
    %149 = arith.mulf %143, %143 : vector<64x4xf32>
    %cst_155 = arith.constant dense<0.000000e+00> : vector<4xf32>
    %150 = vector.multi_reduction <add>, %149, %cst_155 [0] : vector<64x4xf32> to vector<4xf32>
    %151 = vector.shape_cast %150 : vector<4xf32> to vector<1x4xf32>
    %152 = tpu.concatenate %148, %151 in 0 : vector<1x4xf32>, vector<1x4xf32> -> vector<2x4xf32>
    %c0_156 = arith.constant 0 : index
    %c0_157 = arith.constant 0 : index
    %c0_158 = arith.constant 0 : index
    %c0_159 = arith.constant 0 : index
    %153 = vector.load %arg11[%c0_156, %c0_157, %c0_158, %c0_159] : memref<1x1x2x4xf32, #tpu.memory_space<vmem>>, vector<1x1x2x4xf32>
    %154 = vector.shape_cast %153 : vector<1x1x2x4xf32> to vector<2x4xf32>
    %155 = vector.shape_cast %152 : vector<2x4xf32> to vector<1x1x2x4xf32>
    tpu.vector_store %arg11[%c0_156, %c0_157, %c0_158, %c0_159], %155 {strides = array<i32>} : memref<1x1x2x4xf32, #tpu.memory_space<vmem>>, vector<1x1x2x4xf32>,
    return
  }
  func.func @transform_0(%arg0: i32, %arg1: i32) -> (i32, i32, i32, i32, i32) {
    %c1_i32 = arith.constant 1 : i32
    %0 = arith.subi %arg1, %c1_i32 : i32
    %c0_i32 = arith.constant 0 : i32
    %1 = arith.maxsi %0, %c0_i32 : i32
    %c0_i32_0 = arith.constant 0 : i32
    %c0_i32_1 = arith.constant 0 : i32
    %c0_i32_2 = arith.constant 0 : i32
    %c0_i32_3 = arith.constant 0 : i32
    return %arg0, %1, %c0_i32_0, %c0_i32_1, %c0_i32_2 : i32, i32, i32, i32, i32
  }
  func.func @transform_1(%arg0: i32, %arg1: i32) -> (i32, i32, i32, i32, i32) {
    %c0_i32 = arith.constant 0 : i32
    %c0_i32_0 = arith.constant 0 : i32
    %c0_i32_1 = arith.constant 0 : i32
    %c0_i32_2 = arith.constant 0 : i32
    return %arg0, %arg1, %c0_i32, %c0_i32_0, %c0_i32_1 : i32, i32, i32, i32, i32
  }
  func.func @transform_2(%arg0: i32, %arg1: i32) -> (i32, i32, i32, i32, i32) {
    %c1_i32 = arith.constant 1 : i32
    %0 = arith.addi %arg1, %c1_i32 : i32
    %c7_i32 = arith.constant 7 : i32
    %1 = arith.minsi %0, %c7_i32 : i32
    %c0_i32 = arith.constant 0 : i32
    %c0_i32_0 = arith.constant 0 : i32
    %c0_i32_1 = arith.constant 0 : i32
    %c0_i32_2 = arith.constant 0 : i32
    return %arg0, %1, %c0_i32, %c0_i32_0, %c0_i32_1 : i32, i32, i32, i32, i32
  }
  func.func @transform_3(%arg0: i32, %arg1: i32) -> (i32, i32) {
    %c0_i32 = arith.constant 0 : i32
    %c0_i32_0 = arith.constant 0 : i32
    %c0_i32_1 = arith.constant 0 : i32
    return %c0_i32, %c0_i32_0 : i32, i32
  }
  func.func @transform_4(%arg0: i32, %arg1: i32) -> (i32, i32) {
    %c0_i32 = arith.constant 0 : i32
    %c0_i32_0 = arith.constant 0 : i32
    %c0_i32_1 = arith.constant 0 : i32
    return %c0_i32, %c0_i32_0 : i32, i32
  }
  func.func @transform_5(%arg0: i32, %arg1: i32) -> (i32, i32) {
    %c0_i32 = arith.constant 0 : i32
    %c0_i32_0 = arith.constant 0 : i32
    %c0_i32_1 = arith.constant 0 : i32
    return %c0_i32, %c0_i32_0 : i32, i32
  }
  func.func @transform_6(%arg0: i32, %arg1: i32) -> (i32, i32) {
    %c0_i32 = arith.constant 0 : i32
    %c0_i32_0 = arith.constant 0 : i32
    %c0_i32_1 = arith.constant 0 : i32
    return %c0_i32, %c0_i32_0 : i32, i32
  }
  func.func @transform_7(%arg0: i32, %arg1: i32) -> (i32, i32) {
    %c0_i32 = arith.constant 0 : i32
    %c0_i32_0 = arith.constant 0 : i32
    %c0_i32_1 = arith.constant 0 : i32
    return %c0_i32, %c0_i32_0 : i32, i32
  }
  func.func @transform_8(%arg0: i32, %arg1: i32) -> (i32, i32, i32, i32) {
    %c0_i32 = arith.constant 0 : i32
    %c0_i32_0 = arith.constant 0 : i32
    %c0_i32_1 = arith.constant 0 : i32
    return %arg0, %arg1, %c0_i32, %c0_i32_0 : i32, i32, i32, i32
  }
  func.func @transform_9(%arg0: i32, %arg1: i32) -> (i32, i32, i32, i32) {
    %c0_i32 = arith.constant 0 : i32
    %c0_i32_0 = arith.constant 0 : i32
    %c0_i32_1 = arith.constant 0 : i32
    return %arg0, %arg1, %c0_i32, %c0_i32_0 : i32, i32, i32, i32
  }
}

module attributes {stable_mosaic.version = 11 : i64} {
  func.func @_stats3_kernel(%arg0: i32, %arg1: memref<4x512xf32, #tpu.memory_space<vmem>>, %arg2: memref<4x1xf32, #tpu.memory_space<vmem>>, %arg3: memref<4x1xf32, #tpu.memory_space<vmem>>, %arg4: memref<16x4xf32, #tpu.memory_space<vmem>>, %arg5: memref<16x2xf32, #tpu.memory_space<vmem>>) attributes {dimension_semantics = [#tpu.dimension_semantics<arbitrary>], iteration_bounds = array<i64: 2>, scalar_prefetch = 0 : i64, scratch_operands = 0 : i64, tpu.core_type = #tpu.core_type<tc>, window_params = [{transform_indices = @transform_0, window_bounds = array<i64: 4, 512>}, {pipeline_mode = #tpu.pipeline_mode<synchronous>, transform_indices = @transform_1, window_bounds = array<i64: 4, 1>}, {pipeline_mode = #tpu.pipeline_mode<synchronous>, transform_indices = @transform_2, window_bounds = array<i64: 4, 1>}, {pipeline_mode = #tpu.pipeline_mode<synchronous>, transform_indices = @transform_3, window_bounds = array<i64: 16, 4>}, {pipeline_mode = #tpu.pipeline_mode<synchronous>, transform_indices = @transform_4, window_bounds = array<i64: 16, 2>}]} {
    %c0 = arith.constant 0 : index
    %c0_0 = arith.constant 0 : index
    %0 = vector.load %arg1[%c0, %c0_0] : memref<4x512xf32, #tpu.memory_space<vmem>>, vector<4x512xf32>
    %c0_1 = arith.constant 0 : index
    %c0_2 = arith.constant 0 : index
    %1 = vector.load %arg2[%c0_1, %c0_2] : memref<4x1xf32, #tpu.memory_space<vmem>>, vector<4x1xf32>
    %2 = vector.broadcast %1 : vector<4x1xf32> to vector<4x512xf32>
    %3 = arith.mulf %0, %2 : vector<4x512xf32>
    %c0_3 = arith.constant 0 : index
    %c0_4 = arith.constant 0 : index
    %4 = vector.load %arg3[%c0_3, %c0_4] : memref<4x1xf32, #tpu.memory_space<vmem>>, vector<4x1xf32>
    %5 = vector.broadcast %4 : vector<4x1xf32> to vector<4x512xf32>
    %6 = arith.addf %3, %5 : vector<4x512xf32>
    %cst = arith.constant 0.000000e+00 : f32
    %7 = vector.broadcast %cst : f32 to vector<4x512xf32>
    %8 = arith.maximumf %6, %7 : vector<4x512xf32>
    %c512_i32 = arith.constant 512 : i32
    %9 = arith.muli %arg0, %c512_i32 : i32
    %10 = tpu.iota {dimensions = array<i32: 1>} : vector<1x512xi32>
    %11 = vector.broadcast %9 : i32 to vector<1x512xi32>
    %12 = arith.addi %11, %10 : vector<1x512xi32>
    %c1024_i32 = arith.constant 1024 : i32
    %13 = vector.broadcast %c1024_i32 : i32 to vector<1x512xi32>
    %14 = arith.cmpi slt, %12, %13 : vector<1x512xi32>
    %cst_5 = arith.constant 0.000000e+00 : f32
    %15 = vector.shape_cast %14 : vector<1x512xi1> to vector<1x512xi1>
    %16 = vector.broadcast %15 : vector<1x512xi1> to vector<4x512xi1>
    %17 = vector.broadcast %cst_5 : f32 to vector<4x512xf32>
    %18 = arith.select %16, %8, %17 : vector<4x512xi1>, vector<4x512xf32>
    %c0_6 = arith.constant 0 : index
    %c0_7 = arith.constant 0 : index
    %19 = vector.load %arg4[%c0_6, %c0_7] : memref<16x4xf32, #tpu.memory_space<vmem>>, vector<16x4xf32>
    %cst_8 = arith.constant dense<0.000000e+00> : vector<16x512xf32>
    %20 = tpu.matmul %19, %18, %cst_8 {dimension_numbers = #tpu.dot_dimension_numbers<[1], [0], [0], [1], [0, 0, 1, 1], [], []>} : vector<16x4xf32>, vector<4x512xf32>, vector<16x512xf32> -> vector<16x512xf32>
    %cst_9 = arith.constant dense<0.000000e+00> : vector<16xf32>
    %21 = vector.multi_reduction <add>, %20, %cst_9 [1] : vector<16x512xf32> to vector<16xf32>
    %22 = vector.shape_cast %21 : vector<16xf32> to vector<16x1xf32>
    %23 = arith.mulf %20, %20 : vector<16x512xf32>
    %cst_10 = arith.constant dense<0.000000e+00> : vector<16xf32>
    %24 = vector.multi_reduction <add>, %23, %cst_10 [1] : vector<16x512xf32> to vector<16xf32>
    %25 = vector.shape_cast %24 : vector<16xf32> to vector<16x1xf32>
    %c0_i32 = arith.constant 0 : i32
    %26 = arith.cmpi eq, %arg0, %c0_i32 : i32
    %27 = arith.extui %26 : i1 to i32
    %c0_i32_11 = arith.constant 0 : i32
    %28 = arith.cmpi ne, %27, %c0_i32_11 : i32
    scf.if %28 {
      %cst_16 = arith.constant 0.000000e+00 : f32
      %33 = vector.broadcast %cst_16 : f32 to vector<16x2xf32>
      %c0_17 = arith.constant 0 : index
      %c0_18 = arith.constant 0 : index
      %34 = vector.load %arg5[%c0_17, %c0_18] : memref<16x2xf32, #tpu.memory_space<vmem>>, vector<16x2xf32>
      tpu.vector_store %arg5[%c0_17, %c0_18], %33 {strides = array<i32>} : memref<16x2xf32, #tpu.memory_space<vmem>>, vector<16x2xf32>,
    } else {
    }
    %c0_12 = arith.constant 0 : index
    %c0_13 = arith.constant 0 : index
    %29 = vector.load %arg5[%c0_12, %c0_13] : memref<16x2xf32, #tpu.memory_space<vmem>>, vector<16x2xf32>
    %30 = tpu.concatenate %22, %25 in 1 : vector<16x1xf32>, vector<16x1xf32> -> vector<16x2xf32>
    %31 = arith.addf %29, %30 : vector<16x2xf32>
    %c0_14 = arith.constant 0 : index
    %c0_15 = arith.constant 0 : index
    %32 = vector.load %arg5[%c0_14, %c0_15] : memref<16x2xf32, #tpu.memory_space<vmem>>, vector<16x2xf32>
    tpu.vector_store %arg5[%c0_14, %c0_15], %31 {strides = array<i32>} : memref<16x2xf32, #tpu.memory_space<vmem>>, vector<16x2xf32>,
    return
  }
  func.func @transform_0(%arg0: i32) -> (i32, i32) {
    %c0_i32 = arith.constant 0 : i32
    %c0_i32_0 = arith.constant 0 : i32
    return %c0_i32, %arg0 : i32, i32
  }
  func.func @transform_1(%arg0: i32) -> (i32, i32) {
    %c0_i32 = arith.constant 0 : i32
    %c0_i32_0 = arith.constant 0 : i32
    %c0_i32_1 = arith.constant 0 : i32
    return %c0_i32, %c0_i32_0 : i32, i32
  }
  func.func @transform_2(%arg0: i32) -> (i32, i32) {
    %c0_i32 = arith.constant 0 : i32
    %c0_i32_0 = arith.constant 0 : i32
    %c0_i32_1 = arith.constant 0 : i32
    return %c0_i32, %c0_i32_0 : i32, i32
  }
  func.func @transform_3(%arg0: i32) -> (i32, i32) {
    %c0_i32 = arith.constant 0 : i32
    %c0_i32_0 = arith.constant 0 : i32
    %c0_i32_1 = arith.constant 0 : i32
    return %c0_i32, %c0_i32_0 : i32, i32
  }
  func.func @transform_4(%arg0: i32) -> (i32, i32) {
    %c0_i32 = arith.constant 0 : i32
    %c0_i32_0 = arith.constant 0 : i32
    %c0_i32_1 = arith.constant 0 : i32
    return %c0_i32, %c0_i32_0 : i32, i32
  }
}

module attributes {stable_mosaic.version = 11 : i64} {
  func.func @_final_kernel(%arg0: i32, %arg1: memref<4x512xf32, #tpu.memory_space<vmem>>, %arg2: memref<16x512xf32, #tpu.memory_space<vmem>>, %arg3: memref<4x1xf32, #tpu.memory_space<vmem>>, %arg4: memref<4x1xf32, #tpu.memory_space<vmem>>, %arg5: memref<16x4xf32, #tpu.memory_space<vmem>>, %arg6: memref<16x1xf32, #tpu.memory_space<vmem>>, %arg7: memref<16x1xf32, #tpu.memory_space<vmem>>, %arg8: memref<16x512xf32, #tpu.memory_space<vmem>>) attributes {dimension_semantics = [#tpu.dimension_semantics<parallel>], iteration_bounds = array<i64: 2>, scalar_prefetch = 0 : i64, scratch_operands = 0 : i64, tpu.core_type = #tpu.core_type<tc>, window_params = [{transform_indices = @transform_0, window_bounds = array<i64: 4, 512>}, {transform_indices = @transform_1, window_bounds = array<i64: 16, 512>}, {pipeline_mode = #tpu.pipeline_mode<synchronous>, transform_indices = @transform_2, window_bounds = array<i64: 4, 1>}, {pipeline_mode = #tpu.pipeline_mode<synchronous>, transform_indices = @transform_3, window_bounds = array<i64: 4, 1>}, {pipeline_mode = #tpu.pipeline_mode<synchronous>, transform_indices = @transform_4, window_bounds = array<i64: 16, 4>}, {pipeline_mode = #tpu.pipeline_mode<synchronous>, transform_indices = @transform_5, window_bounds = array<i64: 16, 1>}, {pipeline_mode = #tpu.pipeline_mode<synchronous>, transform_indices = @transform_6, window_bounds = array<i64: 16, 1>}, {transform_indices = @transform_7, window_bounds = array<i64: 16, 512>}]} {
    %c0 = arith.constant 0 : index
    %c0_0 = arith.constant 0 : index
    %0 = vector.load %arg1[%c0, %c0_0] : memref<4x512xf32, #tpu.memory_space<vmem>>, vector<4x512xf32>
    %c0_1 = arith.constant 0 : index
    %c0_2 = arith.constant 0 : index
    %1 = vector.load %arg3[%c0_1, %c0_2] : memref<4x1xf32, #tpu.memory_space<vmem>>, vector<4x1xf32>
    %2 = vector.broadcast %1 : vector<4x1xf32> to vector<4x512xf32>
    %3 = arith.mulf %0, %2 : vector<4x512xf32>
    %c0_3 = arith.constant 0 : index
    %c0_4 = arith.constant 0 : index
    %4 = vector.load %arg4[%c0_3, %c0_4] : memref<4x1xf32, #tpu.memory_space<vmem>>, vector<4x1xf32>
    %5 = vector.broadcast %4 : vector<4x1xf32> to vector<4x512xf32>
    %6 = arith.addf %3, %5 : vector<4x512xf32>
    %cst = arith.constant 0.000000e+00 : f32
    %7 = vector.broadcast %cst : f32 to vector<4x512xf32>
    %8 = arith.maximumf %6, %7 : vector<4x512xf32>
    %c0_5 = arith.constant 0 : index
    %c0_6 = arith.constant 0 : index
    %9 = vector.load %arg5[%c0_5, %c0_6] : memref<16x4xf32, #tpu.memory_space<vmem>>, vector<16x4xf32>
    %cst_7 = arith.constant dense<0.000000e+00> : vector<16x512xf32>
    %10 = tpu.matmul %9, %8, %cst_7 {dimension_numbers = #tpu.dot_dimension_numbers<[1], [0], [0], [1], [0, 0, 1, 1], [], []>} : vector<16x4xf32>, vector<4x512xf32>, vector<16x512xf32> -> vector<16x512xf32>
    %c0_8 = arith.constant 0 : index
    %c0_9 = arith.constant 0 : index
    %11 = vector.load %arg6[%c0_8, %c0_9] : memref<16x1xf32, #tpu.memory_space<vmem>>, vector<16x1xf32>
    %12 = vector.broadcast %11 : vector<16x1xf32> to vector<16x512xf32>
    %13 = arith.mulf %10, %12 : vector<16x512xf32>
    %c0_10 = arith.constant 0 : index
    %c0_11 = arith.constant 0 : index
    %14 = vector.load %arg7[%c0_10, %c0_11] : memref<16x1xf32, #tpu.memory_space<vmem>>, vector<16x1xf32>
    %15 = vector.broadcast %14 : vector<16x1xf32> to vector<16x512xf32>
    %16 = arith.addf %13, %15 : vector<16x512xf32>
    %c0_12 = arith.constant 0 : index
    %c0_13 = arith.constant 0 : index
    %17 = vector.load %arg2[%c0_12, %c0_13] : memref<16x512xf32, #tpu.memory_space<vmem>>, vector<16x512xf32>
    %18 = arith.addf %16, %17 : vector<16x512xf32>
    %cst_14 = arith.constant 0.000000e+00 : f32
    %19 = vector.broadcast %cst_14 : f32 to vector<16x512xf32>
    %20 = arith.maximumf %18, %19 : vector<16x512xf32>
    %c0_15 = arith.constant 0 : index
    %c0_16 = arith.constant 0 : index
    %21 = vector.load %arg8[%c0_15, %c0_16] : memref<16x512xf32, #tpu.memory_space<vmem>>, vector<16x512xf32>
    tpu.vector_store %arg8[%c0_15, %c0_16], %20 {strides = array<i32>} : memref<16x512xf32, #tpu.memory_space<vmem>>, vector<16x512xf32>,
    return
  }
  func.func @transform_0(%arg0: i32) -> (i32, i32) {
    %c0_i32 = arith.constant 0 : i32
    %c0_i32_0 = arith.constant 0 : i32
    return %c0_i32, %arg0 : i32, i32
  }
  func.func @transform_1(%arg0: i32) -> (i32, i32) {
    %c0_i32 = arith.constant 0 : i32
    %c0_i32_0 = arith.constant 0 : i32
    return %c0_i32, %arg0 : i32, i32
  }
  func.func @transform_2(%arg0: i32) -> (i32, i32) {
    %c0_i32 = arith.constant 0 : i32
    %c0_i32_0 = arith.constant 0 : i32
    %c0_i32_1 = arith.constant 0 : i32
    return %c0_i32, %c0_i32_0 : i32, i32
  }
  func.func @transform_3(%arg0: i32) -> (i32, i32) {
    %c0_i32 = arith.constant 0 : i32
    %c0_i32_0 = arith.constant 0 : i32
    %c0_i32_1 = arith.constant 0 : i32
    return %c0_i32, %c0_i32_0 : i32, i32
  }
  func.func @transform_4(%arg0: i32) -> (i32, i32) {
    %c0_i32 = arith.constant 0 : i32
    %c0_i32_0 = arith.constant 0 : i32
    %c0_i32_1 = arith.constant 0 : i32
    return %c0_i32, %c0_i32_0 : i32, i32
  }
  func.func @transform_5(%arg0: i32) -> (i32, i32) {
    %c0_i32 = arith.constant 0 : i32
    %c0_i32_0 = arith.constant 0 : i32
    %c0_i32_1 = arith.constant 0 : i32
    return %c0_i32, %c0_i32_0 : i32, i32
  }
  func.func @transform_6(%arg0: i32) -> (i32, i32) {
    %c0_i32 = arith.constant 0 : i32
    %c0_i32_0 = arith.constant 0 : i32
    %c0_i32_1 = arith.constant 0 : i32
    return %c0_i32, %c0_i32_0 : i32, i32
  }
  func.func @transform_7(%arg0: i32) -> (i32, i32) {
    %c0_i32 = arith.constant 0 : i32
    %c0_i32_0 = arith.constant 0 : i32
    return %c0_i32, %arg0 : i32, i32
  }
}

</mosaic_0001>

<bundles_post_ra>
// kernel: bottleneck_forward.4
= control target key start
LH: loop header
LB: loop body
LE: loop exit
PB: predicated region body
PF: predicated region fallthrough
CT: control target
= control target key end

     0   :  { %7 = vsyncpa [#allocation4], 0  ;;  %s482_s9 = smov 0   ;;  %s484_s10 = smov 0   ;;  %s579_s0 = inlined_call_operand.vmem [shape: f32[16,1024], index: 0, kind: input, shape index: {}]   ;;  %s580_s1 = inlined_call_operand.hbm [shape: f32[4,16], index: 1, kind: input, shape index: {}]   ;;  %s581_s2 = inlined_call_operand.vmem [shape: f32[4,2], index: 2, kind: output, shape index: {}]  }
   0x1   :  { %s486_s11 = smov 0  }
   0x2 LB: > { %s353_s12 = sadd.s32 4294967295, %s463_s11   ;;  %s499_s13 = sadd.s32 1, %s463_s11   ;;  %s463_s11 = sphi %s486_s11, %s588_s11   ;;  %s459_s10 = sphi %s484_s10, %s587_s10   ;;  %s455_s9 = sphi %s482_s9, %s586_s9  }
   0x3   : > { %s17_s14 = ssub.s32 %s463_s11, %s499_s13  ;;  %s20_s15 = sadd.s32 1, %s459_s10 }
   0x4   : > { %p18_p0 = scmp.eq.s32.totalorder %s17_s14, 0  ;;  %p27_p1 = scmp.ne.s32.totalorder %s459_s10, %s455_s9 }
   0x5   : > { %p28_p2 = scmp.eq.s32.totalorder %s463_s11, 0  ;;  %p354_p3 = scmp.ge.s32.totalorder %s463_s11, 1 }
   0x6   : > { %s509_s16 = scalar_select %p18_p0, %s459_s10, %s20_s15  }
   0x7   : > { %p511_p4 = por %p28_p2, %p27_p1  ;;  %p86_p5 = scmp.lt.s32.totalorder %s463_s11, 3 }
   0x8   : > { %p516_p6 = scmp.ne.s32.totalorder %s353_s12, 0  ;;  %p520_p7 = scmp.eq.s32.totalorder %s353_s12, 0 }
   0x9   : > { %p524_p8 = pnand %p354_p3, %p86_p5  ;;  %s98_s23 = sshll.u32 %s580_s1, 4  ;;  %s99_s23 = int_to_ptr.hbm [resolvable:$true] %s98_s23 }
   0xa   : > { %s465_s24 = smov [#allocation3]   ;;  %p356_p11 = scmp.ge.s32.totalorder %s463_s11, 2 }
   0xb   : > { %p375_p9 = pneg %p524_p8  ;;  %s100_s25 = sshll.u32 %s465_s24, 4  ;;  %s101_s25 = int_to_ptr.vmem [resolvable:$true] %s100_s25 }
   0xc   : > { %107 = sbr.rel (%p356_p11) target bundleno = 29 (0x1d), region = 20 }
   0xd   : > { %p376_p10 = pnand %p520_p7, %p375_p9 }
   0xf   : > { %378 = dma.hbm_to_vmem [thread:$0]  (!%p376_p10), %s99_s23, 64, %s101_s25, [#allocation4]  }
  0x11   : > { %110 = sbr.rel (!%p511_p4) target bundleno = 29 (0x1d), region = 24  ;;  %s112_s26 = sand.u32 (%p511_p4), 1, %s459_s10  }
  0x12   : > { %s370_s27 = sshll.u32 (%p511_p4), %s463_s11, 5  ;;  %s357_s28 = sshll.u32 (%p511_p4), %s112_s26, 6 }
  0x13   : > { %s117_s3 = scalar_lea.vmem (%p511_p4), %s579_s0, %s370_s27  ;;  %s114_s4 = scalar_lea.vmem (%p511_p4), [#allocation2], %s357_s28 }
  0x14   : > { %v130_v0 = vld [vmem:[%s117_s3] sm:$0xff] (%p511_p4)  ;;  %v132_v1 = vld [vmem:[%s117_s3 + $0x8] sm:$0xff] (%p511_p4)  ;;  %v134_v2 = vld [vmem:[%s117_s3 + $0x10] sm:$0xff] (%p511_p4) }
  0x15   : > { %131 = vst [vmem:[%s114_s4] sm:$0xff] (%p511_p4), %v130_v0  ;;  %v136_v3 = vld [vmem:[%s117_s3 + $0x18] sm:$0xff] (%p511_p4)  ;;  %v138_v4 = vld [vmem:[%s117_s3 + $0x40] sm:$0xff] (%p511_p4)  ;;  %v140_v5 = vld [vmem:[%s117_s3 + $0x48] sm:$0xff] (%p511_p4) }
  0x16   : > { %133 = vst [vmem:[%s114_s4 + $0x8] sm:$0xff] %v132_v1  ;;  %v142_v6 = vld [vmem:[%s117_s3 + $0x50] sm:$0xff]  ;;  %v144_v7 = vld [vmem:[%s117_s3 + $0x58] sm:$0xff] }
  0x17   : > { %135 = vst [vmem:[%s114_s4 + $0x10] sm:$0xff] %v134_v2 }
  0x18   : > { %137 = vst [vmem:[%s114_s4 + $0x18] sm:$0xff] %v136_v3 }
  0x19   : > { %139 = vst [vmem:[%s114_s4 + $0x20] sm:$0xff] %v138_v4 }
  0x1a   : > { %141 = vst [vmem:[%s114_s4 + $0x28] sm:$0xff] %v140_v5 }
  0x1b   : > { %143 = vst [vmem:[%s114_s4 + $0x30] sm:$0xff] %v142_v6 }
  0x1c   : > { %145 = vst [vmem:[%s114_s4 + $0x38] sm:$0xff] %v144_v7 }
  0x1d PF: > { %154 = sbr.rel (%p524_p8) target bundleno = 312 (0x138), region = 47  ;;  %s157_s5 = sand.u32 (!%p524_p8), 1, %s455_s9  }
  0x1e   : > { %s361_s6 = sshll.u32 (!%p524_p8), %s157_s5, 6 }
  0x1f   : > { %s159_s7 = scalar_lea.vmem (!%p524_p8), [#allocation2], %s361_s6 }
  0x22   : > { %450 = dma.done.wait (%p520_p7), [#allocation4], 64  }
  0x23   : > { %452 = vsyncadd (%p520_p7), [#allocation4], 4294967232  ;;  %v186_v8 = vld [vmem:[%s159_s7 + $0x30] sm:$0xff]  ;;  %v187_v10 = vld [vmem:[%s159_s7 + $0x38] sm:$0xff]  ;;  %vm188_vm0 = vcmask 130048   ;;  %vm272_vm1 = vcmask 1043456  }
  0x24   : > { %v182_v9 = vld [vmem:[%s159_s7 + $0x10] sm:$0xff]  ;;  %246 = vmatpush.msra.mxu2 %v186_v8  ;;  %266 = vmatpush.msra.mxu3 %v187_v10  ;;  %v179_v11 = vld [vmem:[#allocation3] sm:$0xf]  ;;  %v185_v13 = vld [vmem:[%s159_s7 + $0x28] sm:$0xff] }
  0x25   : > { %v184_v12 = vld [vmem:[%s159_s7 + $0x20] sm:$0xff]  ;;  %226 = vmatpush.msra.mxu1 %v185_v13  ;;  %v183_v14 = vld [vmem:[%s159_s7 + $0x18] sm:$0xff]  ;;  %v181_v16 = vld [vmem:[%s159_s7 + $0x8] sm:$0xff] }
  0x26   : > { %206 = vmatpush.msra.mxu0 %v184_v12  ;;  %v180_v15 = vld [vmem:[%s159_s7] sm:$0xff]  ;;  %247 = vmatpush.msra.mxu2 %v182_v9 }
  0x27   : > { %267 = vmatpush.msra.mxu3 %v183_v14  ;;  %365 = vmatmul.msk.f32.vlgmr.msra.gmra.mxu2 %vm188_vm0, %v179_v11 }
  0x28   : > { %366 = vmatmul.msk.f32.vlgmr.msra.gmra.mxu3 %vm188_vm0, %v179_v11  ;;  %207 = vmatpush.msra.mxu0 %v180_v15 }
  0x29   : > { %227 = vmatpush.msra.mxu1 %v181_v16  ;;  %363 = vmatmul.msk.f32.vlgmr.msra.gmra.mxu0 %vm188_vm0, %v179_v11 }
  0x2a   : > { %364 = vmatmul.msk.f32.vlgmr.msra.gmra.mxu1 %vm188_vm0, %v179_v11 }
  0xa6   : > { %v209_v17 = vpop.f32.mrf.mxu0 }
  0xa7   : > { %v229_v18 = vpop.f32.mrf.mxu1  ;;  %v273_v19 = vsel %vm272_vm1, %v209_v17, 0.0  ;;  %v282_v20 = vmul.f32 %v209_v17, %v209_v17 }
  0xa8   : > { %v274_v21 = vsel %vm272_vm1, %v229_v18, 0.0  ;;  %v283_v22 = vmul.f32 %v229_v18, %v229_v18 }
  0xa9   : > { %v275_v23 = vadd.f32 %v274_v21, %v273_v19  ;;  %v286_v24 = vsel %vm272_vm1, %v282_v20, 0.0 }
  0xaa   : > { %v249_v25 = vpop.f32.mrf.mxu2  ;;  %v287_v27 = vsel %vm272_vm1, %v283_v22, 0.0 }
  0xab   : > { %v269_v26 = vpop.f32.mrf.mxu3  ;;  %v276_v28 = vsel %vm272_vm1, %v249_v25, 0.0  ;;  %v284_v29 = vmul.f32 %v249_v25, %v249_v25  ;;  %v288_v32 = vadd.f32 %v287_v27, %v286_v24 }
  0xac   : > { %v278_v30 = vsel %vm272_vm1, %v269_v26, 0.0  ;;  %v277_v31 = vadd.f32 %v276_v28, %v275_v23  ;;  %v285_v35 = vmul.f32 %v269_v26, %v269_v26 }
  0xad   : > { %v289_v34 = vsel %vm272_vm1, %v284_v29, 0.0 }
  0xae   : > { %v279_v33 = vadd.f32 %v278_v30, %v277_v31  ;;  %v290_v36 = vadd.f32 %v289_v34, %v288_v32  ;;  %v291_v37 = vsel %vm272_vm1, %v285_v35, 0.0 }
  0xb0   : > { %280 = vadd.xlane.f32.xlu0 %v279_v33  ;;  %v292_v38 = vadd.f32 %v291_v37, %v290_v36 }
  0xb8   : > { %293 = vadd.xlane.f32.xlu0 %v292_v38 }
 0x123   : > { %v281_v39 = vpop.xlane.xlu0 %280 }
 0x127   : > { %298 = sbr.rel (%p516_p6) target bundleno = 302 (0x12e), region = 59 }
 0x12b   : > { %v294_v40 = vpop.xlane.xlu0 %293 }
 0x12c   : > { %vm299_vm2 = vcmask 11264   ;;  %v466_v41 = vmov 0.0  }
 0x12d   : > { %300 = vst.msk [vmem:[%s581_s2] sm:$0xf] %vm299_vm2, %v466_v41 }
 0x12e PF: > { %vm302_vm3 = vcmask 7168   ;;  %vm305_vm4 = vcmask 11264  }
 0x12f   : > { %v303_v43 = vsel %vm302_vm3, %v281_v39, %v294_v40 }
 0x134   : > { %v301_v42 = vld [vmem:[%s581_s2] sm:$0xf] }
 0x135   : > { %v304_v44 = vadd.f32 %v303_v43, %v301_v42 }
 0x137   : > { %306 = vst.msk [vmem:[%s581_s2] sm:$0xf] %vm305_vm4, %v304_v44 }
 0x138 PF: > { %p10_p12 = scmp.ge.s32.totalorder %s499_s13, 4   ;;  %s586_s9 = smov %s459_s10 }
 0x139   : > { %s587_s10 = smov %s509_s16  ;;  %s588_s11 = smov %s499_s13 }
 0x13a   :  { %12 = sbr.rel (!%p10_p12) target bundleno = 2 (0x2), region = 91 }
 0x13f   :  { %318 = vsyncpa [#allocation4], 1 }
 0x140   :  { %320 = vsyncpa [#allocation4 + $0x1], 1 }

// kernel: bottleneck_forward.6
= control target key start
LH: loop header
LB: loop body
LE: loop exit
PB: predicated region body
PF: predicated region fallthrough
CT: control target
= control target key end

     0   :  { %s510_s15 = smov 0   ;;  %s571_s0 = inlined_call_operand.vmem [shape: f32[4,1024], index: 0, kind: input, shape index: {}]   ;;  %s572_s1 = inlined_call_operand.vmem [shape: f32[4,1], index: 1, kind: input, shape index: {}]   ;;  %s573_s2 = inlined_call_operand.vmem [shape: f32[4,1], index: 2, kind: input, shape index: {}]   ;;  %s574_s3 = inlined_call_operand.vmem [shape: f32[16,4], index: 3, kind: input, shape index: {}]   ;;  %s575_s4 = inlined_call_operand.vmem [shape: f32[16,2], index: 4, kind: output, shape index: {}]  }
   0x1 LB: > { %s516_s16 = sadd.s32 4294967295, %s480_s15   ;;  %p443_p0 = scmp.ge.s32.totalorder %s480_s15, 1  ;;  %s480_s15 = sphi %s510_s15, %s14_s15  }
   0x2   : > { %p158_p1 = scmp.lt.s32.totalorder %s480_s15, 3 }
   0x4   : > { %p159_p2 = pnand %p443_p0, %p158_p1 }
   0x5   : > { %s444_s21 = sshll.u32 (!%p159_p2), %s516_s16, 2  ;;  %s446_s26 = sshll.u32 (!%p159_p2), %s516_s16, 9 }
   0x6   : > { %162 = sbr.rel (%p159_p2) target bundleno = 428 (0x1ac), region = 36  ;;  %p180_p3 = scmp.lt.s32.totalorder (!%p159_p2), %s444_s21, 7 }
   0x7   : > { %p459_p4 = scmp.ne.s32.totalorder (!%p159_p2), %s516_s16, 0 }
   0xb   : > { %v187_v0 = vld [vmem:[%s572_s1] sm:$0xf]  ;;  %v482_v1 = vmov 0   ;;  %s577_s21 = smov (!%p180_p3, %s444_s21), 7  ;;  %v483_v3 = vmov 839922192   ;;  %v214_v7 = vlaneseq  ;;  %v219_v18 = vstv %s446_s26 }
   0xc   : > { %473 = vset.pattern.permute.xlu0 %v482_v1  ;;  %v199_v2 = vld [vmem:[%s573_s2] sm:$0xf]  ;;  %v193_v4 = vunpack.c.l.s4 %v483_v3  ;;  %s445_s22 = sshll.u32 %s577_s21, 2  ;;  %vm262_vm2 = vcmask 1043456   ;;  %vm255_vm5 = vcmask 31744   ;;  %v254_v37 = vld [vmem:[%s574_s3 + $0x8] sm:$0xff] }
   0xd   : > { %190 = vperm.xlu0 %473, %v187_v0   ;;  %s183_s25 = scalar_lea.vmem %s571_s0, %s445_s22  ;;  %v215_v12 = vand.u32 127, %v214_v7  ;;  %v253_v28 = vld [vmem:[%s574_s3] sm:$0xff] }
   0xe   : > { %v194_v6 = vunpack.c.0.s8 %v193_v4  ;;  %v185_v9 = vld [vmem:[%s183_s25] sm:$0xff]  ;;  %v186_v10 = vld [vmem:[%s183_s25 + $0x8] sm:$0xff] }
   0xf   : > { %v216_v19 = vadd.s32 128, %v215_v12  ;;  %v217_v22 = vadd.s32 256, %v215_v12  ;;  %v218_v23 = vadd.s32 384, %v215_v12  ;;  %v220_v24 = vadd.s32 %v219_v18, %v215_v12 }
  0x11   : > { %v221_v25 = vadd.s32 %v219_v18, %v216_v19  ;;  %v222_v26 = vadd.s32 %v219_v18, %v217_v22  ;;  %v223_v27 = vadd.s32 %v219_v18, %v218_v23  ;;  %vm224_vm0 = vcmp.lt.s32.totalorder %v220_v24, 1024 }
  0x13   : > { %vm225_vm1 = vcmp.lt.s32.totalorder %v221_v25, 1024  ;;  %vm226_vm3 = vcmp.lt.s32.totalorder %v222_v26, 1024  ;;  %vm227_vm4 = vcmp.lt.s32.totalorder %v223_v27, 1024 }
  0x15   : > { %202 = vperm.xlu0 %473, %v199_v2  }
  0x7f   : > { %v191_v5 = vpop.permute.xlu0 %190 }
  0x80   : > { %v195_v8 = vperm.slane %v191_v5, %v194_v6 }
  0x82   : > { %v197_v13 = vmul.f32 %v195_v8, %v185_v9  ;;  %v198_v14 = vmul.f32 %v195_v8, %v186_v10 }
  0x87   : > { %v203_v11 = vpop.permute.xlu0 %202 }
  0x88   : > { %v207_v15 = vperm.slane %v203_v11, %v194_v6 }
  0x8a   : > { %v209_v16 = vadd.f32 %v207_v15, %v197_v13  ;;  %v210_v17 = vadd.f32 %v207_v15, %v198_v14 }
  0x8c   : > { %v211_v20 = vmax.f32 %v209_v16, 0.0  ;;  %v212_v21 = vmax.f32 %v210_v17, 0.0 }
  0x8e   : > { %238 = vst [vmem:[#allocation1] ss:$2 sm:$0xff] %v211_v20 }
  0x8f   : > { %240 = vst [vmem:[#allocation1 + $0x10] ss:$2 sm:$0xff] %v212_v21 }
  0x95   : > { %v241_v29 = vld.sshfl [vmem:[#allocation1] sm:$0xff pattern:$0x75316420]  ;;  %v242_v30 = vld.sshfl [vmem:[#allocation1 + $0x8] sm:$0xff pattern:$0x75316420] }
  0x96   : > { %v249_v31 = vsel %vm224_vm0, %v241_v29, 0.0  ;;  %v250_v32 = vsel %vm225_vm1, %v242_v30, 0.0  ;;  %v243_v33 = vld.sshfl [vmem:[#allocation1 + $0x10] sm:$0xff pattern:$0x75316420] }
  0x97   : > { %447 = vmatpush.msk.msra.mxu0 %vm262_vm2, %v249_v31  ;;  %450 = vmatpush.msk.msra.mxu1 %vm262_vm2, %v250_v32  ;;  %v251_v34 = vsel %vm226_vm3, %v243_v33, 0.0  ;;  %v244_v35 = vld.sshfl [vmem:[#allocation1 + $0x18] sm:$0xff pattern:$0x75316420] }
  0x98   : > { %453 = vmatpush.msk.msra.mxu2 %vm262_vm2, %v251_v34  ;;  %v252_v36 = vsel %vm227_vm4, %v244_v35, 0.0  ;;  %448 = vmatmul.msk.f32.vlgmr.msra.gmra.mxu0 %vm255_vm5, %v253_v28 }
  0x99   : > { %456 = vmatpush.msk.msra.mxu3 %vm262_vm2, %v252_v36  ;;  %454 = vmatmul.msk.f32.vlgmr.msra.gmra.mxu2 %vm255_vm5, %v253_v28 }
  0x9a   : > { %457 = vmatmul.msk.f32.vlgmr.msra.gmra.mxu3 %vm255_vm5, %v253_v28  ;;  %451 = vmatmul.msk.f32.vlgmr.msra.gmra.mxu1 %vm255_vm5, %v253_v28 }
  0xa0   : > { %449 = vmatmul.msk.f32.gmra.mxu0 %vm255_vm5, %v254_v37 }
  0xa1   : > { %455 = vmatmul.msk.f32.gmra.mxu2 %vm255_vm5, %v254_v37 }
  0xa2   : > { %458 = vmatmul.msk.f32.gmra.mxu3 %vm255_vm5, %v254_v37  ;;  %452 = vmatmul.msk.f32.gmra.mxu1 %vm255_vm5, %v254_v37 }
 0x115   : > { %v292_v38 = vpop.f32.mrf.mxu0 }
 0x116   : > { %v377_v39 = vmul.f32 %v292_v38, %v292_v38 }
 0x117   : > { %v315_v40 = vpop.f32.mrf.mxu1 }
 0x118   : > { %v378_v41 = vmul.f32 %v315_v40, %v315_v40  ;;  %v367_v42 = vadd.f32 %v315_v40, %v292_v38 }
 0x11a   : > { %v385_v43 = vadd.f32 %v378_v41, %v377_v39 }
 0x11c   : > { %v338_v44 = vpop.f32.mrf.mxu2 }
 0x11d   : > { %v368_v45 = vadd.f32 %v367_v42, %v338_v44  ;;  %v379_v46 = vmul.f32 %v338_v44, %v338_v44  ;;  %v361_v47 = vpop.f32.mrf.mxu3  ;;  %v295_v48 = vpop.f32.mrf.mxu0 }
 0x11e   : > { %v380_v49 = vmul.f32 %v361_v47, %v361_v47  ;;  %v381_v51 = vmul.f32 %v295_v48, %v295_v48 }
 0x11f   : > { %v369_v50 = vadd.f32 %v368_v45, %v361_v47  ;;  %v318_v52 = vpop.f32.mrf.mxu1  ;;  %v386_v53 = vadd.f32 %v385_v43, %v379_v46 }
 0x120   : > { %v382_v54 = vmul.f32 %v318_v52, %v318_v52  ;;  %v372_v55 = vadd.f32 %v318_v52, %v295_v48 }
 0x121   : > { %370 = vadd.xlane.f32.xlu1 %v369_v50  ;;  %v387_v56 = vadd.f32 %v386_v53, %v380_v49 }
 0x122   : > { %v390_v57 = vadd.f32 %v382_v54, %v381_v51 }
 0x123   : > { %388 = vadd.xlane.f32.xlu2 %v387_v56 }
 0x124   : > { %v341_v58 = vpop.f32.mrf.mxu2 }
 0x125   : > { %v373_v59 = vadd.f32 %v372_v55, %v341_v58  ;;  %v383_v60 = vmul.f32 %v341_v58, %v341_v58  ;;  %v364_v61 = vpop.f32.mrf.mxu3 }
 0x126   : > { %v384_v62 = vmul.f32 %v364_v61, %v364_v61 }
 0x127   : > { %v391_v63 = vadd.f32 %v390_v57, %v383_v60  ;;  %v374_v0 = vadd.f32 %v373_v59, %v364_v61 }
 0x129   : > { %375 = vadd.xlane.f32.xlu1 %v374_v0  ;;  %v392_v1 = vadd.f32 %v391_v63, %v384_v62 }
 0x12b   : > { %393 = vadd.xlane.f32.xlu2 %v392_v1 }
 0x194   : > { %v371_v2 = vpop.xlane.xlu1 %370 }
 0x196   : > { %v389_v3 = vpop.xlane.xlu2 %388 }
 0x19a   : > { %398 = sbr.rel (%p459_p4) target bundleno = 418 (0x1a2), region = 40 }
 0x19c   : > { %v376_v4 = vpop.xlane.xlu1 %375 }
 0x19e   : > { %v394_v5 = vpop.xlane.xlu2 %393 }
 0x19f   : > { %vm399_vm6 = vcmask 15360   ;;  %v484_v6 = vmov 0.0  }
 0x1a0   : > { %400 = vst.msk [vmem:[%s575_s4] sm:$0xff] %vm399_vm6, %v484_v6 }
 0x1a1   : > { %401 = vst.msk [vmem:[%s575_s4 + $0x8] sm:$0xff] %vm399_vm6, %v484_v6 }
 0x1a2 PF: > { %vm404_vm7 = vcmask 7168   ;;  %vm409_vm8 = vcmask 15360  }
 0x1a3   : > { %v405_v9 = vsel %vm404_vm7, %v371_v2, %v389_v3  ;;  %v406_v10 = vsel %vm404_vm7, %v376_v4, %v394_v5 }
 0x1a7   : > { %v402_v7 = vld [vmem:[%s575_s4] sm:$0xff] }
 0x1a8   : > { %v403_v8 = vld [vmem:[%s575_s4 + $0x8] sm:$0xff]  ;;  %v407_v11 = vadd.f32 %v405_v9, %v402_v7 }
 0x1a9   : > { %v408_v12 = vadd.f32 %v406_v10, %v403_v8 }
 0x1aa   : > { %410 = vst.msk [vmem:[%s575_s4] sm:$0xff] %vm409_vm8, %v407_v11 }
 0x1ab   : > { %411 = vst.msk [vmem:[%s575_s4 + $0x8] sm:$0xff] %vm409_vm8, %v408_v12 }
 0x1ac PF: > { %s14_s15 = sadd.s32 1, %s480_s15  }
 0x1ad   : > { %p11_p5 = scmp.ge.s32.totalorder %s14_s15, 4  }
 0x1af   :  { %13 = sbr.rel (!%p11_p5) target bundleno = 1 (0x1), region = 67 }

// kernel: bottleneck_forward.7
= control target key start
LH: loop header
LB: loop body
LE: loop exit
PB: predicated region body
PF: predicated region fallthrough
CT: control target
= control target key end

     0   :  { %s785_s24 = smov 0   ;;  %s787_s25 = smov 0   ;;  %s909_s0 = inlined_call_operand.vmem [shape: f32[4,1024], index: 0, kind: input, shape index: {}]   ;;  %s910_s1 = inlined_call_operand.vmem [shape: f32[16,1024], index: 1, kind: input, shape index: {}]   ;;  %s911_s2 = inlined_call_operand.vmem [shape: f32[4,1], index: 2, kind: input, shape index: {}]   ;;  %s912_s3 = inlined_call_operand.vmem [shape: f32[4,1], index: 3, kind: input, shape index: {}]   ;;  %s913_s4 = inlined_call_operand.vmem [shape: f32[16,4], index: 4, kind: input, shape index: {}]   ;;  %s914_s5 = inlined_call_operand.vmem [shape: f32[16,1], index: 5, kind: input, shape index: {}]   ;;  %s915_s6 = inlined_call_operand.vmem [shape: f32[16,1], index: 6, kind: input, shape index: {}]   ;;  %s916_s7 = inlined_call_operand.vmem [shape: f32[16,1024], index: 7, kind: output, shape index: {}]  }
   0x1   :  { %s789_s26 = smov 0  }
   0x2 LB: > { %s801_s27 = sadd.s32 4294967295, %s741_s26   ;;  %s804_s28 = sadd.s32 1, %s741_s26   ;;  %s741_s26 = sphi %s789_s26, %s920_s26   ;;  %s737_s25 = sphi %s787_s25, %s919_s25   ;;  %s733_s24 = sphi %s785_s24, %s918_s24  }
   0x3   : > { %s47_s29 = ssub.s32 %s741_s26, %s804_s28  ;;  %s50_s30 = sadd.s32 1, %s737_s25 }
   0x4   : > { %p48_p0 = scmp.eq.s32.totalorder %s47_s29, 0  ;;  %p57_p1 = scmp.ne.s32.totalorder %s737_s25, %s733_s24 }
   0x5   : > { %p58_p2 = scmp.eq.s32.totalorder %s741_s26, 0  ;;  %p192_p3 = scmp.eq.s32.totalorder %s801_s27, 1 }
   0x6   : > { %s814_s8 = scalar_select %p48_p0, %s737_s25, %s50_s30  }
   0x7   : > { %p59_p4 = por %p58_p2, %p57_p1  ;;  %p816_p5 = por %p192_p3, %p57_p1 }
   0x8   : > { %p662_p6 = scmp.ge.s32.totalorder %s741_s26, 2 }
   0xa   : > { %229 = sbr.rel (%p662_p6) target bundleno = 27 (0x1b), region = 36 }
   0xf   : > { %241 = sbr.rel (!%p59_p4) target bundleno = 27 (0x1b), region = 44  ;;  %s243_s10 = sand.u32 (%p59_p4), 1, %s737_s25  }
  0x10   : > { %s688_s11 = sshll.u32 (%p59_p4), %s741_s26, 5  ;;  %s663_s12 = sshll.u32 (%p59_p4), %s243_s10, 6 }
  0x11   : > { %s248_s15 = scalar_lea.vmem (%p59_p4), %s910_s1, %s688_s11  ;;  %s245_s16 = scalar_lea.vmem (%p59_p4), [#allocation2], %s663_s12 }
  0x12   : > { %v261_v0 = vld [vmem:[%s248_s15] sm:$0xff] (%p59_p4)  ;;  %v263_v1 = vld [vmem:[%s248_s15 + $0x8] sm:$0xff] (%p59_p4)  ;;  %v265_v2 = vld [vmem:[%s248_s15 + $0x10] sm:$0xff] (%p59_p4) }
  0x13   : > { %262 = vst [vmem:[%s245_s16] sm:$0xff] (%p59_p4), %v261_v0  ;;  %v267_v3 = vld [vmem:[%s248_s15 + $0x18] sm:$0xff] (%p59_p4)  ;;  %v269_v4 = vld [vmem:[%s248_s15 + $0x40] sm:$0xff] (%p59_p4)  ;;  %v271_v5 = vld [vmem:[%s248_s15 + $0x48] sm:$0xff] (%p59_p4) }
  0x14   : > { %264 = vst [vmem:[%s245_s16 + $0x8] sm:$0xff] %v263_v1  ;;  %v273_v6 = vld [vmem:[%s248_s15 + $0x50] sm:$0xff]  ;;  %v275_v7 = vld [vmem:[%s248_s15 + $0x58] sm:$0xff] }
  0x15   : > { %266 = vst [vmem:[%s245_s16 + $0x10] sm:$0xff] %v265_v2 }
  0x16   : > { %268 = vst [vmem:[%s245_s16 + $0x18] sm:$0xff] %v267_v3 }
  0x17   : > { %270 = vst [vmem:[%s245_s16 + $0x20] sm:$0xff] %v269_v4 }
  0x18   : > { %272 = vst [vmem:[%s245_s16 + $0x28] sm:$0xff] %v271_v5 }
  0x19   : > { %274 = vst [vmem:[%s245_s16 + $0x30] sm:$0xff] %v273_v6 }
  0x1a   : > { %276 = vst [vmem:[%s245_s16 + $0x38] sm:$0xff] %v275_v7 }
  0x1b PF: > { %p666_p7 = scmp.ge.s32.totalorder %s741_s26, 1  ;;  %p281_p8 = scmp.lt.s32.totalorder %s741_s26, 3 }
  0x1d   : > { %p282_p9 = pnand %p666_p7, %p281_p8 }
  0x1e   : > { %s669_s21 = sshll.u32 (!%p282_p9), %s801_s27, 2 }
  0x1f   : > { %285 = sbr.rel (%p282_p9) target bundleno = 336 (0x150), region = 67  ;;  %p324_p10 = scmp.lt.s32.totalorder (!%p282_p9), %s669_s21, 7 }
  0x24   : > { %v333_v8 = vld [vmem:[%s911_s2] sm:$0xf]  ;;  %v743_v9 = vmov 0   ;;  %s922_s21 = smov (!%p324_p10, %s669_s21), 7  ;;  %v744_v11 = vmov 839922192  }
  0x25   : > { %716 = vset.pattern.permute.xlu0 %v743_v9  ;;  %717 = vset.pattern.permute.xlu1 %v743_v9  ;;  %v345_v10 = vld [vmem:[%s912_s3] sm:$0xf]  ;;  %v339_v12 = vunpack.c.l.s4 %v744_v11  ;;  %s670_s22 = sshll.u32 %s922_s21, 2  ;;  %v479_v21 = vld [vmem:[%s914_s5 + $0x8] sm:$0xff]  ;;  %vm377_vm0 = vcmask 1043456   ;;  %vm370_vm1 = vcmask 31744  }
  0x26   : > { %336 = vperm.xlu0 %716, %v333_v8   ;;  %718 = vset.pattern.permute.xlu2 %v743_v9  ;;  %v478_v15 = vld [vmem:[%s914_s5] sm:$0xff]  ;;  %s327_s12 = scalar_lea.vmem %s909_s0, %s670_s22  ;;  %v499_v22 = vld [vmem:[%s915_s6 + $0x8] sm:$0xff]  ;;  %s288_s21 = sand.u32 1, %s733_s24  }
  0x27   : > { %v340_v14 = vunpack.c.0.s8 %v339_v12  ;;  %v498_v16 = vld [vmem:[%s915_s6] sm:$0xff]  ;;  %482 = vperm.xlu1 %717, %v478_v15   ;;  %v332_v19 = vld [vmem:[%s327_s12 + $0x8] sm:$0xff]  ;;  %s667_s22 = sshll.u32 %s288_s21, 6  ;;  %s689_s26 = sshll.u32 (%p816_p5), %s801_s27, 5 }
  0x28   : > { %502 = vperm.xlu2 %718, %v498_v16   ;;  %v331_v18 = vld [vmem:[%s327_s12] sm:$0xff]  ;;  %v360_v35 = vld [vmem:[%s913_s4 + $0x8] sm:$0xff]  ;;  %s865_s23 = scalar_lea.vmem [#allocation2], %s667_s22  ;;  %s869_s24 = scalar_lea.vmem [#allocation3], %s667_s22 }
  0x29   : > { %v359_v30 = vld [vmem:[%s913_s4] sm:$0xff]  ;;  %v518_v42 = vld [vmem:[%s865_s23] sm:$0xff]  ;;  %v519_v43 = vld [vmem:[%s865_s23 + $0x8] sm:$0xff]  ;;  %s559_s10 = scalar_lea.vmem (%p816_p5), %s916_s7, %s689_s26 }
  0x2a   : > { %v520_v57 = vld [vmem:[%s865_s23 + $0x10] sm:$0xff]  ;;  %v521_v58 = vld [vmem:[%s865_s23 + $0x18] sm:$0xff]  ;;  %v522_v0 = vld [vmem:[%s865_s23 + $0x20] sm:$0xff] }
  0x2b   : > { %v523_v1 = vld [vmem:[%s865_s23 + $0x28] sm:$0xff]  ;;  %v524_v16 = vld [vmem:[%s865_s23 + $0x30] sm:$0xff] }
  0x2e   : > { %348 = vperm.xlu0 %716, %v345_v10  }
  0x2f   : > { %487 = vperm.xlu1 %717, %v479_v21  }
  0x30   : > { %507 = vperm.xlu2 %718, %v499_v22  }
  0x82   : > { %v503_v37 = vpop.permute.xlu2 %502 }
  0x8a   : > { %v508_v63 = vpop.permute.xlu2 %507 }
  0x98   : > { %v337_v13 = vpop.permute.xlu0 %336 }
  0x99   : > { %v341_v17 = vperm.slane %v337_v13, %v340_v14  ;;  %v483_v36 = vpop.permute.xlu1 %482 }
  0x9b   : > { %v343_v23 = vmul.f32 %v341_v17, %v331_v18  ;;  %v344_v24 = vmul.f32 %v341_v17, %v332_v19  ;;  %v525_v17 = vld [vmem:[%s865_s23 + $0x38] sm:$0xff] }
  0xa0   : > { %v349_v20 = vpop.permute.xlu0 %348 }
  0xa1   : > { %v353_v25 = vperm.slane %v349_v20, %v340_v14  ;;  %v488_v48 = vpop.permute.xlu1 %487 }
  0xa3   : > { %v355_v26 = vadd.f32 %v353_v25, %v343_v23  ;;  %v356_v27 = vadd.f32 %v353_v25, %v344_v24 }
  0xa5   : > { %v357_v28 = vmax.f32 %v355_v26, 0.0  ;;  %v358_v29 = vmax.f32 %v356_v27, 0.0 }
  0xa7   : > { %363 = vst [vmem:[#allocation1] ss:$2 sm:$0xff] %v357_v28 }
  0xa8   : > { %365 = vst [vmem:[#allocation1 + $0x10] ss:$2 sm:$0xff] %v358_v29 }
  0xae   : > { %v366_v31 = vld.sshfl [vmem:[#allocation1] sm:$0xff pattern:$0x75316420]  ;;  %v367_v32 = vld.sshfl [vmem:[#allocation1 + $0x8] sm:$0xff pattern:$0x75316420] }
  0xaf   : > { %671 = vmatpush.msk.msra.mxu0 %vm377_vm0, %v366_v31  ;;  %674 = vmatpush.msk.msra.mxu1 %vm377_vm0, %v367_v32  ;;  %v368_v33 = vld.sshfl [vmem:[#allocation1 + $0x10] sm:$0xff pattern:$0x75316420]  ;;  %v369_v34 = vld.sshfl [vmem:[#allocation1 + $0x18] sm:$0xff pattern:$0x75316420] }
  0xb0   : > { %677 = vmatpush.msk.msra.mxu2 %vm377_vm0, %v368_v33  ;;  %680 = vmatpush.msk.msra.mxu3 %vm377_vm0, %v369_v34 }
  0xb1   : > { %672 = vmatmul.msk.f32.vlgmr.msra.gmra.mxu0 %vm370_vm1, %v359_v30  ;;  %675 = vmatmul.msk.f32.vlgmr.msra.gmra.mxu1 %vm370_vm1, %v359_v30 }
  0xb2   : > { %678 = vmatmul.msk.f32.vlgmr.msra.gmra.mxu2 %vm370_vm1, %v359_v30  ;;  %681 = vmatmul.msk.f32.vlgmr.msra.gmra.mxu3 %vm370_vm1, %v359_v30 }
  0xb9   : > { %673 = vmatmul.msk.f32.gmra.mxu0 %vm370_vm1, %v360_v35  ;;  %676 = vmatmul.msk.f32.gmra.mxu1 %vm370_vm1, %v360_v35 }
  0xba   : > { %679 = vmatmul.msk.f32.gmra.mxu2 %vm370_vm1, %v360_v35  ;;  %682 = vmatmul.msk.f32.gmra.mxu3 %vm370_vm1, %v360_v35 }
 0x12e   : > { %v403_v38 = vpop.f32.mrf.mxu0  ;;  %v426_v39 = vpop.f32.mrf.mxu1 }
 0x12f   : > { %v490_v40 = vmul.f32 %v483_v36, %v403_v38  ;;  %v491_v41 = vmul.f32 %v483_v36, %v426_v39 }
 0x131   : > { %v510_v44 = vadd.f32 %v503_v37, %v490_v40  ;;  %v511_v45 = vadd.f32 %v503_v37, %v491_v41 }
 0x133   : > { %v526_v46 = vadd.f32 %v518_v42, %v510_v44  ;;  %v527_v47 = vadd.f32 %v519_v43, %v511_v45 }
 0x135   : > { %v534_v49 = vmax.f32 %v526_v46, 0.0  ;;  %v535_v50 = vmax.f32 %v527_v47, 0.0  ;;  %v449_v51 = vpop.f32.mrf.mxu2  ;;  %v472_v52 = vpop.f32.mrf.mxu3 }
 0x136   : > { %v492_v53 = vmul.f32 %v483_v36, %v449_v51  ;;  %v493_v54 = vmul.f32 %v483_v36, %v472_v52  ;;  %v406_v55 = vpop.f32.mrf.mxu0  ;;  %v429_v56 = vpop.f32.mrf.mxu1 }
 0x137   : > { %542 = vst [vmem:[%s869_s24] sm:$0xff] %v534_v49  ;;  %v494_v59 = vmul.f32 %v488_v48, %v406_v55  ;;  %v495_v60 = vmul.f32 %v488_v48, %v429_v56 }
 0x138   : > { %543 = vst [vmem:[%s869_s24 + $0x8] sm:$0xff] %v535_v50  ;;  %v512_v61 = vadd.f32 %v503_v37, %v492_v53  ;;  %v513_v62 = vadd.f32 %v503_v37, %v493_v54 }
 0x139   : > { %v514_v2 = vadd.f32 %v508_v63, %v494_v59  ;;  %v515_v3 = vadd.f32 %v508_v63, %v495_v60 }
 0x13a   : > { %v528_v4 = vadd.f32 %v520_v57, %v512_v61  ;;  %v529_v5 = vadd.f32 %v521_v58, %v513_v62 }
 0x13b   : > { %v530_v6 = vadd.f32 %v522_v0, %v514_v2  ;;  %v531_v7 = vadd.f32 %v523_v1, %v515_v3 }
 0x13c   : > { %v536_v8 = vmax.f32 %v528_v4, 0.0  ;;  %v537_v9 = vmax.f32 %v529_v5, 0.0 }
 0x13d   : > { %v538_v10 = vmax.f32 %v530_v6, 0.0  ;;  %v539_v11 = vmax.f32 %v531_v7, 0.0  ;;  %v452_v12 = vpop.f32.mrf.mxu2  ;;  %v475_v13 = vpop.f32.mrf.mxu3 }
 0x13e   : > { %544 = vst [vmem:[%s869_s24 + $0x10] sm:$0xff] %v536_v8  ;;  %v496_v14 = vmul.f32 %v488_v48, %v452_v12  ;;  %v497_v15 = vmul.f32 %v488_v48, %v475_v13  ;;  %v572_v24 = vld [vmem:[%s869_s24] sm:$0xff] (%p816_p5) }
 0x13f   : > { %545 = vst [vmem:[%s869_s24 + $0x18] sm:$0xff] %v537_v9  ;;  %v574_v25 = vld [vmem:[%s869_s24 + $0x8] sm:$0xff] (%p816_p5) }
 0x140   : > { %546 = vst [vmem:[%s869_s24 + $0x20] sm:$0xff] %v538_v10  ;;  %v516_v18 = vadd.f32 %v508_v63, %v496_v14  ;;  %v517_v19 = vadd.f32 %v508_v63, %v497_v15 }
 0x141   : > { %547 = vst [vmem:[%s869_s24 + $0x28] sm:$0xff] %v539_v11 }
 0x142   : > { %v532_v20 = vadd.f32 %v524_v16, %v516_v18  ;;  %v533_v21 = vadd.f32 %v525_v17, %v517_v19  ;;  %573 = vst [vmem:[%s559_s10] sm:$0xff] (%p816_p5), %v572_v24 }
 0x143   : > { %556 = sbr.rel (!%p816_p5) target bundleno = 336 (0x150), region = 75  ;;  %575 = vst [vmem:[%s559_s10 + $0x8] sm:$0xff] (%p816_p5), %v574_v25 }
 0x144   : > { %v540_v22 = vmax.f32 %v532_v20, 0.0  ;;  %v541_v23 = vmax.f32 %v533_v21, 0.0 }
 0x145   : > { %v576_v26 = vld [vmem:[%s869_s24 + $0x10] sm:$0xff] (%p816_p5) }
 0x146   : > { %548 = vst [vmem:[%s869_s24 + $0x30] sm:$0xff] %v540_v22  ;;  %v578_v27 = vld [vmem:[%s869_s24 + $0x18] sm:$0xff] (%p816_p5) }
 0x147   : > { %549 = vst [vmem:[%s869_s24 + $0x38] sm:$0xff] %v541_v23  ;;  %v580_v28 = vld [vmem:[%s869_s24 + $0x20] sm:$0xff] (%p816_p5) }
 0x148   : > { %577 = vst [vmem:[%s559_s10 + $0x10] sm:$0xff] %v576_v26  ;;  %v582_v29 = vld [vmem:[%s869_s24 + $0x28] sm:$0xff] }
 0x149   : > { %579 = vst [vmem:[%s559_s10 + $0x18] sm:$0xff] %v578_v27 }
 0x14a   : > { %581 = vst [vmem:[%s559_s10 + $0x40] sm:$0xff] %v580_v28 }
 0x14b   : > { %583 = vst [vmem:[%s559_s10 + $0x48] sm:$0xff] %v582_v29 }
 0x14d   : > { %v584_v30 = vld [vmem:[%s869_s24 + $0x30] sm:$0xff] }
 0x14e   : > { %v586_v31 = vld [vmem:[%s869_s24 + $0x38] sm:$0xff]  ;;  %585 = vst [vmem:[%s559_s10 + $0x50] sm:$0xff] %v584_v30 }
 0x14f   : > { %587 = vst [vmem:[%s559_s10 + $0x58] sm:$0xff] %v586_v31 }
 0x150 PF: > { %p14_p11 = scmp.ge.s32.totalorder %s804_s28, 4   ;;  %s918_s24 = smov %s737_s25 }
 0x151   : > { %s919_s25 = smov %s814_s8  ;;  %s920_s26 = smov %s804_s28 }
 0x152   :  { %16 = sbr.rel (!%p14_p11) target bundleno = 2 (0x2), region = 133 }

// kernel: bottleneck_forward.5
= control target key start
LH: loop header
LB: loop body
LE: loop exit
PB: predicated region body
PF: predicated region fallthrough
CT: control target
= control target key end

     0   :  { %s3333_s30 = smov 0   ;;  %s3335_s10 = smov 0   ;;  %s4819_s0 = inlined_call_operand.vmem [shape: f32[2,8,10,16,16], index: 0, kind: input, shape index: {}, may-alias: {0,1,2}]   ;;  %s4820_s1 = inlined_call_operand.vmem [shape: f32[2,8,10,16,16], index: 1, kind: input, shape index: {}, may-alias: {0,1,2}]   ;;  %s4821_s2 = inlined_call_operand.vmem [shape: f32[2,8,10,16,16], index: 2, kind: input, shape index: {}, may-alias: {0,1,2}]   ;;  %s4822_s3 = inlined_call_operand.vmem [shape: f32[16,4], index: 3, kind: input, shape index: {}]   ;;  %s4823_s4 = inlined_call_operand.vmem [shape: f32[1,4], index: 4, kind: input, shape index: {}]   ;;  %s4824_s5 = inlined_call_operand.vmem [shape: f32[1,4], index: 5, kind: input, shape index: {}]   ;;  %s4825_s6 = inlined_call_operand.vmem [shape: f32[160,1], index: 6, kind: input, shape index: {}]   ;;  %s4826_s7 = inlined_call_operand.vmem [shape: f32[108,4], index: 7, kind: input, shape index: {}]   ;;  %s4827_s8 = inlined_call_operand.vmem [shape: f32[2,8,64,4], index: 8, kind: output, shape index: {0}]   ;;  %s4828_s9 = inlined_call_operand.vmem [shape: f32[2,8,2,4], index: 9, kind: output, shape index: {1}]  }
   0x1   :  { %4834 = sst [smem:[#allocation29_spill]] %s4820_s1  ;;  %s3337_s11 = smov 0  }
   0x2   :  { %4835 = sst [smem:[#allocation30_spill]] %s4822_s3  ;;  %s3339_s12 = smov 0  }
   0x3   :  { %s3341_s13 = smov 0  }
   0x4 LB: > { %s29_s14 = sadd.s32 1, %s3256_s11  ;;  %s32_s15 = sadd.s32 1, %s3260_s12  ;;  %s3264_s13 = sphi %s3341_s13, %s20_s13   ;;  %s3260_s12 = sphi %s3339_s12, %s4898_s12   ;;  %s3256_s11 = sphi %s3337_s11, %s4897_s11   ;;  %s3252_s10 = sphi %s3335_s10, %s4896_s10   ;;  %s3248_s30 = sphi %s3333_s30, %s4895_s30  }
   0x5   : > { %p30_p0 = scmp.ge.s32.totalorder %s29_s14, 8  ;;  %p3065_p1 = scmp.ge.s32.totalorder %s3264_s13, 1 }
   0x6   : > { %p368_p2 = scmp.lt.s32.totalorder %s3264_s13, 17 }
   0x7   : > { %s4900_s14 = smov (%p30_p0, %s29_s14), 0  ;;  %s4902_s15 = smov (!%p30_p0, %s32_s15), %s3260_s12 }
   0x8   : > { %p369_p3 = pnand %p3065_p1, %p368_p2  ;;  %p34_p4 = scmp.ge.s32.totalorder %s4902_s15, 2 }
   0xa   : > { %s4904_s15 = smov (%p34_p4, %s4902_s15), 0  ;;  %372 = sbr.rel (%p369_p3) target bundleno = 1052 (0x41c), region = 52 }
   0xb   : > { %4836 = sst [smem:[#allocation3_spill]] %s4904_s15 }
   0xf   : > { %v506_v0 = vld [vmem:[%s4825_s6 + $0x10] sm:$0xff]  ;;  %v504_v1 = vld [vmem:[%s4825_s6] sm:$0xff]  ;;  %s4837_s3 = sld [smem:[#allocation30_spill]]  ;;  %p447_p5 = scmp.lt.s32.totalorder %s3252_s10, 1  ;;  %v3266_v3 = vmov 0   ;;  %v507_v5 = vld [vmem:[%s4825_s6 + $0x18] sm:$0xff] }
  0x10   : > { %p461_p6 = scmp.lt.s32.totalorder %s3248_s30, 7  ;;  %3218 = vset.pattern.permute.xlu1 %v3266_v3  ;;  %3217 = vset.pattern.permute.xlu0 %v3266_v3  ;;  %s3376_s22 = sadd.s32 4294967295, %s3248_s30  ;;  %v505_v6 = vld [vmem:[%s4825_s6 + $0x8] sm:$0xff]  ;;  %vm544_vm0 = vcmask 130048   ;;  %v511_v8 = vld [vmem:[%s4825_s6 + $0x38] sm:$0xff]  ;;  %v510_v9 = vld [vmem:[%s4825_s6 + $0x30] sm:$0xff] }
  0x11   : > { %s468_s23 = sadd.s32 1, %s3248_s30  ;;  %760 = vperm.xlu1 %3218, %v506_v0   ;;  %750 = vperm.xlu0 %3217, %v504_v1   ;;  %s4906_s10 = smov (!%p447_p5, %s3252_s10), 1  ;;  %v508_v13 = vld [vmem:[%s4825_s6 + $0x20] sm:$0xff]  ;;  %v514_v15 = vld [vmem:[%s4825_s6 + $0x50] sm:$0xff]  ;;  %v513_v16 = vld [vmem:[%s4825_s6 + $0x48] sm:$0xff]  ;;  %vm892_vm1 = vcmask 31744  }
  0x12   : > { %s3387_s26 = scalar_select %p461_p6, %s3248_s30, 7  ;;  %3219 = vset.pattern.permute.xlu2 %v3266_v3  ;;  %v509_v19 = vld [vmem:[%s4825_s6 + $0x28] sm:$0xff]  ;;  %v516_v22 = vld [vmem:[%s4825_s6 + $0x60] sm:$0xff]  ;;  %v519_v28 = vld [vmem:[%s4825_s6 + $0x78] sm:$0xff]  ;;  %vm2163_vm4 = vcmask 64512   ;;  %vm2172_vm5 = vcmask 97280  }
  0x13   : > { %s3390_s27 = smul.u32 160, %s4906_s10  ;;  %p445_p7 = scmp.gt.s32.totalorder %s3376_s22, 0  ;;  %770 = vperm.xlu2 %3219, %v508_v13   ;;  %v517_v21 = vld [vmem:[%s4825_s6 + $0x68] sm:$0xff]  ;;  %v512_v25 = vld [vmem:[%s4825_s6 + $0x40] sm:$0xff]  ;;  %v515_v31 = vld [vmem:[%s4825_s6 + $0x58] sm:$0xff]  ;;  %vm2189_vm6 = vcmask 162816  }
  0x14   : > { %s3158_s28 = smul.u32 20, %s3387_s26  ;;  %p3067_p8 = scmp.lt.s32.totalorder %s3376_s22, 7  ;;  %v520_v27 = vld [vmem:[%s4825_s6 + $0x80] sm:$0xff]  ;;  %v523_v33 = vld [vmem:[%s4825_s6 + $0x98] sm:$0xff]  ;;  %v522_v34 = vld [vmem:[%s4825_s6 + $0x90] sm:$0xff]  ;;  %vm2198_vm7 = vcmask 195584  }
  0x15   : > { %v501_v2 = vld [vmem:[%s4837_s3 + $0x8] sm:$0xff]  ;;  %v500_v4 = vld [vmem:[%s4837_s3] sm:$0xff]  ;;  %s4908_s22 = smov (!%p445_p7, %s3376_s22), 0  ;;  %p3405_p9 = scmp.lt.s32.totalorder %s468_s23, 7  ;;  %v518_v37 = vld [vmem:[%s4825_s6 + $0x70] sm:$0xff]  ;;  %vm2207_vm8 = vcmask 228352  }
  0x16   : > { %1007 = vmatpush.msra.mxu1 %v501_v2  ;;  %619 = vmatpush.msra.mxu0 %v501_v2  ;;  %s465_s19 = sadd.s32 %s3158_s28, %s3390_s27  ;;  %s4839_s1 = sld [smem:[#allocation29_spill]]  ;;  %v521_v41 = vld [vmem:[%s4825_s6 + $0x88] sm:$0xff]  ;;  %vm2216_vm9 = vcmask 261120   ;;  %vm2225_vm10 = vcmask 293888   ;;  %vm2234_vm11 = vcmask 326656   ;;  %vm2243_vm12 = vcmask 359424  }
  0x17   : > { %1265 = vmatpush.msra.mxu2 %v501_v2  ;;  %s3073_s21 = sshll.u32 %s465_s19, 3  ;;  %s4910_s22 = smov (!%p3067_p8, %s4908_s22), 7  ;;  %vm2252_vm13 = vcmask 392192   ;;  %vm2261_vm14 = vcmask 424960   ;;  %vm2270_vm15 = vcmask 457728  }
  0x18   : > { %1008 = vmatpush.msra.mxu1 %v500_v4  ;;  %620 = vmatpush.msra.mxu0 %v500_v4  ;;  %s4912_s23 = smov (!%p3405_p9, %s468_s23), 7  ;;  %s3156_s28 = smul.u32 20, %s4910_s22 }
  0x19   : > { %1266 = vmatpush.msra.mxu2 %v500_v4  ;;  %765 = vperm.xlu1 %3218, %v507_v5   ;;  %s4914_s23 = smov (!%p3405_p9, %s4912_s23), 7  ;;  %v3575_v5 = vld [vmem:[%s4823_s4] ss:$0 sm:$0xff]  ;;  %p868_p10 = scmp.gt.s32.totalorder %s3248_s30, 0 }
  0x1a   : > { %755 = vperm.xlu0 %3217, %v505_v6   ;;  %s453_s16 = sadd.s32 %s3390_s27, %s3156_s28  ;;  %s3159_s18 = smul.u32 20, %s4914_s23 }
  0x1b   : > { %s3072_s17 = sshll.u32 %s453_s16, 3  ;;  %775 = vperm.xlu2 %3219, %v509_v19   ;;  %s3267_s30 = smov 36  }
  0x1c   : > { %s3412_s29 = scalar_lea.vmem %s4839_s1, %s3073_s21  ;;  %s3429_s1 = scalar_lea.vmem %s4819_s0, %s3072_s17 }
  0x1d   : > { %v913_v7 = vld [vmem:[%s3412_s29] sm:$0xff]  ;;  %v914_v10 = vld [vmem:[%s3412_s29 + $0x8] sm:$0xff]  ;;  %s477_s22 = sadd.s32 %s3159_s18, %s3390_s27  ;;  %v915_v17 = vld [vmem:[%s3412_s29 + $0x10] sm:$0xff]  ;;  %s3268_s25 = smov 44  }
  0x1e   : > { %3103 = vmatmul.msk.f32.vlgmr.msra.gmra.mxu1 %vm544_vm0, %v913_v7  ;;  %v524_v11 = vld [vmem:[%s3429_s1] sm:$0xff]  ;;  %s3077_s23 = sshll.u32 %s477_s22, 3  ;;  %v525_v14 = vld [vmem:[%s3429_s1 + $0x8] sm:$0xff]  ;;  %v526_v20 = vld [vmem:[%s3429_s1 + $0x10] sm:$0xff]  ;;  %s3271_s22 = smov 48  }
  0x1f   : > { %3083 = vmatmul.msk.f32.vlgmr.msra.gmra.mxu0 %vm544_vm0, %v524_v11  ;;  %s3441_s16 = scalar_lea.vmem %s4821_s2, %s3077_s23  ;;  %v916_v23 = vld [vmem:[%s3412_s29 + $0x18] sm:$0xff]  ;;  %v917_v29 = vld [vmem:[%s3412_s29 + $0x20] sm:$0xff]  ;;  %v918_v35 = vld [vmem:[%s3412_s29 + $0x28] sm:$0xff]  ;;  %s3272_s23 = smov 4  }
  0x20   : > { %v1171_v12 = vld [vmem:[%s3441_s16] sm:$0xff]  ;;  %v1172_v18 = vld [vmem:[%s3441_s16 + $0x8] sm:$0xff]  ;;  %v1173_v24 = vld [vmem:[%s3441_s16 + $0x10] sm:$0xff]  ;;  %s869_s21 = scalar_select %p868_p10, 1, 0 }
  0x21   : > { %785 = vperm.xlu1 %3218, %v511_v8   ;;  %3123 = vmatmul.msk.f32.vlgmr.msra.gmra.mxu2 %vm544_vm0, %v1171_v12  ;;  %v527_v26 = vld [vmem:[%s3429_s1 + $0x18] sm:$0xff]  ;;  %v528_v32 = vld [vmem:[%s3429_s1 + $0x20] sm:$0xff]  ;;  %v529_v38 = vld [vmem:[%s3429_s1 + $0x28] sm:$0xff]  ;;  %s1409_s24 = scalar_select %p461_p6, 1, 0 }
  0x22   : > { %780 = vperm.xlu0 %3217, %v510_v9   ;;  %v1174_v30 = vld [vmem:[%s3441_s16 + $0x18] sm:$0xff]  ;;  %v1175_v36 = vld [vmem:[%s3441_s16 + $0x20] sm:$0xff]  ;;  %v919_v39 = vld [vmem:[%s3412_s29 + $0x30] sm:$0xff]  ;;  %s3274_s20 = smov 20   ;;  %s3275_s28 = smov 16  }
  0x23   : > { %790 = vperm.xlu2 %3219, %v512_v25   ;;  %v1176_v40 = vld [vmem:[%s3441_s16 + $0x28] sm:$0xff]  ;;  %v530_v42 = vld [vmem:[%s3429_s1 + $0x30] sm:$0xff]  ;;  %v920_v43 = vld [vmem:[%s3412_s29 + $0x38] sm:$0xff]  ;;  %s3276_s3 = smov 24   ;;  %s3277_s15 = smov 28  }
  0x24   : > { %v1177_v44 = vld [vmem:[%s3441_s16 + $0x30] sm:$0xff]  ;;  %v531_v45 = vld [vmem:[%s3429_s1 + $0x38] sm:$0xff]  ;;  %v921_v46 = vld [vmem:[%s3412_s29 + $0x40] sm:$0xff]  ;;  %s3278_s27 = smov 32   ;;  %s3282_s17 = smov 64  }
  0x25   : > { %v1178_v47 = vld [vmem:[%s3441_s16 + $0x38] sm:$0xff]  ;;  %v532_v48 = vld [vmem:[%s3429_s1 + $0x40] sm:$0xff]  ;;  %v922_v49 = vld [vmem:[%s3412_s29 + $0x48] sm:$0xff] }
  0x26   : > { %3104 = vmatmul.msk.f32.gmra.mxu1 %vm544_vm0, %v914_v10  ;;  %v1179_v50 = vld [vmem:[%s3441_s16 + $0x40] sm:$0xff]  ;;  %v533_v51 = vld [vmem:[%s3429_s1 + $0x48] sm:$0xff]  ;;  %v923_v52 = vld [vmem:[%s3412_s29 + $0x50] sm:$0xff] }
  0x27   : > { %3084 = vmatmul.msk.f32.gmra.mxu0 %vm544_vm0, %v525_v14  ;;  %v1180_v53 = vld [vmem:[%s3441_s16 + $0x48] sm:$0xff]  ;;  %v534_v54 = vld [vmem:[%s3429_s1 + $0x50] sm:$0xff]  ;;  %v924_v55 = vld [vmem:[%s3412_s29 + $0x58] sm:$0xff] }
  0x28   : > { %v1181_v56 = vld [vmem:[%s3441_s16 + $0x50] sm:$0xff]  ;;  %v535_v57 = vld [vmem:[%s3429_s1 + $0x58] sm:$0xff]  ;;  %v925_v58 = vld [vmem:[%s3412_s29 + $0x60] sm:$0xff] }
  0x29   : > { %800 = vperm.xlu1 %3218, %v514_v15   ;;  %3124 = vmatmul.msk.f32.gmra.mxu2 %vm544_vm0, %v1172_v18  ;;  %v1182_v59 = vld [vmem:[%s3441_s16 + $0x58] sm:$0xff]  ;;  %v536_v60 = vld [vmem:[%s3429_s1 + $0x60] sm:$0xff]  ;;  %v926_v61 = vld [vmem:[%s3412_s29 + $0x68] sm:$0xff] }
  0x2a   : > { %795 = vperm.xlu0 %3217, %v513_v16   ;;  %v1183_v62 = vld [vmem:[%s3441_s16 + $0x60] sm:$0xff]  ;;  %v537_v63 = vld [vmem:[%s3429_s1 + $0x68] sm:$0xff]  ;;  %v927_v0 = vld [vmem:[%s3412_s29 + $0x70] sm:$0xff] }
  0x2b   : > { %805 = vperm.xlu2 %3219, %v515_v31   ;;  %v1184_v1 = vld [vmem:[%s3441_s16 + $0x68] sm:$0xff]  ;;  %v538_v2 = vld [vmem:[%s3429_s1 + $0x70] sm:$0xff]  ;;  %v928_v3 = vld [vmem:[%s3412_s29 + $0x78] sm:$0xff] }
  0x2c   : > { %v1185_v4 = vld [vmem:[%s3441_s16 + $0x70] sm:$0xff]  ;;  %v539_v6 = vld [vmem:[%s3429_s1 + $0x78] sm:$0xff]  ;;  %v3581_v7 = vld [vmem:[%s4824_s5] ss:$0 sm:$0xff] }
  0x2d   : > { %v929_v9 = vld [vmem:[%s3412_s29 + $0x80] sm:$0xff]  ;;  %v1186_v11 = vld [vmem:[%s3441_s16 + $0x78] sm:$0xff] }
  0x2e   : > { %3105 = vmatmul.msk.f32.gmra.mxu1 %vm544_vm0, %v915_v17  ;;  %v540_v17 = vld [vmem:[%s3429_s1 + $0x80] sm:$0xff] }
  0x2f   : > { %3085 = vmatmul.msk.f32.gmra.mxu0 %vm544_vm0, %v526_v20  ;;  %v930_v20 = vld [vmem:[%s3412_s29 + $0x88] sm:$0xff] }
  0x31   : > { %815 = vperm.xlu1 %3218, %v517_v21   ;;  %3125 = vmatmul.msk.f32.gmra.mxu2 %vm544_vm0, %v1173_v24  ;;  %v1187_v24 = vld [vmem:[%s3441_s16 + $0x80] sm:$0xff] }
  0x32   : > { %810 = vperm.xlu0 %3217, %v516_v22  }
  0x33   : > { %820 = vperm.xlu2 %3219, %v518_v37  }
  0x36   : > { %3106 = vmatmul.msk.f32.gmra.mxu1 %vm544_vm0, %v916_v23  ;;  %v870_v23 = vstv %s869_s21 }
  0x37   : > { %3086 = vmatmul.msk.f32.gmra.mxu0 %vm544_vm0, %v527_v26  ;;  %vm3601_vm2 = vcmp.eq.s32.totalorder %v870_v23, 1 }
  0x39   : > { %830 = vperm.xlu1 %3218, %v520_v27   ;;  %3126 = vmatmul.msk.f32.gmra.mxu2 %vm544_vm0, %v1174_v30 }
  0x3a   : > { %825 = vperm.xlu0 %3217, %v519_v28  }
  0x3b   : > { %835 = vperm.xlu2 %3219, %v521_v41  }
  0x3e   : > { %3107 = vmatmul.msk.f32.gmra.mxu1 %vm544_vm0, %v917_v29 }
  0x3f   : > { %3087 = vmatmul.msk.f32.gmra.mxu0 %vm544_vm0, %v528_v32 }
  0x41   : > { %845 = vperm.xlu1 %3218, %v523_v33   ;;  %3127 = vmatmul.msk.f32.gmra.mxu2 %vm544_vm0, %v1175_v36  ;;  %v541_v33 = vld [vmem:[%s3429_s1 + $0x88] sm:$0xff] }
  0x42   : > { %840 = vperm.xlu0 %3217, %v522_v34  }
  0x46   : > { %3108 = vmatmul.msk.f32.gmra.mxu1 %vm544_vm0, %v918_v35 }
  0x47   : > { %3088 = vmatmul.msk.f32.gmra.mxu0 %vm544_vm0, %v529_v38 }
  0x49   : > { %3128 = vmatmul.msk.f32.gmra.mxu2 %vm544_vm0, %v1176_v40 }
  0x4e   : > { %3109 = vmatmul.msk.f32.gmra.mxu1 %vm544_vm0, %v919_v39  ;;  %v931_v39 = vld [vmem:[%s3412_s29 + $0x90] sm:$0xff] }
  0x4f   : > { %3089 = vmatmul.msk.f32.gmra.mxu0 %vm544_vm0, %v530_v42 }
  0x51   : > { %3129 = vmatmul.msk.f32.gmra.mxu2 %vm544_vm0, %v1177_v44 }
  0x56   : > { %3110 = vmatmul.msk.f32.gmra.mxu1 %vm544_vm0, %v920_v43  ;;  %v1188_v43 = vld [vmem:[%s3441_s16 + $0x88] sm:$0xff] }
  0x57   : > { %3090 = vmatmul.msk.f32.gmra.mxu0 %vm544_vm0, %v531_v45  ;;  %v1410_v45 = vstv %s1409_s24  ;;  %s3279_s24 = smov 52  }
  0x58   : > { %vm3630_vm3 = vcmp.eq.s32.totalorder %v1410_v45, 1 }
  0x59   : > { %3130 = vmatmul.msk.f32.gmra.mxu2 %vm544_vm0, %v1178_v47 }
  0x5e   : > { %3111 = vmatmul.msk.f32.gmra.mxu1 %vm544_vm0, %v921_v46 }
  0x5f   : > { %3091 = vmatmul.msk.f32.gmra.mxu0 %vm544_vm0, %v532_v48 }
  0x61   : > { %3131 = vmatmul.msk.f32.gmra.mxu2 %vm544_vm0, %v1179_v50 }
  0x66   : > { %3112 = vmatmul.msk.f32.gmra.mxu1 %vm544_vm0, %v922_v49 }
  0x67   : > { %3092 = vmatmul.msk.f32.gmra.mxu0 %vm544_vm0, %v533_v51 }
  0x69   : > { %3132 = vmatmul.msk.f32.gmra.mxu2 %vm544_vm0, %v1180_v53 }
  0x6e   : > { %3113 = vmatmul.msk.f32.gmra.mxu1 %vm544_vm0, %v923_v52 }
  0x6f   : > { %3093 = vmatmul.msk.f32.gmra.mxu0 %vm544_vm0, %v534_v54 }
  0x71   : > { %3133 = vmatmul.msk.f32.gmra.mxu2 %vm544_vm0, %v1181_v56  ;;  %v542_v56 = vld [vmem:[%s3429_s1 + $0x90] sm:$0xff] }
  0x76   : > { %3114 = vmatmul.msk.f32.gmra.mxu1 %vm544_vm0, %v924_v55 }
  0x77   : > { %3094 = vmatmul.msk.f32.gmra.mxu0 %vm544_vm0, %v535_v57 }
  0x79   : > { %3134 = vmatmul.msk.f32.gmra.mxu2 %vm544_vm0, %v1182_v59 }
  0x7e   : > { %3115 = vmatmul.msk.f32.gmra.mxu1 %vm544_vm0, %v925_v58 }
  0x7f   : > { %3095 = vmatmul.msk.f32.gmra.mxu0 %vm544_vm0, %v536_v60 }
  0x81   : > { %3135 = vmatmul.msk.f32.gmra.mxu2 %vm544_vm0, %v1183_v62 }
  0x83   : > { %v751_v13 = vpop.permute.xlu0 %750  ;;  %v3627_v47 = vpop.permute.xlu1 %760 }
  0x86   : > { %3116 = vmatmul.msk.f32.gmra.mxu1 %vm544_vm0, %v926_v61  ;;  %v932_v61 = vld [vmem:[%s3412_s29 + $0x98] sm:$0xff]  ;;  %s3269_s29 = smov 40  }
  0x87   : > { %3096 = vmatmul.msk.f32.gmra.mxu0 %vm544_vm0, %v537_v63 }
  0x89   : > { %3136 = vmatmul.msk.f32.gmra.mxu2 %vm544_vm0, %v1184_v1 }
  0x8c   : > { %v3606_v29 = vpop.permute.xlu0 %755 }
  0x8e   : > { %3117 = vmatmul.msk.f32.gmra.mxu1 %vm544_vm0, %v927_v0 }
  0x8f   : > { %3097 = vmatmul.msk.f32.gmra.mxu0 %vm544_vm0, %v538_v2 }
  0x91   : > { %3137 = vmatmul.msk.f32.gmra.mxu2 %vm544_vm0, %v1185_v4  ;;  %v1189_v4 = vld [vmem:[%s3441_s16 + $0x90] sm:$0xff] }
  0x96   : > { %3118 = vmatmul.msk.f32.gmra.mxu1 %vm544_vm0, %v928_v3 }
  0x97   : > { %3098 = vmatmul.msk.f32.gmra.mxu0 %vm544_vm0, %v539_v6 }
  0x99   : > { %3138 = vmatmul.msk.f32.gmra.mxu2 %vm544_vm0, %v1186_v11 }
  0x9b   : > { %v1010_v8 = vpop.f32.mrf.mxu1 }
  0x9c   : > { %v1070_v10 = vmul.f32 %v3575_v5, %v1010_v8  ;;  %v622_v16 = vpop.f32.mrf.mxu0 }
  0x9d   : > { %v685_v18 = vmul.f32 %v3575_v5, %v622_v16 }
  0x9e   : > { %v1090_v12 = vadd.f32 %v3581_v7, %v1070_v10  ;;  %3119 = vmatmul.msk.f32.gmra.mxu1 %vm544_vm0, %v929_v9 }
  0x9f   : > { %v708_v22 = vadd.f32 %v3581_v7, %v685_v18  ;;  %3099 = vmatmul.msk.f32.gmra.mxu0 %vm544_vm0, %v540_v17  ;;  %v543_v17 = vld [vmem:[%s3429_s1 + $0x98] sm:$0xff]  ;;  %s3270_s1 = smov 8  }
  0xa0   : > { %v1110_v14 = vmax.f32 %v1090_v12, 0.0  ;;  %v3657_v12 = vpop.permute.xlu1 %765 }
  0xa1   : > { %v728_v26 = vmax.f32 %v708_v22, 0.0  ;;  %3139 = vmatmul.msk.f32.gmra.mxu2 %vm544_vm0, %v1187_v24 }
  0xa2   : > { %v1130_v15 = vmul.f32 %v1110_v14, %v751_v13 }
  0xa3   : > { %v1013_v19 = vpop.f32.mrf.mxu1  ;;  %v848_v30 = vmul.f32 %v751_v13, %v728_v26 }
  0xa4   : > { %1151 = vst.msk [vmem:[#allocation2 + $0xa0] sm:$0xff] %vm892_vm1, %v1130_v15  ;;  %v1071_v21 = vmul.f32 %v3575_v5, %v1013_v19  ;;  %v625_v32 = vpop.f32.mrf.mxu0  ;;  %v1268_v35 = vpop.f32.mrf.mxu2 }
  0xa5   : > { %v872_v34 = vsel %vm3601_vm2, %v848_v30, 0.0  ;;  %v686_v36 = vmul.f32 %v3575_v5, %v625_v32  ;;  %v1328_v40 = vmul.f32 %v3575_v5, %v1268_v35 }
  0xa6   : > { %v1091_v25 = vadd.f32 %v3581_v7, %v1071_v21  ;;  %3120 = vmatmul.msk.f32.gmra.mxu1 %vm544_vm0, %v930_v20  ;;  %893 = vst.msk [vmem:[#allocation2] sm:$0xff] %vm892_vm1, %v872_v34 }
  0xa7   : > { %v709_v42 = vadd.f32 %v3581_v7, %v686_v36  ;;  %3100 = vmatmul.msk.f32.gmra.mxu0 %vm544_vm0, %v541_v33  ;;  %v1348_v44 = vadd.f32 %v3581_v7, %v1328_v40  ;;  %v771_v33 = vpop.permute.xlu2 %770 }
  0xa8   : > { %v1111_v28 = vmax.f32 %v1091_v25, 0.0 }
  0xa9   : > { %v729_v48 = vmax.f32 %v709_v42, 0.0  ;;  %v1368_v49 = vmax.f32 %v1348_v44, 0.0  ;;  %3140 = vmatmul.msk.f32.gmra.mxu2 %vm544_vm0, %v1188_v43 }
  0xaa   : > { %v1131_v31 = vmul.f32 %v1111_v28, %v3606_v29  ;;  %v1190_v28 = vld [vmem:[%s3441_s16 + $0x98] sm:$0xff]  ;;  %s3273_s16 = smov 12  }
  0xab   : > { %v1016_v37 = vpop.f32.mrf.mxu1  ;;  %v1527_v38 = vld [vmem:[#allocation2 + $0xa0] sm:$0xff]  ;;  %v849_v52 = vmul.f32 %v3606_v29, %v729_v48  ;;  %v1388_v53 = vmul.f32 %v1368_v49, %v751_v13 }
  0xac   : > { %v1072_v41 = vmul.f32 %v3575_v5, %v1016_v37  ;;  %1939 = vrot.lane.b32.xlu0 %v1527_v38, %s3267_s30  ;;  %1152 = vst.msk [vmem:[#allocation2 + $0xa8] sm:$0xff] %vm892_vm1, %v1131_v31  ;;  %v628_v55 = vpop.f32.mrf.mxu0  ;;  %v1271_v58 = vpop.f32.mrf.mxu2 }
  0xad   : > { %v873_v57 = vsel %vm3601_vm2, %v849_v52, 0.0  ;;  %v687_v59 = vmul.f32 %v3575_v5, %v628_v55  ;;  %v1412_v62 = vsel %vm3630_vm3, %v1388_v53, 0.0  ;;  %v1329_v63 = vmul.f32 %v3575_v5, %v1271_v58 }
  0xae   : > { %v1092_v46 = vadd.f32 %v3581_v7, %v1072_v41  ;;  %3121 = vmatmul.msk.f32.gmra.mxu1 %vm544_vm0, %v931_v39  ;;  %894 = vst.msk [vmem:[#allocation2 + $0x8] sm:$0xff] %vm892_vm1, %v873_v57 }
  0xaf   : > { %1433 = vst.msk [vmem:[#allocation2 + $0x140] sm:$0xff] %vm892_vm1, %v1412_v62  ;;  %v710_v3 = vadd.f32 %v3581_v7, %v687_v59  ;;  %3101 = vmatmul.msk.f32.gmra.mxu0 %vm544_vm0, %v542_v56  ;;  %v1349_v6 = vadd.f32 %v3581_v7, %v1329_v63  ;;  %v776_v57 = vpop.permute.xlu2 %775 }
  0xb0   : > { %v1112_v50 = vmax.f32 %v1092_v46, 0.0 }
  0xb1   : > { %v730_v9 = vmax.f32 %v710_v3, 0.0  ;;  %v1369_v10 = vmax.f32 %v1349_v6, 0.0  ;;  %3141 = vmatmul.msk.f32.gmra.mxu2 %vm544_vm0, %v1189_v4 }
  0xb2   : > { %v1132_v54 = vmul.f32 %v1112_v50, %v3627_v47 }
  0xb3   : > { %v1019_v60 = vpop.f32.mrf.mxu1  ;;  %v1543_v1 = vld [vmem:[#allocation2 + $0xa2] sm:$0xff]  ;;  %v850_v13 = vmul.f32 %v3627_v47, %v730_v9  ;;  %v1389_v14 = vmul.f32 %v1369_v10, %v3606_v29 }
  0xb4   : > { %v1073_v0 = vmul.f32 %v3575_v5, %v1019_v60  ;;  %v1535_v2 = vld [vmem:[#allocation2 + $0xa1] sm:$0xff]  ;;  %2003 = vrot.lane.b32.xlu1 %v1543_v1, %s3268_s25  ;;  %1153 = vst.msk [vmem:[#allocation2 + $0xb0] sm:$0xff] %vm892_vm1, %v1132_v54  ;;  %v631_v16 = vpop.f32.mrf.mxu0  ;;  %v1274_v19 = vpop.f32.mrf.mxu2 }
  0xb5   : > { %1971 = vrot.lane.b32.xlu2 %v1535_v2, %s3269_s29  ;;  %v874_v18 = vsel %vm3601_vm2, %v850_v13, 0.0  ;;  %v688_v20 = vmul.f32 %v3575_v5, %v631_v16  ;;  %v1413_v22 = vsel %vm3630_vm3, %v1389_v14, 0.0  ;;  %v1330_v23 = vmul.f32 %v3575_v5, %v1274_v19  ;;  %v1469_v25 = vld [vmem:[#allocation2 + $0x2] sm:$0xff] }
  0xb6   : > { %v1093_v8 = vadd.f32 %v3581_v7, %v1073_v0  ;;  %3122 = vmatmul.msk.f32.gmra.mxu1 %vm544_vm0, %v932_v61  ;;  %895 = vst.msk [vmem:[#allocation2 + $0x10] sm:$0xff] %vm892_vm1, %v874_v18  ;;  %v1461_v30 = vld [vmem:[#allocation2 + $0x1] sm:$0xff] }
  0xb7   : > { %1434 = vst.msk [vmem:[#allocation2 + $0x148] sm:$0xff] %vm892_vm1, %v1413_v22  ;;  %v711_v26 = vadd.f32 %v3581_v7, %v688_v20  ;;  %3102 = vmatmul.msk.f32.gmra.mxu0 %vm544_vm0, %v543_v17  ;;  %v1350_v31 = vadd.f32 %v3581_v7, %v1330_v23 }
  0xb8   : > { %v1113_v11 = vmax.f32 %v1093_v8, 0.0 }
  0xb9   : > { %v731_v34 = vmax.f32 %v711_v26, 0.0  ;;  %v1370_v35 = vmax.f32 %v1350_v31, 0.0  ;;  %3142 = vmatmul.msk.f32.gmra.mxu2 %vm544_vm0, %v1190_v28 }
  0xba   : > { %v1133_v15 = vmul.f32 %v1113_v11, %v3657_v12 }
  0xbb   : > { %v1022_v21 = vpop.f32.mrf.mxu1  ;;  %v1552_v29 = vld [vmem:[#allocation2 + $0xb0] sm:$0xff]  ;;  %v851_v37 = vmul.f32 %v3657_v12, %v731_v34  ;;  %v1390_v38 = vmul.f32 %v1370_v35, %v3627_v47 }
  0xbc   : > { %v1074_v24 = vmul.f32 %v3575_v5, %v1022_v21  ;;  %1715 = vrot.lane.b32.xlu1 %v1469_v25, %s3270_s1  ;;  %1154 = vst.msk [vmem:[#allocation2 + $0xb8] sm:$0xff] %vm892_vm1, %v1133_v15  ;;  %2035 = vrot.lane.b32.xlu0 %v1552_v29, %s3271_s22  ;;  %v634_v40 = vpop.f32.mrf.mxu0  ;;  %v1277_v42 = vpop.f32.mrf.mxu2 }
  0xbd   : > { %1683 = vrot.lane.b32.xlu2 %v1461_v30, %s3272_s23  ;;  %v875_v41 = vsel %vm3601_vm2, %v851_v37, 0.0  ;;  %v689_v43 = vmul.f32 %v3575_v5, %v634_v40  ;;  %v1414_v45 = vsel %vm3630_vm3, %v1390_v38, 0.0  ;;  %v1331_v46 = vmul.f32 %v3575_v5, %v1277_v42  ;;  %v1478_v50 = vld [vmem:[#allocation2 + $0x10] sm:$0xff]  ;;  %v781_v15 = vpop.permute.xlu0 %780 }
  0xbe   : > { %v1094_v32 = vadd.f32 %v3581_v7, %v1074_v24  ;;  %896 = vst.msk [vmem:[#allocation2 + $0x18] sm:$0xff] %vm892_vm1, %v875_v41 }
  0xbf   : > { %1435 = vst.msk [vmem:[#allocation2 + $0x150] sm:$0xff] %vm892_vm1, %v1414_v45  ;;  %v712_v47 = vadd.f32 %v3581_v7, %v689_v43  ;;  %v1351_v52 = vadd.f32 %v3581_v7, %v1331_v46 }
  0xc0   : > { %v1114_v36 = vmax.f32 %v1094_v32, 0.0 }
  0xc1   : > { %v732_v54 = vmax.f32 %v712_v47, 0.0  ;;  %v1371_v55 = vmax.f32 %v1351_v52, 0.0 }
  0xc2   : > { %v1134_v39 = vmul.f32 %v1114_v36, %v771_v33  ;;  %v786_v36 = vpop.permute.xlu1 %785 }
  0xc3   : > { %v1025_v44 = vpop.f32.mrf.mxu1  ;;  %v1544_v49 = vld [vmem:[#allocation2 + $0xb2] sm:$0xff]  ;;  %v852_v58 = vmul.f32 %v771_v33, %v732_v54  ;;  %v1391_v59 = vmul.f32 %v1371_v55, %v3657_v12 }
  0xc4   : > { %v1075_v48 = vmul.f32 %v3575_v5, %v1025_v44  ;;  %1941 = vrot.lane.b32.xlu1 %v1552_v29, %s3267_s30  ;;  %1155 = vst.msk [vmem:[#allocation2 + $0xc0] sm:$0xff] %vm892_vm1, %v1134_v39  ;;  %1747 = vrot.lane.b32.xlu0 %v1478_v50, %s3273_s16  ;;  %v637_v61 = vpop.f32.mrf.mxu0  ;;  %v1280_v63 = vpop.f32.mrf.mxu2  ;;  %v1536_v9 = vld [vmem:[#allocation2 + $0xb1] sm:$0xff] }
  0xc5   : > { %2005 = vrot.lane.b32.xlu2 %v1544_v49, %s3268_s25  ;;  %v876_v62 = vsel %vm3601_vm2, %v852_v58, 0.0  ;;  %v690_v0 = vmul.f32 %v3575_v5, %v637_v61  ;;  %v1415_v2 = vsel %vm3630_vm3, %v1391_v59, 0.0  ;;  %v1332_v3 = vmul.f32 %v3575_v5, %v1280_v63  ;;  %v1494_v6 = vld [vmem:[#allocation2 + $0x12] sm:$0xff] }
  0xc6   : > { %v1095_v53 = vadd.f32 %v3581_v7, %v1075_v48  ;;  %897 = vst.msk [vmem:[#allocation2 + $0x20] sm:$0xff] %vm892_vm1, %v876_v62  ;;  %v1486_v30 = vld [vmem:[#allocation2 + $0x11] sm:$0xff] }
  0xc7   : > { %1436 = vst.msk [vmem:[#allocation2 + $0x158] sm:$0xff] %vm892_vm1, %v1415_v2  ;;  %v713_v8 = vadd.f32 %v3581_v7, %v690_v0  ;;  %v1352_v10 = vadd.f32 %v3581_v7, %v1332_v3 }
  0xc8   : > { %v1115_v56 = vmax.f32 %v1095_v53, 0.0 }
  0xc9   : > { %v733_v12 = vmax.f32 %v713_v8, 0.0  ;;  %v1372_v13 = vmax.f32 %v1352_v10, 0.0 }
  0xca   : > { %v1135_v60 = vmul.f32 %v1115_v56, %v776_v57  ;;  %v791_v56 = vpop.permute.xlu2 %790 }
  0xcb   : > { %v1028_v1 = vpop.f32.mrf.mxu1  ;;  %v853_v16 = vmul.f32 %v776_v57, %v733_v12  ;;  %v1392_v17 = vmul.f32 %v1372_v13, %v771_v33  ;;  %v1553_v20 = vld [vmem:[#allocation2 + $0xc0] sm:$0xff] }
  0xcc   : > { %v1076_v4 = vmul.f32 %v3575_v5, %v1028_v1  ;;  %1811 = vrot.lane.b32.xlu1 %v1494_v6, %s3274_s20  ;;  %1156 = vst.msk [vmem:[#allocation2 + $0xc8] sm:$0xff] %vm892_vm1, %v1135_v60  ;;  %1973 = vrot.lane.b32.xlu0 %v1536_v9, %s3269_s29  ;;  %v640_v19 = vpop.f32.mrf.mxu0  ;;  %v1283_v22 = vpop.f32.mrf.mxu2 }
  0xcd   : > { %1717 = vrot.lane.b32.xlu2 %v1494_v6, %s3270_s1  ;;  %v877_v21 = vsel %vm3601_vm2, %v853_v16, 0.0  ;;  %v691_v23 = vmul.f32 %v3575_v5, %v640_v19  ;;  %v1416_v25 = vsel %vm3630_vm3, %v1392_v17, 0.0  ;;  %v1333_v26 = vmul.f32 %v3575_v5, %v1283_v22  ;;  %v1503_v47 = vld [vmem:[#allocation2 + $0x20] sm:$0xff] }
  0xce   : > { %v1096_v11 = vadd.f32 %v3581_v7, %v1076_v4  ;;  %898 = vst.msk [vmem:[#allocation2 + $0x28] sm:$0xff] %vm892_vm1, %v877_v21 }
  0xcf   : > { %1437 = vst.msk [vmem:[#allocation2 + $0x160] sm:$0xff] %vm892_vm1, %v1416_v25  ;;  %v714_v29 = vadd.f32 %v3581_v7, %v691_v23  ;;  %v1353_v31 = vadd.f32 %v3581_v7, %v1333_v26 }
  0xd0   : > { %v1116_v14 = vmax.f32 %v1096_v11, 0.0 }
  0xd1   : > { %v734_v33 = vmax.f32 %v714_v29, 0.0  ;;  %v1373_v34 = vmax.f32 %v1353_v31, 0.0 }
  0xd2   : > { %v1136_v18 = vmul.f32 %v1116_v14, %v781_v15 }
  0xd3   : > { %v1031_v24 = vpop.f32.mrf.mxu1  ;;  %v854_v37 = vmul.f32 %v781_v15, %v734_v33  ;;  %v1393_v38 = vmul.f32 %v1373_v34, %v776_v57  ;;  %v3757_v4 = vld [vmem:[#allocation2 + $0xc1] sm:$0xff] }
  0xd4   : > { %v1077_v28 = vmul.f32 %v3575_v5, %v1031_v24  ;;  %2037 = vrot.lane.b32.xlu1 %v1553_v20, %s3271_s22  ;;  %1157 = vst.msk [vmem:[#allocation2 + $0xd0] sm:$0xff] %vm892_vm1, %v1136_v18  ;;  %1685 = vrot.lane.b32.xlu0 %v1486_v30, %s3272_s23  ;;  %v643_v40 = vpop.f32.mrf.mxu0  ;;  %v1286_v42 = vpop.f32.mrf.mxu2  ;;  %v1545_v8 = vld [vmem:[#allocation2 + $0xc2] sm:$0xff] }
  0xd5   : > { %1779 = vrot.lane.b32.xlu2 %v1486_v30, %s3275_s28  ;;  %v878_v41 = vsel %vm3601_vm2, %v854_v37, 0.0  ;;  %v692_v43 = vmul.f32 %v3575_v5, %v643_v40  ;;  %v1417_v45 = vsel %vm3630_vm3, %v1393_v38, 0.0  ;;  %v1334_v46 = vmul.f32 %v3575_v5, %v1286_v42  ;;  %v1495_v9 = vld [vmem:[#allocation2 + $0x22] sm:$0xff] }
  0xd6   : > { %v1097_v32 = vadd.f32 %v3581_v7, %v1077_v28  ;;  %899 = vst.msk [vmem:[#allocation2 + $0x30] sm:$0xff] %vm892_vm1, %v878_v41  ;;  %v1511_v28 = vld [vmem:[#allocation2 + $0x21] sm:$0xff] }
  0xd7   : > { %1438 = vst.msk [vmem:[#allocation2 + $0x168] sm:$0xff] %vm892_vm1, %v1417_v45  ;;  %v715_v49 = vadd.f32 %v3581_v7, %v692_v43  ;;  %v1354_v50 = vadd.f32 %v3581_v7, %v1334_v46 }
  0xd8   : > { %v1117_v35 = vmax.f32 %v1097_v32, 0.0 }
  0xd9   : > { %v735_v53 = vmax.f32 %v715_v49, 0.0  ;;  %v1374_v54 = vmax.f32 %v1354_v50, 0.0 }
  0xda   : > { %v1137_v39 = vmul.f32 %v1117_v35, %v786_v36  ;;  %v801_v35 = vpop.permute.xlu1 %800 }
  0xdb   : > { %v1034_v44 = vpop.f32.mrf.mxu1  ;;  %v855_v57 = vmul.f32 %v786_v36, %v735_v53  ;;  %v1394_v58 = vmul.f32 %v1374_v54, %v781_v15  ;;  %v796_v15 = vpop.permute.xlu0 %795  ;;  %v1554_v49 = vld [vmem:[#allocation2 + $0xd0] sm:$0xff] }
  0xdc   : > { %v1078_v48 = vmul.f32 %v3575_v5, %v1034_v44  ;;  %1749 = vrot.lane.b32.xlu1 %v1503_v47, %s3273_s16  ;;  %1158 = vst.msk [vmem:[#allocation2 + $0xd8] sm:$0xff] %vm892_vm1, %v1137_v39  ;;  %1843 = vrot.lane.b32.xlu0 %v1503_v47, %s3276_s3  ;;  %v646_v60 = vpop.f32.mrf.mxu0  ;;  %v1289_v62 = vpop.f32.mrf.mxu2 }
  0xdd   : > { %1943 = vrot.lane.b32.xlu2 %v1553_v20, %s3267_s30  ;;  %v879_v61 = vsel %vm3601_vm2, %v855_v57, 0.0  ;;  %v693_v63 = vmul.f32 %v3575_v5, %v646_v60  ;;  %v1418_v1 = vsel %vm3630_vm3, %v1394_v58, 0.0  ;;  %v1335_v2 = vmul.f32 %v3575_v5, %v1289_v62  ;;  %v3787_v44 = vpop.permute.xlu2 %805 }
  0xde   : > { %v1098_v52 = vadd.f32 %v3581_v7, %v1078_v48  ;;  %900 = vst.msk [vmem:[#allocation2 + $0x38] sm:$0xff] %vm892_vm1, %v879_v61 }
  0xdf   : > { %1439 = vst.msk [vmem:[#allocation2 + $0x170] sm:$0xff] %vm892_vm1, %v1418_v1  ;;  %v716_v6 = vadd.f32 %v3581_v7, %v693_v63  ;;  %v1355_v10 = vadd.f32 %v3581_v7, %v1335_v2 }
  0xe0   : > { %v1118_v55 = vmax.f32 %v1098_v52, 0.0 }
  0xe1   : > { %v736_v12 = vmax.f32 %v716_v6, 0.0  ;;  %v1375_v13 = vmax.f32 %v1355_v10, 0.0 }
  0xe2   : > { %v1138_v59 = vmul.f32 %v1118_v55, %v791_v56 }
  0xe3   : > { %v1037_v0 = vpop.f32.mrf.mxu1  ;;  %v856_v16 = vmul.f32 %v791_v56, %v736_v12  ;;  %v1395_v17 = vmul.f32 %v1375_v13, %v786_v36 }
  0xe4   : > { %v1079_v3 = vmul.f32 %v3575_v5, %v1037_v0  ;;  %1975 = vrot.lane.b32.xlu1 %v3757_v4, %s3269_s29  ;;  %1159 = vst.msk [vmem:[#allocation2 + $0xe0] sm:$0xff] %vm892_vm1, %v1138_v59  ;;  %2007 = vrot.lane.b32.xlu0 %v1545_v8, %s3268_s25  ;;  %v649_v19 = vpop.f32.mrf.mxu0  ;;  %v1292_v21 = vpop.f32.mrf.mxu2 }
  0xe5   : > { %1813 = vrot.lane.b32.xlu2 %v1495_v9, %s3274_s20  ;;  %v880_v20 = vsel %vm3601_vm2, %v856_v16, 0.0  ;;  %v694_v22 = vmul.f32 %v3575_v5, %v649_v19  ;;  %v1419_v24 = vsel %vm3630_vm3, %v1395_v17, 0.0  ;;  %v1336_v25 = vmul.f32 %v3575_v5, %v1292_v21  ;;  %v3817_v8 = vpop.permute.xlu2 %820 }
  0xe6   : > { %v1099_v11 = vadd.f32 %v3581_v7, %v1079_v3  ;;  %901 = vst.msk [vmem:[#allocation2 + $0x40] sm:$0xff] %vm892_vm1, %v880_v20  ;;  %v3811_v3 = vld [vmem:[#allocation2 + $0x30] sm:$0xff] }
  0xe7   : > { %1440 = vst.msk [vmem:[#allocation2 + $0x178] sm:$0xff] %vm892_vm1, %v1419_v24  ;;  %v717_v29 = vadd.f32 %v3581_v7, %v694_v22  ;;  %v1356_v30 = vadd.f32 %v3581_v7, %v1336_v25 }
  0xe8   : > { %v1119_v14 = vmax.f32 %v1099_v11, 0.0 }
  0xe9   : > { %v737_v32 = vmax.f32 %v717_v29, 0.0  ;;  %v1376_v33 = vmax.f32 %v1356_v30, 0.0  ;;  %v3840_v29 = vld [vmem:[#allocation2 + $0xd1] sm:$0xff] }
  0xea   : > { %v1139_v18 = vmul.f32 %v1119_v14, %v796_v15  ;;  %v811_v14 = vpop.permute.xlu0 %810  ;;  %v1496_v30 = vld [vmem:[#allocation2 + $0x32] sm:$0xff] }
  0xeb   : > { %v1040_v23 = vpop.f32.mrf.mxu1  ;;  %v857_v36 = vmul.f32 %v796_v15, %v737_v32  ;;  %v1396_v37 = vmul.f32 %v1376_v33, %v791_v56 }
  0xec   : > { %v1080_v26 = vmul.f32 %v3575_v5, %v1040_v23  ;;  %1687 = vrot.lane.b32.xlu1 %v1511_v28, %s3272_s23  ;;  %1160 = vst.msk [vmem:[#allocation2 + $0xe8] sm:$0xff] %vm892_vm1, %v1139_v18  ;;  %1719 = vrot.lane.b32.xlu0 %v1495_v9, %s3270_s1  ;;  %v652_v39 = vpop.f32.mrf.mxu0  ;;  %v1295_v41 = vpop.f32.mrf.mxu2 }
  0xed   : > { %1875 = vrot.lane.b32.xlu2 %v1511_v28, %s3277_s15  ;;  %v881_v40 = vsel %vm3601_vm2, %v857_v36, 0.0  ;;  %v695_v42 = vmul.f32 %v3575_v5, %v652_v39  ;;  %v1420_v45 = vsel %vm3630_vm3, %v1396_v37, 0.0  ;;  %v1337_v46 = vmul.f32 %v3575_v5, %v1295_v41  ;;  %v816_v37 = vpop.permute.xlu1 %815 }
  0xee   : > { %v1100_v31 = vadd.f32 %v3581_v7, %v1080_v26  ;;  %902 = vst.msk [vmem:[#allocation2 + $0x48] sm:$0xff] %vm892_vm1, %v881_v40  ;;  %v3834_v26 = vld [vmem:[#allocation2 + $0xd2] sm:$0xff] }
  0xef   : > { %1441 = vst.msk [vmem:[#allocation2 + $0x180] sm:$0xff] %vm892_vm1, %v1420_v45  ;;  %v718_v47 = vadd.f32 %v3581_v7, %v695_v42  ;;  %v1357_v50 = vadd.f32 %v3581_v7, %v1337_v46 }
  0xf0   : > { %v1120_v34 = vmax.f32 %v1100_v31, 0.0 }
  0xf1   : > { %v738_v53 = vmax.f32 %v718_v47, 0.0  ;;  %v1377_v54 = vmax.f32 %v1357_v50, 0.0  ;;  %v1512_v50 = vld [vmem:[#allocation2 + $0x31] sm:$0xff] }
  0xf2   : > { %v1140_v38 = vmul.f32 %v1120_v34, %v801_v35  ;;  %v3848_v34 = vpop.permute.xlu2 %835 }
  0xf3   : > { %v1043_v43 = vpop.f32.mrf.mxu1  ;;  %v858_v56 = vmul.f32 %v801_v35, %v738_v53  ;;  %v1397_v57 = vmul.f32 %v1377_v54, %v796_v15 }
  0xf4   : > { %v1081_v48 = vmul.f32 %v3575_v5, %v1043_v43  ;;  %1907 = vrot.lane.b32.xlu1 %v1495_v9, %s3278_s27  ;;  %1161 = vst.msk [vmem:[#allocation2 + $0xf0] sm:$0xff] %vm892_vm1, %v1140_v38  ;;  %1781 = vrot.lane.b32.xlu0 %v1511_v28, %s3275_s28  ;;  %v655_v59 = vpop.f32.mrf.mxu0  ;;  %v1298_v61 = vpop.f32.mrf.mxu2 }
  0xf5   : > { %2039 = vrot.lane.b32.xlu2 %v1554_v49, %s3271_s22  ;;  %v882_v60 = vsel %vm3601_vm2, %v858_v56, 0.0  ;;  %v696_v62 = vmul.f32 %v3575_v5, %v655_v59  ;;  %v1421_v0 = vsel %vm3630_vm3, %v1397_v57, 0.0  ;;  %v1338_v1 = vmul.f32 %v3575_v5, %v1298_v61 }
  0xf6   : > { %v1101_v52 = vadd.f32 %v3581_v7, %v1081_v48  ;;  %903 = vst.msk [vmem:[#allocation2 + $0x50] sm:$0xff] %vm892_vm1, %v882_v60 }
  0xf7   : > { %1442 = vst.msk [vmem:[#allocation2 + $0x188] sm:$0xff] %vm892_vm1, %v1421_v0  ;;  %v719_v6 = vadd.f32 %v3581_v7, %v696_v62  ;;  %v1358_v9 = vadd.f32 %v3581_v7, %v1338_v1 }
  0xf8   : > { %v1121_v55 = vmax.f32 %v1101_v52, 0.0 }
  0xf9   : > { %v739_v11 = vmax.f32 %v719_v6, 0.0  ;;  %v1378_v12 = vmax.f32 %v1358_v9, 0.0 }
  0xfa   : > { %v1141_v58 = vmul.f32 %v1121_v55, %v3787_v44 }
  0xfb   : > { %v1046_v63 = vpop.f32.mrf.mxu1  ;;  %v859_v15 = vmul.f32 %v3787_v44, %v739_v11  ;;  %v1398_v16 = vmul.f32 %v1378_v12, %v801_v35  ;;  %v1555_v12 = vld [vmem:[#allocation2 + $0xe0] sm:$0xff] }
  0xfc   : > { %v1082_v2 = vmul.f32 %v3575_v5, %v1046_v63  ;;  %1845 = vrot.lane.b32.xlu1 %v3811_v3, %s3276_s3  ;;  %1162 = vst.msk [vmem:[#allocation2 + $0xf8] sm:$0xff] %vm892_vm1, %v1141_v58  ;;  %1945 = vrot.lane.b32.xlu0 %v1554_v49, %s3267_s30  ;;  %v658_v18 = vpop.f32.mrf.mxu0  ;;  %v1301_v20 = vpop.f32.mrf.mxu2 }
  0xfd   : > { %1751 = vrot.lane.b32.xlu2 %v3811_v3, %s3273_s16  ;;  %v883_v19 = vsel %vm3601_vm2, %v859_v15, 0.0  ;;  %v697_v21 = vmul.f32 %v3575_v5, %v658_v18  ;;  %v1422_v23 = vsel %vm3630_vm3, %v1398_v16, 0.0  ;;  %v1339_v24 = vmul.f32 %v3575_v5, %v1301_v20 }
  0xfe   : > { %v1102_v10 = vadd.f32 %v3581_v7, %v1082_v2  ;;  %904 = vst.msk [vmem:[#allocation2 + $0x58] sm:$0xff] %vm892_vm1, %v883_v19 }
  0xff   : > { %1443 = vst.msk [vmem:[#allocation2 + $0x190] sm:$0xff] %vm892_vm1, %v1422_v23  ;;  %v720_v28 = vadd.f32 %v3581_v7, %v697_v21  ;;  %v1359_v31 = vadd.f32 %v3581_v7, %v1339_v24 }
 0x100   : > { %v1122_v13 = vmax.f32 %v1102_v10, 0.0  ;;  %v3878_v10 = vpop.permute.xlu1 %830 }
 0x101   : > { %v740_v33 = vmax.f32 %v720_v28, 0.0  ;;  %v1379_v35 = vmax.f32 %v1359_v31, 0.0 }
 0x102   : > { %v1142_v17 = vmul.f32 %v1122_v13, %v811_v14  ;;  %v3883_v13 = vpop.permute.xlu0 %825 }
 0x103   : > { %v1049_v22 = vpop.f32.mrf.mxu1  ;;  %v860_v38 = vmul.f32 %v811_v14, %v740_v33  ;;  %v1399_v39 = vmul.f32 %v1379_v35, %v3787_v44 }
 0x104   : > { %v1083_v25 = vmul.f32 %v3575_v5, %v1049_v22  ;;  %2009 = vrot.lane.b32.xlu1 %v3834_v26, %s3268_s25  ;;  %1163 = vst.msk [vmem:[#allocation2 + $0x100] sm:$0xff] %vm892_vm1, %v1142_v17  ;;  %1815 = vrot.lane.b32.xlu0 %v1496_v30, %s3274_s20  ;;  %v661_v41 = vpop.f32.mrf.mxu0  ;;  %v1304_v43 = vpop.f32.mrf.mxu2 }
 0x105   : > { %1977 = vrot.lane.b32.xlu2 %v3840_v29, %s3269_s29  ;;  %v884_v42 = vsel %vm3601_vm2, %v860_v38, 0.0  ;;  %v698_v45 = vmul.f32 %v3575_v5, %v661_v41  ;;  %v1423_v48 = vsel %vm3630_vm3, %v1399_v39, 0.0  ;;  %v1340_v47 = vmul.f32 %v3575_v5, %v1304_v43 }
 0x106   : > { %v1103_v32 = vadd.f32 %v3581_v7, %v1083_v25  ;;  %905 = vst.msk [vmem:[#allocation2 + $0x60] sm:$0xff] %vm892_vm1, %v884_v42 }
 0x107   : > { %1444 = vst.msk [vmem:[#allocation2 + $0x198] sm:$0xff] %vm892_vm1, %v1423_v48  ;;  %v721_v44 = vadd.f32 %v3581_v7, %v698_v45  ;;  %v1360_v52 = vadd.f32 %v3581_v7, %v1340_v47 }
 0x108   : > { %v1123_v36 = vmax.f32 %v1103_v32, 0.0  ;;  %v3914_v39 = vpop.permute.xlu1 %845 }
 0x109   : > { %v741_v54 = vmax.f32 %v721_v44, 0.0  ;;  %v1380_v55 = vmax.f32 %v1360_v52, 0.0 }
 0x10a   : > { %v1143_v40 = vmul.f32 %v1123_v36, %v816_v37  ;;  %v3905_v36 = vld [vmem:[#allocation2 + $0x40] sm:$0xff]  ;;  %v3916_v41 = vpop.permute.xlu0 %840 }
 0x10b   : > { %v1052_v46 = vpop.f32.mrf.mxu1  ;;  %v861_v58 = vmul.f32 %v816_v37, %v741_v54  ;;  %v1400_v59 = vmul.f32 %v1380_v55, %v811_v14 }
 0x10c   : > { %v1084_v49 = vmul.f32 %v3575_v5, %v1052_v46  ;;  %1721 = vrot.lane.b32.xlu1 %v1496_v30, %s3270_s1  ;;  %1164 = vst.msk [vmem:[#allocation2 + $0x108] sm:$0xff] %vm892_vm1, %v1143_v40  ;;  %1877 = vrot.lane.b32.xlu0 %v1512_v50, %s3277_s15  ;;  %v664_v61 = vpop.f32.mrf.mxu0  ;;  %v1307_v63 = vpop.f32.mrf.mxu2 }
 0x10d   : > { %1689 = vrot.lane.b32.xlu2 %v1512_v50, %s3272_s23  ;;  %v885_v62 = vsel %vm3601_vm2, %v861_v58, 0.0  ;;  %v699_v0 = vmul.f32 %v3575_v5, %v664_v61  ;;  %v1424_v2 = vsel %vm3630_vm3, %v1400_v59, 0.0  ;;  %v1341_v6 = vmul.f32 %v3575_v5, %v1307_v63  ;;  %v3935_v59 = vld [vmem:[#allocation2 + $0xe2] sm:$0xff] }
 0x10e   : > { %v1104_v53 = vadd.f32 %v3581_v7, %v1084_v49  ;;  %906 = vst.msk [vmem:[#allocation2 + $0x68] sm:$0xff] %vm892_vm1, %v885_v62 }
 0x10f   : > { %v3867_v57 = vpop.permute.xlu2 %1971  ;;  %1445 = vst.msk [vmem:[#allocation2 + $0x1a0] sm:$0xff] %vm892_vm1, %v1424_v2  ;;  %v722_v11 = vadd.f32 %v3581_v7, %v699_v0  ;;  %v1361_v14 = vadd.f32 %v3581_v7, %v1341_v6 }
 0x110   : > { %v1124_v56 = vmax.f32 %v1104_v53, 0.0  ;;  %4844 = vst [vmem:[#allocation4_spill] sm:$0xff] %v3867_v57 }
 0x111   : > { %v742_v16 = vmax.f32 %v722_v11, 0.0  ;;  %v1381_v17 = vmax.f32 %v1361_v14, 0.0 }
 0x112   : > { %v1144_v60 = vmul.f32 %v1124_v56, %v3817_v8 }
 0x113   : > { %v1055_v1 = vpop.f32.mrf.mxu1  ;;  %v862_v20 = vmul.f32 %v3817_v8, %v742_v16  ;;  %v1401_v21 = vmul.f32 %v1381_v17, %v816_v37 }
 0x114   : > { %v1085_v9 = vmul.f32 %v3575_v5, %v1055_v1  ;;  %1783 = vrot.lane.b32.xlu1 %v1512_v50, %s3275_s28  ;;  %1165 = vst.msk [vmem:[#allocation2 + $0x110] sm:$0xff] %vm892_vm1, %v1144_v60  ;;  %2041 = vrot.lane.b32.xlu0 %v1555_v12, %s3271_s22  ;;  %v667_v23 = vpop.f32.mrf.mxu0  ;;  %v1310_v25 = vpop.f32.mrf.mxu2  ;;  %v3937_v60 = vld [vmem:[#allocation2 + $0xe1] sm:$0xff] }
 0x115   : > { %1909 = vrot.lane.b32.xlu2 %v1496_v30, %s3278_s27  ;;  %v886_v24 = vsel %vm3601_vm2, %v862_v20, 0.0  ;;  %v700_v28 = vmul.f32 %v3575_v5, %v667_v23  ;;  %v1425_v30 = vsel %vm3630_vm3, %v1401_v21, 0.0  ;;  %v1342_v32 = vmul.f32 %v3575_v5, %v1310_v25 }
 0x116   : > { %v1105_v15 = vadd.f32 %v3581_v7, %v1085_v9  ;;  %907 = vst.msk [vmem:[#allocation2 + $0x70] sm:$0xff] %vm892_vm1, %v886_v24 }
 0x117   : > { %v3890_v19 = vpop.permute.xlu2 %1683  ;;  %1446 = vst.msk [vmem:[#allocation2 + $0x1a8] sm:$0xff] %vm892_vm1, %v1425_v30  ;;  %v723_v35 = vadd.f32 %v3581_v7, %v700_v28  ;;  %v1362_v37 = vadd.f32 %v3581_v7, %v1342_v32 }
 0x118   : > { %v1125_v18 = vmax.f32 %v1105_v15, 0.0 }
 0x119   : > { %v743_v40 = vmax.f32 %v723_v35, 0.0  ;;  %v1382_v42 = vmax.f32 %v1362_v37, 0.0 }
 0x11a   : > { %v1145_v22 = vmul.f32 %v1125_v18, %v3883_v13 }
 0x11b   : > { %v1058_v31 = vpop.f32.mrf.mxu1  ;;  %v863_v46 = vmul.f32 %v3883_v13, %v743_v40  ;;  %v1402_v48 = vmul.f32 %v1382_v42, %v3817_v8  ;;  %v3931_v8 = vld [vmem:[#allocation2 + $0x42] sm:$0xff] }
 0x11c   : > { %v1086_v33 = vmul.f32 %v3575_v5, %v1058_v31  ;;  %1947 = vrot.lane.b32.xlu1 %v1555_v12, %s3267_s30  ;;  %1166 = vst.msk [vmem:[#allocation2 + $0x118] sm:$0xff] %vm892_vm1, %v1145_v22  ;;  %1753 = vrot.lane.b32.xlu0 %v3905_v36, %s3273_s16  ;;  %v670_v49 = vpop.f32.mrf.mxu0  ;;  %v1313_v50 = vpop.f32.mrf.mxu2 }
 0x11d   : > { %1847 = vrot.lane.b32.xlu2 %v3905_v36, %s3276_s3  ;;  %v887_v44 = vsel %vm3601_vm2, %v863_v46, 0.0  ;;  %v701_v52 = vmul.f32 %v3575_v5, %v670_v49  ;;  %v1426_v54 = vsel %vm3630_vm3, %v1402_v48, 0.0  ;;  %v1343_v55 = vmul.f32 %v3575_v5, %v1313_v50  ;;  %v3222_v46 = vld [vmem:[%s4823_s4] ss:$0 sm:$0xff]  ;;  %v1556_v50 = vld [vmem:[#allocation2 + $0xf0] sm:$0xff] }
 0x11e   : > { %v1106_v38 = vadd.f32 %v3581_v7, %v1086_v33  ;;  %908 = vst.msk [vmem:[#allocation2 + $0x78] sm:$0xff] %vm892_vm1, %v887_v44  ;;  %v3950_v2 = vpop.permute.xlu0 %1939 }
 0x11f   : > { %v3918_v45 = vpop.permute.xlu2 %2005  ;;  %1447 = vst.msk [vmem:[#allocation2 + $0x1b0] sm:$0xff] %vm892_vm1, %v1426_v54  ;;  %v724_v58 = vadd.f32 %v3581_v7, %v701_v52  ;;  %v1363_v61 = vadd.f32 %v3581_v7, %v1343_v55  ;;  %v3223_v52 = vld [vmem:[%s4824_s5] ss:$0 sm:$0xff] }
 0x120   : > { %v1126_v43 = vmax.f32 %v1106_v38, 0.0  ;;  %4846 = vst [vmem:[#allocation6_spill] sm:$0xff] %v3950_v2 }
 0x121   : > { %v744_v63 = vmax.f32 %v724_v58, 0.0  ;;  %v1383_v1 = vmax.f32 %v1363_v61, 0.0 }
 0x122   : > { %v1146_v47 = vmul.f32 %v1126_v43, %v3878_v10 }
 0x123   : > { %v1061_v53 = vpop.f32.mrf.mxu1  ;;  %v864_v11 = vmul.f32 %v3878_v10, %v744_v63  ;;  %v1403_v12 = vmul.f32 %v1383_v1, %v3883_v13  ;;  %v1513_v13 = vld [vmem:[#allocation2 + $0x41] sm:$0xff] }
 0x124   : > { %v1087_v56 = vmul.f32 %v3575_v5, %v1061_v53  ;;  %1817 = vrot.lane.b32.xlu1 %v3931_v8, %s3274_s20  ;;  %1167 = vst.msk [vmem:[#allocation2 + $0x120] sm:$0xff] %vm892_vm1, %v1146_v47  ;;  %1979 = vrot.lane.b32.xlu0 %v3937_v60, %s3269_s29  ;;  %v673_v15 = vpop.f32.mrf.mxu0  ;;  %v1316_v17 = vpop.f32.mrf.mxu2 }
 0x125   : > { %2011 = vrot.lane.b32.xlu2 %v3935_v59, %s3268_s25  ;;  %v888_v16 = vsel %vm3601_vm2, %v864_v11, 0.0  ;;  %v702_v18 = vmul.f32 %v3575_v5, %v673_v15  ;;  %v1427_v21 = vsel %vm3630_vm3, %v1403_v12, 0.0  ;;  %v1344_v22 = vmul.f32 %v3575_v5, %v1316_v17 }
 0x126   : > { %v1107_v62 = vadd.f32 %v3581_v7, %v1087_v56  ;;  %v3948_v0 = vpop.permute.xlu1 %2003  ;;  %909 = vst.msk [vmem:[#allocation2 + $0x80] sm:$0xff] %vm892_vm1, %v888_v16 }
 0x127   : > { %4845 = vst [vmem:[#allocation5_spill] sm:$0xff] %v3948_v0  ;;  %v3952_v9 = vpop.permute.xlu2 %1717  ;;  %v725_v24 = vadd.f32 %v3581_v7, %v702_v18  ;;  %v1364_v25 = vadd.f32 %v3581_v7, %v1344_v22 }
 0x128   : > { %v1127_v6 = vmax.f32 %v1107_v62, 0.0  ;;  %1448 = vst.msk [vmem:[#allocation2 + $0x1b8] sm:$0xff] %vm892_vm1, %v1427_v21 }
 0x129   : > { %v745_v31 = vmax.f32 %v725_v24, 0.0  ;;  %v1384_v30 = vmax.f32 %v1364_v25, 0.0 }
 0x12a   : > { %v1147_v14 = vmul.f32 %v1127_v6, %v3848_v34 }
 0x12b   : > { %v1064_v20 = vpop.f32.mrf.mxu1  ;;  %v865_v37 = vmul.f32 %v3848_v34, %v745_v31  ;;  %v1404_v38 = vmul.f32 %v1384_v30, %v3878_v10 }
 0x12c   : > { %v1088_v23 = vmul.f32 %v3575_v5, %v1064_v20  ;;  %1879 = vrot.lane.b32.xlu1 %v1513_v13, %s3277_s15  ;;  %1168 = vst.msk [vmem:[#allocation2 + $0x128] sm:$0xff] %vm892_vm1, %v1147_v14  ;;  %1691 = vrot.lane.b32.xlu0 %v1513_v13, %s3272_s23  ;;  %v676_v40 = vpop.f32.mrf.mxu0  ;;  %v1319_v43 = vpop.f32.mrf.mxu2  ;;  %v4014_v20 = vld [vmem:[#allocation2 + $0x50] sm:$0xff] }
 0x12d   : > { %1723 = vrot.lane.b32.xlu2 %v3931_v8, %s3270_s1  ;;  %v889_v42 = vsel %vm3601_vm2, %v865_v37, 0.0  ;;  %v703_v48 = vmul.f32 %v3222_v46, %v676_v40  ;;  %v1428_v49 = vsel %vm3630_vm3, %v1404_v38, 0.0  ;;  %v1345_v44 = vmul.f32 %v3222_v46, %v1319_v43  ;;  %v4039_v40 = vld [vmem:[#allocation2 + $0xf2] sm:$0xff] }
 0x12e   : > { %v1108_v28 = vadd.f32 %v3581_v7, %v1088_v23  ;;  %v3974_v5 = vpop.permute.xlu1 %1715  ;;  %v3976_v33 = vpop.permute.xlu0 %2035  ;;  %910 = vst.msk [vmem:[#allocation2 + $0x88] sm:$0xff] %vm892_vm1, %v889_v42 }
 0x12f   : > { %4847 = vst [vmem:[#allocation7_spill] sm:$0xff] %v3976_v33  ;;  %v3978_v35 = vpop.permute.xlu2 %1779  ;;  %v726_v53 = vadd.f32 %v3223_v52, %v703_v48  ;;  %v1365_v54 = vadd.f32 %v3223_v52, %v1345_v44  ;;  %v1514_v44 = vld [vmem:[#allocation2 + $0x51] sm:$0xff] }
 0x130   : > { %v1128_v32 = vmax.f32 %v1108_v28, 0.0  ;;  %1449 = vst.msk [vmem:[#allocation2 + $0x1c0] sm:$0xff] %vm892_vm1, %v1428_v49 }
 0x131   : > { %v746_v56 = vmax.f32 %v726_v53, 0.0  ;;  %v1385_v61 = vmax.f32 %v1365_v54, 0.0  ;;  %v1557_v53 = vld [vmem:[#allocation2 + $0x100] sm:$0xff] }
 0x132   : > { %v1148_v7 = vmul.f32 %v1128_v32, %v3916_v41 }
 0x133   : > { %v1067_v47 = vpop.f32.mrf.mxu1  ;;  %v866_v6 = vmul.f32 %v3916_v41, %v746_v56  ;;  %v1405_v11 = vmul.f32 %v1385_v61, %v3848_v34 }
 0x134   : > { %v1089_v10 = vmul.f32 %v3222_v46, %v1067_v47  ;;  %2043 = vrot.lane.b32.xlu1 %v1556_v50, %s3271_s22  ;;  %1169 = vst.msk [vmem:[#allocation2 + $0x130] sm:$0xff] %vm892_vm1, %v1148_v7  ;;  %1911 = vrot.lane.b32.xlu0 %v3931_v8, %s3278_s27  ;;  %v679_v14 = vpop.f32.mrf.mxu0  ;;  %v1322_v8 = vpop.f32.mrf.mxu2  ;;  %v4036_v7 = vld [vmem:[#allocation2 + $0xf1] sm:$0xff] }
 0x135   : > { %1785 = vrot.lane.b32.xlu2 %v1513_v13, %s3275_s28  ;;  %v890_v15 = vsel %vm3601_vm2, %v866_v6, 0.0  ;;  %v704_v16 = vmul.f32 %v3222_v46, %v679_v14  ;;  %v1429_v17 = vsel %vm3630_vm3, %v1405_v11, 0.0  ;;  %v1346_v18 = vmul.f32 %v3222_v46, %v1322_v8  ;;  %4849 = vst [vmem:[#allocation9_spill] sm:$0xff] %v4036_v7  ;;  %v4087_v6 = vld [vmem:[#allocation2 + $0x102] sm:$0xff] }
 0x136   : > { %v1109_v55 = vadd.f32 %v3223_v52, %v1089_v10  ;;  %v4000_v58 = vpop.permute.xlu1 %1941  ;;  %v4002_v63 = vpop.permute.xlu0 %1747  ;;  %911 = vst.msk [vmem:[#allocation2 + $0x90] sm:$0xff] %vm892_vm1, %v890_v15  ;;  %v4091_v11 = vld [vmem:[#allocation2 + $0x101] sm:$0xff] }
 0x137   : > { %v4004_v1 = vpop.permute.xlu2 %1943  ;;  %1450 = vst.msk [vmem:[#allocation2 + $0x1c8] sm:$0xff] %vm892_vm1, %v1429_v17  ;;  %v727_v21 = vadd.f32 %v3223_v52, %v704_v16  ;;  %v1366_v34 = vadd.f32 %v3223_v52, %v1346_v18  ;;  %v1515_v16 = vld [vmem:[#allocation2 + $0x61] sm:$0xff] }
 0x138   : > { %v1129_v62 = vmax.f32 %v1109_v55, 0.0  ;;  %4848 = vst [vmem:[#allocation8_spill] sm:$0xff] %v4004_v1  ;;  %v4074_v55 = vld [vmem:[#allocation2 + $0x60] sm:$0xff] }
 0x139   : > { %v747_v22 = vmax.f32 %v727_v21, 0.0  ;;  %v1386_v13 = vmax.f32 %v1366_v34, 0.0  ;;  %4854 = vst [vmem:[#allocation14_spill] sm:$0xff] %v4087_v6  ;;  %v4112_v34 = vld [vmem:[#allocation2 + $0x70] sm:$0xff]  ;;  %v1493_v33 = vld [vmem:[#allocation2 + $0x81] sm:$0xff] }
 0x13a   : > { %v1149_v12 = vmul.f32 %v1129_v62, %v3914_v39 }
 0x13b   : > { %v867_v28 = vmul.f32 %v3914_v39, %v747_v22  ;;  %v1406_v31 = vmul.f32 %v1386_v13, %v3916_v41  ;;  %v1498_v41 = vld [vmem:[#allocation2 + $0x52] sm:$0xff] }
 0x13c   : > { %1755 = vrot.lane.b32.xlu1 %v4014_v20, %s3273_s16  ;;  %1170 = vst.msk [vmem:[#allocation2 + $0x138] sm:$0xff] %vm892_vm1, %v1149_v12  ;;  %1849 = vrot.lane.b32.xlu0 %v4014_v20, %s3276_s3  ;;  %v1325_v32 = vpop.f32.mrf.mxu2  ;;  %v1499_v12 = vld [vmem:[#allocation2 + $0x62] sm:$0xff] }
 0x13d   : > { %1949 = vrot.lane.b32.xlu2 %v1556_v50, %s3267_s30  ;;  %v891_v30 = vsel %vm3601_vm2, %v867_v28, 0.0  ;;  %v1430_v37 = vsel %vm3630_vm3, %v1406_v31, 0.0  ;;  %v1347_v38 = vmul.f32 %v3222_v46, %v1325_v32  ;;  %v1534_v31 = vld [vmem:[#allocation2 + $0x110] sm:$0xff]  ;;  %vm2768_vm2 = vcmask 1043456  }
 0x13e   : > { %v4023_v23 = vpop.permute.xlu1 %1811  ;;  %v4025_v24 = vpop.permute.xlu0 %1973  ;;  %912 = vst.msk [vmem:[#allocation2 + $0x98] sm:$0xff] %vm892_vm1, %v891_v30  ;;  %v4124_v30 = vld [vmem:[#allocation2 + $0x111] sm:$0xff] }
 0x13f   : > { %v4027_v25 = vpop.permute.xlu2 %1813  ;;  %1451 = vst.msk [vmem:[#allocation2 + $0x1d0] sm:$0xff] %vm892_vm1, %v1430_v37  ;;  %v1367_v42 = vadd.f32 %v3223_v52, %v1347_v38 }
 0x141   : > { %v1387_v43 = vmax.f32 %v1367_v42, 0.0  ;;  %v4136_v42 = vld [vmem:[#allocation2 + $0x112] sm:$0xff] }
 0x142   : > { %4859 = vst [vmem:[#allocation19_spill] sm:$0xff] %v4136_v42 }
 0x143   : > { %v1407_v47 = vmul.f32 %v1387_v43, %v3914_v39  ;;  %v1468_v43 = vld [vmem:[#allocation2 + $0x71] sm:$0xff] }
 0x144   : > { %1981 = vrot.lane.b32.xlu1 %v4036_v7, %s3269_s29  ;;  %2013 = vrot.lane.b32.xlu0 %v4039_v40, %s3268_s25 }
 0x145   : > { %1819 = vrot.lane.b32.xlu2 %v1498_v41, %s3274_s20  ;;  %v1431_v49 = vsel %vm3630_vm3, %v1407_v47, 0.0  ;;  %vm2279_vm3 = vcmask 490496  }
 0x146   : > { %v4046_v27 = vpop.permute.xlu1 %2037  ;;  %v4048_v46 = vpop.permute.xlu0 %1685  ;;  %1452 = vst.msk [vmem:[#allocation2 + $0x1d8] sm:$0xff] %vm892_vm1, %v1431_v49 }
 0x147   : > { %v4050_v48 = vpop.permute.xlu2 %1875 }
 0x14c   : > { %1693 = vrot.lane.b32.xlu1 %v1514_v44, %s3272_s23  ;;  %1725 = vrot.lane.b32.xlu0 %v1498_v41, %s3270_s1 }
 0x14d   : > { %1881 = vrot.lane.b32.xlu2 %v1514_v44, %s3277_s15 }
 0x14e   : > { %v4059_v10 = vpop.permute.xlu1 %1749  ;;  %v4061_v50 = vpop.permute.xlu0 %1843 }
 0x14f   : > { %v4063_v52 = vpop.permute.xlu2 %2039 }
 0x150   : > { %4850 = vst [vmem:[#allocation10_spill] sm:$0xff] %v4063_v52 }
 0x154   : > { %1913 = vrot.lane.b32.xlu1 %v1498_v41, %s3278_s27  ;;  %1787 = vrot.lane.b32.xlu0 %v1514_v44, %s3275_s28  ;;  %v1500_v41 = vld [vmem:[#allocation2 + $0x72] sm:$0xff] }
 0x155   : > { %2045 = vrot.lane.b32.xlu2 %v1557_v53, %s3271_s22 }
 0x156   : > { %v4068_v51 = vpop.permute.xlu1 %1975  ;;  %v4070_v39 = vpop.permute.xlu0 %2007 }
 0x157   : > { %4851 = vst [vmem:[#allocation11_spill] sm:$0xff] %v4068_v51  ;;  %v4072_v54 = vpop.permute.xlu2 %1751 }
 0x158   : > { %4852 = vst [vmem:[#allocation12_spill] sm:$0xff] %v4070_v39 }
 0x159   : > { %4853 = vst [vmem:[#allocation13_spill] sm:$0xff] %v4072_v54 }
 0x15c   : > { %1851 = vrot.lane.b32.xlu1 %v4074_v55, %s3276_s3  ;;  %1951 = vrot.lane.b32.xlu0 %v1557_v53, %s3267_s30 }
 0x15d   : > { %1757 = vrot.lane.b32.xlu2 %v4074_v55, %s3273_s16 }
 0x15e   : > { %v4081_v56 = vpop.permute.xlu1 %1687  ;;  %v4083_v61 = vpop.permute.xlu0 %1719 }
 0x15f   : > { %v4085_v62 = vpop.permute.xlu2 %1977 }
 0x164   : > { %2015 = vrot.lane.b32.xlu1 %v4087_v6, %s3268_s25  ;;  %1821 = vrot.lane.b32.xlu0 %v1499_v12, %s3274_s20 }
 0x165   : > { %1983 = vrot.lane.b32.xlu2 %v4091_v11, %s3269_s29 }
 0x166   : > { %v4096_v14 = vpop.permute.xlu1 %1907  ;;  %v4098_v15 = vpop.permute.xlu0 %1781 }
 0x167   : > { %4855 = vst [vmem:[#allocation15_spill] sm:$0xff] %v4096_v14  ;;  %v4100_v8 = vpop.permute.xlu2 %1689  ;;  %v1642_v14 = vld [vmem:[#allocation2 + $0x152] sm:$0xff] }
 0x16c   : > { %1727 = vrot.lane.b32.xlu1 %v1499_v12, %s3270_s1  ;;  %1883 = vrot.lane.b32.xlu0 %v1515_v16, %s3277_s15 }
 0x16d   : > { %1695 = vrot.lane.b32.xlu2 %v1515_v16, %s3272_s23 }
 0x16e   : > { %v4105_v17 = vpop.permute.xlu1 %1845  ;;  %v4107_v18 = vpop.permute.xlu0 %1945 }
 0x16f   : > { %v4109_v21 = vpop.permute.xlu2 %1909 }
 0x174   : > { %1789 = vrot.lane.b32.xlu1 %v1515_v16, %s3275_s28  ;;  %1759 = vrot.lane.b32.xlu0 %v4112_v34, %s3273_s16 }
 0x175   : > { %1915 = vrot.lane.b32.xlu2 %v1499_v12, %s3278_s27 }
 0x176   : > { %v4117_v22 = vpop.permute.xlu1 %2009  ;;  %v4119_v13 = vpop.permute.xlu0 %1815 }
 0x177   : > { %4856 = vst [vmem:[#allocation16_spill] sm:$0xff] %v4119_v13  ;;  %v4121_v28 = vpop.permute.xlu2 %1847 }
 0x178   : > { %4857 = vst [vmem:[#allocation17_spill] sm:$0xff] %v4121_v28  ;;  %v1510_v28 = vld [vmem:[#allocation2 + $0x90] sm:$0xff] }
 0x17c   : > { %1953 = vrot.lane.b32.xlu1 %v1534_v31, %s3267_s30  ;;  %1985 = vrot.lane.b32.xlu0 %v4124_v30, %s3269_s29 }
 0x17d   : > { %1853 = vrot.lane.b32.xlu2 %v4112_v34, %s3276_s3 }
 0x17e   : > { %v4130_v32 = vpop.permute.xlu1 %1721  ;;  %v4132_v37 = vpop.permute.xlu0 %1877 }
 0x17f   : > { %v4134_v38 = vpop.permute.xlu2 %2011 }
 0x180   : > { %4858 = vst [vmem:[#allocation18_spill] sm:$0xff] %v4134_v38  ;;  %v1560_v38 = vld [vmem:[#allocation2 + $0xb1] sm:$0xff] }
 0x184   : > { %1823 = vrot.lane.b32.xlu1 %v1500_v41, %s3274_s20  ;;  %1697 = vrot.lane.b32.xlu0 %v1468_v43, %s3272_s23 }
 0x185   : > { %2017 = vrot.lane.b32.xlu2 %v4136_v42, %s3268_s25  ;;  %v1509_v42 = vld [vmem:[#allocation2 + $0x80] sm:$0xff]  ;;  %s3280_s25 = smov 56  }
 0x186   : > { %v4142_v47 = vpop.permute.xlu1 %1783  ;;  %v4144_v49 = vpop.permute.xlu0 %2041 }
 0x187   : > { %4860 = vst [vmem:[#allocation20_spill] sm:$0xff] %v4142_v47  ;;  %v4146_v44 = vpop.permute.xlu2 %1723 }
 0x18c   : > { %1885 = vrot.lane.b32.xlu1 %v1468_v43, %s3277_s15  ;;  %1917 = vrot.lane.b32.xlu0 %v1500_v41, %s3278_s27 }
 0x18d   : > { %1729 = vrot.lane.b32.xlu2 %v1500_v41, %s3270_s1  ;;  %v1525_v41 = vld [vmem:[#allocation2 + $0x82] sm:$0xff] }
 0x18e   : > { %v4151_v53 = vpop.permute.xlu1 %1947  ;;  %v4153_v12 = vpop.permute.xlu0 %1753 }
 0x18f   : > { %v4155_v16 = vpop.permute.xlu2 %1785 }
 0x194   : > { %1761 = vrot.lane.b32.xlu1 %v1509_v42, %s3273_s16  ;;  %1855 = vrot.lane.b32.xlu0 %v1509_v42, %s3276_s3 }
 0x195   : > { %1791 = vrot.lane.b32.xlu2 %v1468_v43, %s3275_s28 }
 0x196   : > { %v4160_v52 = vpop.permute.xlu1 %1817  ;;  %v4162_v39 = vpop.permute.xlu0 %1979 }
 0x197   : > { %4861 = vst [vmem:[#allocation21_spill] sm:$0xff] %v4162_v39  ;;  %v4164_v51 = vpop.permute.xlu2 %1949 }
 0x19c   : > { %1919 = vrot.lane.b32.xlu1 %v1525_v41, %s3278_s27  ;;  %1793 = vrot.lane.b32.xlu0 %v1493_v33, %s3275_s28 }
 0x19d   : > { %1825 = vrot.lane.b32.xlu2 %v1525_v41, %s3274_s20  ;;  %v4180_v41 = vld [vmem:[#allocation2 + $0x120] sm:$0xff] }
 0x19e   : > { %v4169_v1 = vpop.permute.xlu1 %1879  ;;  %v1692_v0 = vpop.permute.xlu0 %1691  ;;  %4865 = vst [vmem:[#allocation25_spill] sm:$0xff] %v4180_v41 }
 0x19f   : > { %4862 = vst [vmem:[#allocation22_spill] sm:$0xff] %v4169_v1  ;;  %v1820_v43 = vpop.permute.xlu2 %1819  ;;  %v1518_v1 = vld [vmem:[#allocation2 + $0x91] sm:$0xff] }
 0x1a4   : > { %1857 = vrot.lane.b32.xlu1 %v1510_v28, %s3276_s3  ;;  %2047 = vrot.lane.b32.xlu0 %v1534_v31, %s3271_s22 }
 0x1a5   : > { %1887 = vrot.lane.b32.xlu2 %v1493_v33, %s3277_s15 }
 0x1a6   : > { %v4174_v42 = vpop.permute.xlu1 %2043  ;;  %v4176_v57 = vpop.permute.xlu0 %1911 }
 0x1a7   : > { %4863 = vst [vmem:[#allocation23_spill] sm:$0xff] %v4174_v42  ;;  %v4178_v13 = vpop.permute.xlu2 %1881 }
 0x1a8   : > { %4864 = vst [vmem:[#allocation24_spill] sm:$0xff] %v4176_v57  ;;  %v1526_v57 = vld [vmem:[#allocation2 + $0x92] sm:$0xff] }
 0x1ac   : > { %2049 = vrot.lane.b32.xlu1 %v4180_v41, %s3271_s22  ;;  %1889 = vrot.lane.b32.xlu0 %v1518_v1, %s3277_s15  ;;  %s3281_s22 = smov 60  }
 0x1ad   : > { %2067 = vrot.lane.b32.xlu2 %v1560_v38, %s3279_s24 }
 0x1ae   : > { %v1756_v33 = vpop.permute.xlu1 %1755  ;;  %v4185_v28 = vpop.permute.xlu0 %1849 }
 0x1af   : > { %v4187_v31 = vpop.permute.xlu2 %2045 }
 0x1b0   : > { %4866 = vst [vmem:[#allocation26_spill] sm:$0xff] %v4187_v31  ;;  %v1568_v31 = vld [vmem:[#allocation2 + $0xb2] sm:$0xff] }
 0x1b4   : > { %2071 = vrot.lane.b32.xlu1 %v3840_v29, %s3279_s24  ;;  %2069 = vrot.lane.b32.xlu0 %v3757_v4, %s3279_s24  ;;  %v4204_v4 = vld [vmem:[#allocation2 + $0x121] sm:$0xff] }
 0x1b5   : > { %1921 = vrot.lane.b32.xlu2 %v1526_v57, %s3278_s27  ;;  %4868 = vst [vmem:[#allocation28_spill] sm:$0xff] %v4204_v4  ;;  %v2159_v57 = vsel %vm892_vm1, %v3905_v36, %v1692_v0 }
 0x1b6   : > { %v4192_v42 = vpop.permute.xlu1 %1981  ;;  %v4194_v41 = vpop.permute.xlu0 %2013 }
 0x1b7   : > { %4867 = vst [vmem:[#allocation27_spill] sm:$0xff] %v4194_v41  ;;  %v4196_v2 = vpop.permute.xlu2 %1757  ;;  %v2168_v41 = vsel %vm2163_vm4, %v2159_v57, %v4146_v44 }
 0x1bc   : > { %2077 = vrot.lane.b32.xlu1 %v4091_v11, %s3279_s24  ;;  %2075 = vrot.lane.b32.xlu0 %v4036_v7, %s3279_s24 }
 0x1bd   : > { %2073 = vrot.lane.b32.xlu2 %v3937_v60, %s3279_s24 }
 0x1be   : > { %v1694_v1 = vpop.permute.xlu1 %1693  ;;  %v1726_v38 = vpop.permute.xlu0 %1725 }
 0x1bf   : > { %v4201_v29 = vpop.permute.xlu2 %1983 }
 0x1c4   : > { %2099 = vrot.lane.b32.xlu1 %v1568_v31, %s3280_s25  ;;  %2081 = vrot.lane.b32.xlu0 %v4204_v4, %s3279_s24  ;;  %v2177_v31 = vsel %vm2172_vm5, %v2168_v41, %v1756_v33 }
 0x1c5   : > { %2079 = vrot.lane.b32.xlu2 %v4124_v30, %s3279_s24  ;;  %v1569_v30 = vld [vmem:[#allocation2 + $0xc2] sm:$0xff] }
 0x1c6   : > { %v4210_v60 = vpop.permute.xlu1 %1913  ;;  %v1788_v11 = vpop.permute.xlu0 %1787 }
 0x1c7   : > { %v1696_v7 = vpop.permute.xlu2 %1695  ;;  %v2185_v47 = vsel %vm544_vm0, %v2177_v31, %v1788_v11  ;;  %v1617_v31 = vld [vmem:[#allocation2 + $0x142] sm:$0xff] }
 0x1c8   : > { %v2194_v36 = vsel %vm2189_vm6, %v2185_v47, %v1820_v43  ;;  %v1601_v47 = vld [vmem:[#allocation2 + $0x140] sm:$0xff] }
 0x1c9   : > { %v1609_v43 = vld [vmem:[#allocation2 + $0x141] sm:$0xff] }
 0x1cc   : > { %2105 = vrot.lane.b32.xlu1 %v3935_v59, %s3280_s25  ;;  %2103 = vrot.lane.b32.xlu0 %v3834_v26, %s3280_s25 }
 0x1cd   : > { %2101 = vrot.lane.b32.xlu2 %v1569_v30, %s3280_s25 }
 0x1ce   : > { %v1852_v0 = vpop.permute.xlu1 %1851  ;;  %v4222_v4 = vpop.permute.xlu0 %1951 }
 0x1cf   : > { %v2203_v44 = vsel %vm2198_vm7, %v2194_v36, %v1852_v0  ;;  %v1916_v41 = vpop.permute.xlu2 %1915 }
 0x1d4   : > { %2296 = vrot.lane.b32.xlu1 %v1569_v30, %s3272_s23  ;;  %2109 = vrot.lane.b32.xlu0 %v4087_v6, %s3280_s25  ;;  %v2161_v30 = vsel %vm892_vm1, %v4074_v55, %v1696_v7  ;;  %v1626_v7 = vld [vmem:[#allocation2 + $0x150] sm:$0xff] }
 0x1d5   : > { %2107 = vrot.lane.b32.xlu2 %v4039_v40, %s3280_s25  ;;  %v1634_v55 = vld [vmem:[#allocation2 + $0x151] sm:$0xff] }
 0x1d6   : > { %v4230_v33 = vpop.permute.xlu1 %2015  ;;  %v1822_v57 = vpop.permute.xlu0 %1821 }
 0x1d7   : > { %v1854_v11 = vpop.permute.xlu2 %1853 }
 0x1dc   : > { %2392 = vrot.lane.b32.xlu1 %v1617_v31, %s3275_s28  ;;  %2360 = vrot.lane.b32.xlu0 %v1609_v43, %s3273_s16  ;;  %v2160_v31 = vsel %vm892_vm1, %v4014_v20, %v1694_v1 }
 0x1dd   : > { %2328 = vrot.lane.b32.xlu2 %v1601_v47, %s3270_s1  ;;  %v2169_v43 = vsel %vm2163_vm4, %v2160_v31, %v1726_v38  ;;  %v1651_v31 = vld [vmem:[#allocation2 + $0x160] sm:$0xff] }
 0x1de   : > { %v1728_v36 = vpop.permute.xlu1 %1727  ;;  %v1884_v0 = vpop.permute.xlu0 %1883 }
 0x1df   : > { %v2170_v6 = vsel %vm2163_vm4, %v2161_v30, %v1728_v36  ;;  %v4238_v39 = vpop.permute.xlu2 %2017  ;;  %v2212_v54 = vsel %vm2207_vm8, %v2203_v44, %v1884_v0  ;;  %v2178_v30 = vsel %vm2172_vm5, %v2169_v43, %v4196_v2  ;;  %v4256_v0 = vld [vmem:[#allocation2 + $0x161] sm:$0xff] }
 0x1e0   : > { %v4244_v47 = vsel %vm2216_vm9, %v2212_v54, %v1916_v41 }
 0x1e4   : > { %2488 = vrot.lane.b32.xlu1 %v1642_v14, %s3277_s15  ;;  %2456 = vrot.lane.b32.xlu0 %v1634_v55, %s3276_s3 }
 0x1e5   : > { %2424 = vrot.lane.b32.xlu2 %v1626_v7, %s3274_s20 }
 0x1e6   : > { %v1790_v20 = vpop.permute.xlu1 %1789  ;;  %v1760_v44 = vpop.permute.xlu0 %1759 }
 0x1e7   : > { %v2186_v1 = vsel %vm544_vm0, %v2178_v30, %v1790_v20  ;;  %v1730_v54 = vpop.permute.xlu2 %1729  ;;  %v2179_v38 = vsel %vm2172_vm5, %v2170_v6, %v1760_v44 }
 0x1e8   : > { %v2195_v41 = vsel %vm2189_vm6, %v2186_v1, %v1822_v57 }
 0x1e9   : > { %v2204_v36 = vsel %vm2198_vm7, %v2195_v41, %v1854_v11  ;;  %v1667_v11 = vld [vmem:[#allocation2 + $0x162] sm:$0xff] }
 0x1ec   : > { %2552 = vrot.lane.b32.xlu1 %v4256_v0, %s3267_s30  ;;  %2298 = vrot.lane.b32.xlu0 %v3834_v26, %s3272_s23 }
 0x1ed   : > { %2520 = vrot.lane.b32.xlu2 %v1651_v31, %s3278_s27 }
 0x1ee   : > { %v4263_v2 = vpop.permute.xlu1 %1953  ;;  %v4265_v43 = vpop.permute.xlu0 %1985 }
 0x1ef   : > { %v1792_v57 = vpop.permute.xlu2 %1791 }
 0x1f0   : > { %v2187_v6 = vsel %vm544_vm0, %v2179_v38, %v1792_v57 }
 0x1f4   : > { %2362 = vrot.lane.b32.xlu1 %v1634_v55, %s3273_s16  ;;  %2584 = vrot.lane.b32.xlu0 %v1667_v11, %s3269_s29 }
 0x1f5   : > { %2330 = vrot.lane.b32.xlu2 %v1626_v7, %s3270_s1 }
 0x1f6   : > { %v1824_v30 = vpop.permute.xlu1 %1823  ;;  %v1698_v1 = vpop.permute.xlu0 %1697 }
 0x1f7   : > { %v2196_v20 = vsel %vm2189_vm6, %v2187_v6, %v1824_v30  ;;  %v1826_v44 = vpop.permute.xlu2 %1825  ;;  %v2162_v26 = vsel %vm892_vm1, %v4112_v34, %v1698_v1  ;;  %v2158_v6 = vsel %vm892_vm1, %v3811_v3, %v4100_v8  ;;  %v4292_v30 = vld [vmem:[#allocation2 + $0x170] sm:$0xff] }
 0x1f8   : > { %v2171_v41 = vsel %vm2163_vm4, %v2162_v26, %v1730_v54  ;;  %v2167_v54 = vsel %vm2163_vm4, %v2158_v6, %v4130_v32 }
 0x1fc   : > { %2458 = vrot.lane.b32.xlu1 %v4256_v0, %s3276_s3  ;;  %2426 = vrot.lane.b32.xlu0 %v1651_v31, %s3274_s20 }
 0x1fd   : > { %2394 = vrot.lane.b32.xlu2 %v1642_v14, %s3275_s28  ;;  %v2176_v14 = vsel %vm2172_vm5, %v2167_v54, %v4153_v12 }
 0x1fe   : > { %v1886_v7 = vpop.permute.xlu1 %1885  ;;  %v1918_v38 = vpop.permute.xlu0 %1917 }
 0x1ff   : > { %v2213_v55 = vsel %vm2207_vm8, %v2204_v36, %v1886_v7  ;;  %v1888_v57 = vpop.permute.xlu2 %1887  ;;  %v2184_v36 = vsel %vm544_vm0, %v2176_v14, %v4155_v16 }
 0x200   : > { %v4284_v34 = vsel %vm2216_vm9, %v2213_v55, %v1918_v38  ;;  %v2193_v3 = vsel %vm2189_vm6, %v2184_v36, %v4160_v52  ;;  %v4312_v52 = vld [vmem:[#allocation2 + $0x172] sm:$0xff] }
 0x201   : > { %v2202_v32 = vsel %vm2198_vm7, %v2193_v3, %v4185_v28  ;;  %v4316_v28 = vld [vmem:[#allocation2 + $0x171] sm:$0xff] }
 0x202   : > { %v2211_v7 = vsel %vm2207_vm8, %v2202_v32, %v4178_v13 }
 0x203   : > { %v2220_v55 = vsel %vm2216_vm9, %v2211_v7, %v4210_v60 }
 0x204   : > { %2300 = vrot.lane.b32.xlu1 %v3935_v59, %s3272_s23  ;;  %2522 = vrot.lane.b32.xlu0 %v4292_v30, %s3278_s27  ;;  %v2229_v13 = vsel %vm2225_vm10, %v2220_v55, %v4107_v18 }
 0x205   : > { %2490 = vrot.lane.b32.xlu2 %v1667_v11, %s3277_s15 }
 0x206   : > { %v1762_v8 = vpop.permute.xlu1 %1761  ;;  %v1856_v12 = vpop.permute.xlu0 %1855 }
 0x207   : > { %v2180_v59 = vsel %vm2172_vm5, %v2171_v41, %v1762_v8  ;;  %v4304_v1 = vpop.permute.xlu2 %2067  ;;  %v2205_v26 = vsel %vm2198_vm7, %v2196_v20, %v1856_v12  ;;  %v3224_v41 = vld [vmem:[#allocation2 + $0x10] sm:$0xff]  ;;  %v1453_v12 = vld [vmem:[#allocation2] sm:$0xff] }
 0x208   : > { %v2214_v16 = vsel %vm2207_vm8, %v2205_v26, %v1888_v57  ;;  %v2156_v38 = vsel %vm892_vm1, %v3224_v41, %v4048_v46 }
 0x209   : > { %v2165_v54 = vsel %vm2163_vm4, %v2156_v38, %v3952_v9 }
 0x20a   : > { %v2174_v3 = vsel %vm2172_vm5, %v2165_v54, %v4059_v10 }
 0x20c   : > { %2586 = vrot.lane.b32.xlu1 %v4312_v52, %s3269_s29  ;;  %2332 = vrot.lane.b32.xlu0 %v1651_v31, %s3270_s1  ;;  %v2238_v31 = vsel %vm2234_vm11, %v2229_v13, %v4085_v62  ;;  %v3225_v13 = vld [vmem:[#allocation2 + $0x20] sm:$0xff] }
 0x20d   : > { %2554 = vrot.lane.b32.xlu2 %v4316_v28, %s3267_s30  ;;  %v2247_v62 = vsel %vm2243_vm12, %v2238_v31, %v4117_v22  ;;  %v4872_v31 = vld [vmem:[#allocation20_spill] sm:$0xff] }
 0x20e   : > { %v1920_v60 = vpop.permute.xlu1 %1919  ;;  %v1794_v57 = vpop.permute.xlu0 %1793  ;;  %v2256_v22 = vsel %vm2252_vm13, %v2247_v62, %v4144_v49 }
 0x20f   : > { %v2223_v20 = vsel %vm2216_vm9, %v2214_v16, %v1920_v60  ;;  %v1922_v6 = vpop.permute.xlu2 %1921  ;;  %v2188_v14 = vsel %vm544_vm0, %v2180_v59, %v1794_v57 }
 0x210   : > { %v2232_v46 = vsel %vm2225_vm10, %v2223_v20, %v4222_v4  ;;  %v2197_v36 = vsel %vm2189_vm6, %v2188_v14, %v1826_v44  ;;  %v2182_v4 = vsel %vm544_vm0, %v2174_v3, %v4098_v15 }
 0x211   : > { %v2241_v18 = vsel %vm2234_vm11, %v2232_v46, %v4201_v29  ;;  %v2191_v10 = vsel %vm2189_vm6, %v2182_v4, %v4027_v25  ;;  %v4870_v46 = vld [vmem:[#allocation13_spill] sm:$0xff]  ;;  %v4875_v4 = vld [vmem:[#allocation18_spill] sm:$0xff] }
 0x212   : > { %v2250_v9 = vsel %vm2243_vm12, %v2241_v18, %v4230_v33  ;;  %v2200_v33 = vsel %vm2198_vm7, %v2191_v10, %v4105_v17  ;;  %v4364_v17 = vld [vmem:[#allocation2 + $0x180] sm:$0xff]  ;;  %v4873_v18 = vld [vmem:[#allocation27_spill] sm:$0xff] }
 0x213   : > { %v4876_v10 = vld [vmem:[#allocation16_spill] sm:$0xff] }
 0x214   : > { %2428 = vrot.lane.b32.xlu1 %v4292_v30, %s3274_s20  ;;  %2396 = vrot.lane.b32.xlu0 %v1667_v11, %s3275_s28 }
 0x215   : > { %2364 = vrot.lane.b32.xlu2 %v4256_v0, %s3273_s16  ;;  %v2209_v0 = vsel %vm2207_vm8, %v2200_v33, %v4132_v37  ;;  %v2155_v37 = vsel %vm892_vm1, %v1453_v12, %v3890_v19  ;;  %v4877_v33 = vld [vmem:[#allocation26_spill] sm:$0xff] }
 0x216   : > { %v1858_v29 = vpop.permute.xlu1 %1857  ;;  %v2048_v15 = vpop.permute.xlu0 %2047  ;;  %v2218_v32 = vsel %vm2216_vm9, %v2209_v0, %v4109_v21  ;;  %v2164_v21 = vsel %vm2163_vm4, %v2155_v37, %v3974_v5  ;;  %v4880_v37 = vld [vmem:[#allocation17_spill] sm:$0xff] }
 0x217   : > { %v2206_v44 = vsel %vm2198_vm7, %v2197_v36, %v1858_v29  ;;  %v2074_v8 = vpop.permute.xlu2 %2073  ;;  %v2259_v11 = vsel %vm2252_vm13, %v2250_v9, %v2048_v15  ;;  %v2227_v49 = vsel %vm2225_vm10, %v2218_v32, %v4000_v58  ;;  %v2173_v7 = vsel %vm2172_vm5, %v2164_v21, %v4002_v63  ;;  %v4874_v36 = vld [vmem:[#allocation6_spill] sm:$0xff]  ;;  %v1669_v9 = vld [vmem:[#allocation2 + $0x182] sm:$0xff] }
 0x218   : > { %v4360_v25 = vsel %vm2261_vm14, %v2256_v22, %v2074_v8  ;;  %v2236_v19 = vsel %vm2234_vm11, %v2227_v49, %v4025_v24  ;;  %v2181_v5 = vsel %vm544_vm0, %v2173_v7, %v3978_v35  ;;  %v2157_v63 = vsel %vm892_vm1, %v3225_v13, %v4081_v56  ;;  %v4399_v24 = vld [vmem:[#allocation2 + $0x181] sm:$0xff] }
 0x219   : > { %v2190_v20 = vsel %vm2189_vm6, %v2181_v5, %v4023_v23  ;;  %v4878_v22 = vld [vmem:[#allocation4_spill] sm:$0xff]  ;;  %v4885_v5 = vld [vmem:[#allocation7_spill] sm:$0xff] }
 0x21a   : > { %v2199_v56 = vsel %vm2198_vm7, %v2190_v20, %v4061_v50 }
 0x21c   : > { %2524 = vrot.lane.b32.xlu1 %v4364_v17, %s3278_s27  ;;  %2492 = vrot.lane.b32.xlu0 %v4312_v52, %s3277_s15 }
 0x21d   : > { %2460 = vrot.lane.b32.xlu2 %v4316_v28, %s3276_s3 }
 0x21e   : > { %v2050_v59 = vpop.permute.xlu1 %2049  ;;  %v1890_v16 = vpop.permute.xlu0 %1889 }
 0x21f   : > { %v2080_v26 = vpop.permute.xlu2 %2079  ;;  %v2215_v41 = vsel %vm2207_vm8, %v2206_v44, %v1890_v16  ;;  %v4882_v16 = vld [vmem:[#allocation24_spill] sm:$0xff] }
 0x220   : > { %v4381_v55 = vsel %vm2261_vm14, %v2259_v11, %v2080_v26  ;;  %v2224_v38 = vsel %vm2216_vm9, %v2215_v41, %v1922_v6  ;;  %v4879_v11 = vld [vmem:[#allocation23_spill] sm:$0xff]  ;;  %v4883_v41 = vld [vmem:[#allocation5_spill] sm:$0xff] }
 0x221   : > { %v2233_v58 = vsel %vm2225_vm10, %v2224_v38, %v4263_v2  ;;  %v2245_v2 = vsel %vm2243_vm12, %v2236_v19, %v3918_v45  ;;  %v2166_v45 = vsel %vm2163_vm4, %v2157_v63, %v4083_v61  ;;  %v4869_v61 = vld [vmem:[#allocation15_spill] sm:$0xff]  ;;  %v4884_v19 = vld [vmem:[#allocation8_spill] sm:$0xff] }
 0x222   : > { %v2242_v60 = vsel %vm2234_vm11, %v2233_v58, %v4265_v43  ;;  %v2231_v43 = vsel %vm2225_vm10, %v4284_v34, %v4164_v51  ;;  %v2254_v51 = vsel %vm2252_vm13, %v2245_v2, %v4046_v27 }
 0x223   : > { %v2251_v35 = vsel %vm2243_vm12, %v2242_v60, %v4238_v39  ;;  %v2230_v39 = vsel %vm2225_vm10, %v4244_v47, %v4151_v53  ;;  %v2240_v57 = vsel %vm2234_vm11, %v2231_v43, %v4192_v42  ;;  %v2175_v53 = vsel %vm2172_vm5, %v2166_v45, %v4870_v46  ;;  %v4871_v47 = vld [vmem:[#allocation21_spill] sm:$0xff] }
 0x224   : > { %2334 = vrot.lane.b32.xlu1 %v4292_v30, %s3270_s1  ;;  %2556 = vrot.lane.b32.xlu0 %v4399_v24, %s3267_s30  ;;  %v2260_v23 = vsel %vm2252_vm13, %v2251_v35, %v2050_v59  ;;  %v2239_v14 = vsel %vm2234_vm11, %v2230_v39, %v4871_v47  ;;  %v2249_v42 = vsel %vm2243_vm12, %v2240_v57, %v4873_v18  ;;  %v4887_v39 = vld [vmem:[#allocation12_spill] sm:$0xff]  ;;  %v1670_v47 = vld [vmem:[#allocation2 + $0x192] sm:$0xff] }
 0x225   : > { %2302 = vrot.lane.b32.xlu2 %v4039_v40, %s3272_s23  ;;  %v2208_v40 = vsel %vm2207_vm8, %v2199_v56, %v4050_v48  ;;  %v2183_v48 = vsel %vm544_vm0, %v2175_v53, %v4872_v31  ;;  %v2248_v62 = vsel %vm2243_vm12, %v2239_v14, %v4875_v4  ;;  %v2258_v15 = vsel %vm2252_vm13, %v2249_v42, %v4877_v33  ;;  %v4886_v56 = vld [vmem:[#allocation11_spill] sm:$0xff]  ;;  %v1655_v42 = vld [vmem:[#allocation2 + $0x1a0] sm:$0xff] }
 0x226   : > { %v2072_v50 = vpop.permute.xlu1 %2071  ;;  %v2070_v34 = vpop.permute.xlu0 %2069  ;;  %v2217_v54 = vsel %vm2216_vm9, %v2208_v40, %v4869_v61  ;;  %v2192_v29 = vsel %vm2189_vm6, %v2183_v48, %v4876_v10  ;;  %v2257_v32 = vsel %vm2252_vm13, %v2248_v62, %v4879_v11  ;;  %v4889_v40 = vld [vmem:[#allocation10_spill] sm:$0xff]  ;;  %v1671_v62 = vld [vmem:[#allocation2 + $0x1a2] sm:$0xff] }
 0x227   : > { %v2102_v30 = vpop.permute.xlu2 %2101  ;;  %v2263_v6 = vsel %vm2261_vm14, %v2254_v51, %v2070_v34  ;;  %v2226_v3 = vsel %vm2225_vm10, %v2217_v54, %v4874_v36  ;;  %v2201_v49 = vsel %vm2198_vm7, %v2192_v29, %v4880_v37  ;;  %v1662_v51 = vld [vmem:[#allocation2 + $0x191] sm:$0xff] }
 0x228   : > { %v4434_v27 = vsel %vm2270_vm15, %v2263_v6, %v2102_v30  ;;  %v2235_v8 = vsel %vm2234_vm11, %v2226_v3, %v4878_v22  ;;  %v1654_v34 = vld [vmem:[#allocation2 + $0x190] sm:$0xff] }
 0x229   : > { %v2244_v38 = vsel %vm2243_vm12, %v2235_v8, %v4883_v41  ;;  %v4536_v11 = vld [vmem:[#allocation2 + $0x1b0] sm:$0xff]  ;;  %v4550_v41 = vld [vmem:[#allocation2 + $0x122] sm:$0xff] }
 0x22a   : > { %v2253_v13 = vsel %vm2252_vm13, %v2244_v38, %v4885_v5 }
 0x22b   : > { %v2262_v63 = vsel %vm2261_vm14, %v2253_v13, %v4304_v1  ;;  %v4888_v1 = vld [vmem:[#allocation14_spill] sm:$0xff] }
 0x22c   : > { %2398 = vrot.lane.b32.xlu1 %v4312_v52, %s3275_s28  ;;  %2366 = vrot.lane.b32.xlu0 %v4316_v28, %s3273_s16  ;;  %v4881_v28 = vld [vmem:[#allocation22_spill] sm:$0xff] }
 0x22d   : > { %2588 = vrot.lane.b32.xlu2 %v1669_v9, %s3269_s29  ;;  %v2210_v21 = vsel %vm2207_vm8, %v2201_v49, %v4881_v28 }
 0x22e   : > { %v2078_v44 = vpop.permute.xlu1 %2077  ;;  %v2076_v12 = vpop.permute.xlu0 %2075  ;;  %v2219_v7 = vsel %vm2216_vm9, %v2210_v21, %v4882_v16  ;;  %v4546_v16 = vld [vmem:[#allocation2 + $0x1b1] sm:$0xff] }
 0x22f   : > { %v2267_v52 = vsel %vm2261_vm14, %v2258_v15, %v2078_v44  ;;  %v2108_v0 = vpop.permute.xlu2 %2107  ;;  %v2266_v59 = vsel %vm2261_vm14, %v2257_v32, %v2076_v12  ;;  %v2228_v58 = vsel %vm2225_vm10, %v2219_v7, %v4884_v19  ;;  %v1585_v44 = vld [vmem:[#allocation2 + $0xc1] sm:$0xff] }
 0x230   : > { %v4464_v26 = vsel %vm2270_vm15, %v2266_v59, %v2108_v0  ;;  %v2237_v43 = vsel %vm2234_vm11, %v2228_v58, %v4886_v56  ;;  %v1577_v7 = vld [vmem:[#allocation2 + $0xc0] sm:$0xff] }
 0x231   : > { %v2246_v30 = vsel %vm2243_vm12, %v2237_v43, %v4887_v39  ;;  %v1587_v39 = vld [vmem:[#allocation2 + $0xe1] sm:$0xff]  ;;  %vm2720_vm12 = vcmask 523264  }
 0x232   : > { %v2255_v57 = vsel %vm2252_vm13, %v2246_v30, %v4889_v40  ;;  %vm2743_vm13 = vcmask 883712  }
 0x233   : > { %v2264_v61 = vsel %vm2261_vm14, %v2255_v57, %v2072_v50 }
 0x234   : > { %2494 = vrot.lane.b32.xlu1 %v1669_v9, %s3277_s15  ;;  %2462 = vrot.lane.b32.xlu0 %v4399_v24, %s3276_s3 }
 0x235   : > { %2430 = vrot.lane.b32.xlu2 %v4364_v17, %s3274_s20 }
 0x236   : > { %v2100_v60 = vpop.permute.xlu1 %2099  ;;  %v2082_v35 = vpop.permute.xlu0 %2081 }
 0x237   : > { %v4482_v20 = vsel %vm2270_vm15, %v2262_v63, %v2100_v60  ;;  %v2329_v2 = vpop.permute.xlu2 %2328  ;;  %v4487_v45 = vsel %vm2261_vm14, %v2260_v23, %v2082_v35 }
 0x23c   : > { %2558 = vrot.lane.b32.xlu1 %v1662_v51, %s3267_s30  ;;  %2304 = vrot.lane.b32.xlu0 %v4888_v1, %s3272_s23  ;;  %v1586_v1 = vld [vmem:[#allocation2 + $0xd1] sm:$0xff] }
 0x23d   : > { %2526 = vrot.lane.b32.xlu2 %v1654_v34, %s3278_s27 }
 0x23e   : > { %v2106_v6 = vpop.permute.xlu1 %2105  ;;  %v2104_v46 = vpop.permute.xlu0 %2103 }
 0x23f   : > { %v4500_v23 = vsel %vm2270_vm15, %v4360_v25, %v2106_v6  ;;  %v2425_v54 = vpop.permute.xlu2 %2424  ;;  %v4503_v53 = vsel %vm2270_vm15, %v2264_v61, %v2104_v46 }
 0x244   : > { %2368 = vrot.lane.b32.xlu1 %v4399_v24, %s3273_s16  ;;  %2590 = vrot.lane.b32.xlu0 %v1670_v47, %s3269_s29 }
 0x245   : > { %2336 = vrot.lane.b32.xlu2 %v4364_v17, %s3270_s1  ;;  %v4890_v17 = vld [vmem:[#allocation19_spill] sm:$0xff] }
 0x246   : > { %v2297_v14 = vpop.permute.xlu1 %2296  ;;  %v2110_v31 = vpop.permute.xlu0 %2109 }
 0x247   : > { %v2521_v50 = vpop.permute.xlu2 %2520  ;;  %v4511_v25 = vsel %vm2270_vm15, %v2267_v52, %v2110_v31  ;;  %v2608_v52 = vsel %vm892_vm1, %v1585_v44, %v2297_v14 }
 0x248   : > { %v2616_v0 = vsel %vm2163_vm4, %v2608_v52, %v2329_v2  ;;  %v1672_v2 = vld [vmem:[#allocation2 + $0x1b2] sm:$0xff] }
 0x24c   : > { %2464 = vrot.lane.b32.xlu1 %v1662_v51, %s3276_s3  ;;  %2432 = vrot.lane.b32.xlu0 %v1654_v34, %s3274_s20 }
 0x24d   : > { %2400 = vrot.lane.b32.xlu2 %v1669_v9, %s3275_s28  ;;  %v1663_v9 = vld [vmem:[#allocation2 + $0x1a1] sm:$0xff] }
 0x24e   : > { %v2393_v48 = vpop.permute.xlu1 %2392  ;;  %v2361_v18 = vpop.permute.xlu0 %2360 }
 0x24f   : > { %v4516_v24 = vpop.permute.xlu2 %2330  ;;  %v2624_v32 = vsel %vm2172_vm5, %v2616_v0, %v2361_v18  ;;  %v1673_v0 = vld [vmem:[#allocation2 + $0x1c2] sm:$0xff] }
 0x250   : > { %v2632_v37 = vsel %vm544_vm0, %v2624_v32, %v2393_v48 }
 0x251   : > { %v2640_v28 = vsel %vm2189_vm6, %v2632_v37, %v2425_v54 }
 0x254   : > { %2306 = vrot.lane.b32.xlu1 %v4890_v17, %s3272_s23  ;;  %2528 = vrot.lane.b32.xlu0 %v1655_v42, %s3278_s27 }
 0x255   : > { %2496 = vrot.lane.b32.xlu2 %v1670_v47, %s3277_s15 }
 0x256   : > { %v2489_v36 = vpop.permute.xlu1 %2488  ;;  %v2457_v4 = vpop.permute.xlu0 %2456 }
 0x257   : > { %v4522_v3 = vpop.permute.xlu2 %2394  ;;  %v2648_v21 = vsel %vm2198_vm7, %v2640_v28, %v2457_v4  ;;  %v1665_v4 = vld [vmem:[#allocation2 + $0x1c1] sm:$0xff] }
 0x258   : > { %v2656_v38 = vsel %vm2207_vm8, %v2648_v21, %v2489_v36  ;;  %v1658_v21 = vld [vmem:[#allocation2 + $0x1d0] sm:$0xff] }
 0x259   : > { %v2664_v13 = vsel %vm2216_vm9, %v2656_v38, %v2521_v50  ;;  %v1657_v50 = vld [vmem:[#allocation2 + $0x1c0] sm:$0xff] }
 0x25c   : > { %2592 = vrot.lane.b32.xlu1 %v1671_v62, %s3269_s29  ;;  %2338 = vrot.lane.b32.xlu0 %v1654_v34, %s3270_s1 }
 0x25d   : > { %2560 = vrot.lane.b32.xlu2 %v1663_v9, %s3267_s30 }
 0x25e   : > { %v2553_v10 = vpop.permute.xlu1 %2552  ;;  %v2299_v33 = vpop.permute.xlu0 %2298 }
 0x25f   : > { %v4527_v29 = vpop.permute.xlu2 %2490  ;;  %v2672_v63 = vsel %vm2225_vm10, %v2664_v13, %v2553_v10  ;;  %v2609_v61 = vsel %vm892_vm1, %v1586_v1, %v2299_v33 }
 0x260   : > { %v2617_v14 = vsel %vm2163_vm4, %v2609_v61, %v4516_v24  ;;  %v2740_v61 = vld [vmem:[%s4826_s7 + $0x58] sm:$0xff] }
 0x264   : > { %2434 = vrot.lane.b32.xlu1 %v1655_v42, %s3274_s20  ;;  %2402 = vrot.lane.b32.xlu0 %v1670_v47, %s3275_s28 }
 0x265   : > { %2370 = vrot.lane.b32.xlu2 %v1662_v51, %s3273_s16 }
 0x266   : > { %v2363_v15 = vpop.permute.xlu1 %2362  ;;  %v2585_v8 = vpop.permute.xlu0 %2584 }
 0x267   : > { %v4532_v22 = vpop.permute.xlu2 %2554  ;;  %v2680_v60 = vsel %vm2234_vm11, %v2672_v63, %v2585_v8  ;;  %v2625_v31 = vsel %vm2172_vm5, %v2617_v14, %v2363_v15  ;;  %v1674_v63 = vld [vmem:[#allocation2 + $0x1d2] sm:$0xff] }
 0x268   : > { %v2633_v18 = vsel %vm544_vm0, %v2625_v31, %v4522_v3  ;;  %v2739_v14 = vld [vmem:[%s4826_s7 + $0x50] sm:$0xff] }
 0x269   : > { %v1580_v31 = vld [vmem:[#allocation2 + $0xf0] sm:$0xff] }
 0x26c   : > { %2530 = vrot.lane.b32.xlu1 %v4536_v11, %s3278_s27  ;;  %2498 = vrot.lane.b32.xlu0 %v1671_v62, %s3277_s15 }
 0x26d   : > { %2466 = vrot.lane.b32.xlu2 %v1663_v9, %s3276_s3 }
 0x26e   : > { %v2459_v12 = vpop.permute.xlu1 %2458  ;;  %v2427_v59 = vpop.permute.xlu0 %2426 }
 0x26f   : > { %v2365_v49 = vpop.permute.xlu2 %2364  ;;  %v2641_v36 = vsel %vm2189_vm6, %v2633_v18, %v2427_v59  ;;  %v4891_v59 = vld [vmem:[#allocation9_spill] sm:$0xff] }
 0x270   : > { %v2649_v24 = vsel %vm2198_vm7, %v2641_v36, %v2459_v12  ;;  %v2738_v18 = vld [vmem:[%s4826_s7 + $0x48] sm:$0xff] }
 0x271   : > { %v2657_v10 = vsel %vm2207_vm8, %v2649_v24, %v4527_v29 }
 0x274   : > { %2562 = vrot.lane.b32.xlu1 %v4546_v16, %s3267_s30  ;;  %2308 = vrot.lane.b32.xlu0 %v4550_v41, %s3272_s23 }
 0x275   : > { %2131 = vrot.lane.b32.xlu2 %v1577_v7, %s3281_s22 }
 0x276   : > { %v2301_v19 = vpop.permute.xlu1 %2300  ;;  %v2523_v5 = vpop.permute.xlu0 %2522 }
 0x277   : > { %v2461_v58 = vpop.permute.xlu2 %2460  ;;  %v2610_v30 = vsel %vm892_vm1, %v1587_v39, %v2301_v19  ;;  %v2665_v3 = vsel %vm2216_vm9, %v2657_v10, %v2523_v5  ;;  %v1582_v10 = vld [vmem:[#allocation2 + $0x110] sm:$0xff] }
 0x278   : > { %v2673_v8 = vsel %vm2225_vm10, %v2665_v3, %v4532_v22 }
 0x27c   : > { %2696 = vrot.lane.b32.xlu1 %v2680_v60, %s3282_s17  ;;  %2594 = vrot.lane.b32.xlu0 %v1672_v2, %s3269_s29  ;;  %v1579_v60 = vld [vmem:[#allocation2 + $0xe0] sm:$0xff] }
 0x27d   : > { %2340 = vrot.lane.b32.xlu2 %v1655_v42, %s3270_s1 }
 0x27e   : > { %v2587_v35 = vpop.permute.xlu1 %2586  ;;  %v2333_v43 = vpop.permute.xlu0 %2332 }
 0x27f   : > { %v2303_v56 = vpop.permute.xlu2 %2302  ;;  %v2618_v51 = vsel %vm2163_vm4, %v2610_v30, %v2333_v43  ;;  %v2681_v52 = vsel %vm2234_vm11, %v2673_v8, %v2587_v35  ;;  %v2742_v35 = vld [vmem:[%s4826_s7 + $0x68] sm:$0xf] }
 0x280   : > { %v2626_v57 = vsel %vm2172_vm5, %v2618_v51, %v2365_v49  ;;  %v2611_v28 = vsel %vm892_vm1, %v4891_v59, %v2303_v56  ;;  %3143 = vmatpush.msk.msra.mxu3 %vm2768_vm2, %v2742_v35  ;;  %v4892_v59 = vld [vmem:[#allocation25_spill] sm:$0xff] }
 0x284   : > { %2436 = vrot.lane.b32.xlu1 %v4536_v11, %s3274_s20  ;;  %2404 = vrot.lane.b32.xlu0 %v1671_v62, %s3275_s28  ;;  %v1578_v62 = vld [vmem:[#allocation2 + $0xd0] sm:$0xff] }
 0x285   : > { %2372 = vrot.lane.b32.xlu2 %v1663_v9, %s3273_s16  ;;  %v1600_v9 = vld [vmem:[#allocation2 + $0x132] sm:$0xff] }
 0x286   : > { %v2429_v34 = vpop.permute.xlu1 %2428  ;;  %v2397_v6 = vpop.permute.xlu0 %2396 }
 0x287   : > { %v4568_v40 = vpop.permute.xlu2 %2588  ;;  %v2634_v54 = vsel %vm544_vm0, %v2626_v57, %v2397_v6  ;;  %v2741_v6 = vld [vmem:[%s4826_s7 + $0x60] sm:$0xff] }
 0x288   : > { %v2642_v46 = vsel %vm2189_vm6, %v2634_v54, %v2429_v34  ;;  %2775 = vmatpush.msra.mxu3 %v2741_v6 }
 0x289   : > { %v2650_v47 = vsel %vm2198_vm7, %v2642_v46, %v2461_v58  ;;  %v1589_v46 = vld [vmem:[#allocation2 + $0x101] sm:$0xff] }
 0x28a   : > { %2776 = vmatpush.msra.mxu3 %v2740_v61 }
 0x28c   : > { %2532 = vrot.lane.b32.xlu1 %v1657_v50, %s3278_s27  ;;  %2500 = vrot.lane.b32.xlu0 %v1672_v2, %s3277_s15 }
 0x28d   : > { %2468 = vrot.lane.b32.xlu2 %v4546_v16, %s3276_s3  ;;  %2777 = vmatpush.msra.mxu3 %v2739_v14 }
 0x28e   : > { %v2525_v48 = vpop.permute.xlu1 %2524  ;;  %v2493_v42 = vpop.permute.xlu0 %2492 }
 0x28f   : > { %v2431_v17 = vpop.permute.xlu2 %2430  ;;  %v2658_v56 = vsel %vm2207_vm8, %v2650_v47, %v2493_v42  ;;  %2778 = vmatpush.msra.mxu3 %v2738_v18 }
 0x290   : > { %v2666_v34 = vsel %vm2216_vm9, %v2658_v56, %v2525_v48 }
 0x294   : > { %2564 = vrot.lane.b32.xlu1 %v1665_v4, %s3267_s30  ;;  %2310 = vrot.lane.b32.xlu0 %v1600_v9, %s3272_s23 }
 0x295   : > { %2133 = vrot.lane.b32.xlu2 %v1578_v62, %s3281_s22  ;;  %v2736_v62 = vld [vmem:[%s4826_s7 + $0x38] sm:$0xff] }
 0x296   : > { %v2335_v33 = vpop.permute.xlu1 %2334  ;;  %v2557_v44 = vpop.permute.xlu0 %2556 }
 0x297   : > { %v2527_v15 = vpop.permute.xlu2 %2526  ;;  %v2674_v1 = vsel %vm2225_vm10, %v2666_v34, %v2557_v44  ;;  %v2734_v44 = vld [vmem:[%s4826_s7 + $0x28] sm:$0xff] }
 0x298   : > { %v2682_v48 = vsel %vm2234_vm11, %v2674_v1, %v4568_v40  ;;  %v2737_v40 = vld [vmem:[%s4826_s7 + $0x40] sm:$0xff] }
 0x299   : > { %2779 = vmatpush.msra.mxu3 %v2737_v40 }
 0x29b   : > { %2780 = vmatpush.msra.mxu3 %v2736_v62 }
 0x29c   : > { %2698 = vrot.lane.b32.xlu1 %v2681_v52, %s3282_s17  ;;  %2596 = vrot.lane.b32.xlu0 %v1673_v0, %s3269_s29 }
 0x29d   : > { %2342 = vrot.lane.b32.xlu2 %v4536_v11, %s3270_s1  ;;  %v2619_v11 = vsel %vm2163_vm4, %v2611_v28, %v2335_v33  ;;  %v2735_v33 = vld [vmem:[%s4826_s7 + $0x30] sm:$0xff]  ;;  %v2730_v28 = vld [vmem:[%s4826_s7 + $0x8] sm:$0xff] }
 0x29e   : > { %v2399_v32 = vpop.permute.xlu1 %2398  ;;  %v2367_v12 = vpop.permute.xlu0 %2366  ;;  %2781 = vmatpush.msra.mxu3 %v2735_v33 }
 0x29f   : > { %v2337_v29 = vpop.permute.xlu2 %2336  ;;  %v2627_v7 = vsel %vm2172_vm5, %v2619_v11, %v2367_v12  ;;  %v2732_v12 = vld [vmem:[%s4826_s7 + $0x18] sm:$0xff] }
 0x2a0   : > { %v2635_v38 = vsel %vm544_vm0, %v2627_v7, %v2399_v32  ;;  %2782 = vmatpush.msra.mxu3 %v2734_v44 }
 0x2a1   : > { %v2643_v5 = vsel %vm2189_vm6, %v2635_v38, %v2431_v17 }
 0x2a4   : > { %2438 = vrot.lane.b32.xlu1 %v1657_v50, %s3274_s20  ;;  %2406 = vrot.lane.b32.xlu0 %v1672_v2, %s3275_s28  ;;  %v1666_v2 = vld [vmem:[#allocation2 + $0x1d1] sm:$0xff]  ;;  %s3081_s20 = sshll.u32 %s4906_s10, 3 }
 0x2a5   : > { %2374 = vrot.lane.b32.xlu2 %v4546_v16, %s3273_s16  ;;  %s497_s28 = sadd.s32 %s3081_s20, %s3387_s26 }
 0x2a6   : > { %v2495_v22 = vpop.permute.xlu1 %2494  ;;  %v2463_v49 = vpop.permute.xlu0 %2462 }
 0x2a7   : > { %v2401_v37 = vpop.permute.xlu2 %2400  ;;  %v2651_v13 = vsel %vm2198_vm7, %v2643_v5, %v2463_v49  ;;  %v2731_v49 = vld [vmem:[%s4826_s7 + $0x10] sm:$0xff] }
 0x2a8   : > { %v2659_v43 = vsel %vm2207_vm8, %v2651_v13, %v2495_v22 }
 0x2a9   : > { %v2667_v57 = vsel %vm2216_vm9, %v2659_v43, %v2527_v15  ;;  %v1581_v15 = vld [vmem:[#allocation2 + $0x100] sm:$0xff] }
 0x2ac   : > { %2534 = vrot.lane.b32.xlu1 %v1658_v21, %s3278_s27  ;;  %2502 = vrot.lane.b32.xlu0 %v1673_v0, %s3277_s15 }
 0x2ad   : > { %2470 = vrot.lane.b32.xlu2 %v1665_v4, %s3276_s3 }
 0x2ae   : > { %v2559_v16 = vpop.permute.xlu1 %2558  ;;  %v2305_v58 = vpop.permute.xlu0 %2304 }
 0x2af   : > { %v4611_v19 = vpop.permute.xlu2 %2496  ;;  %v2675_v54 = vsel %vm2225_vm10, %v2667_v57, %v2559_v16  ;;  %v2612_v50 = vsel %vm892_vm1, %v1589_v46, %v2305_v58  ;;  %v1584_v58 = vld [vmem:[#allocation2 + $0x130] sm:$0xff] }
 0x2b0   : > { %v2620_v42 = vsel %vm2163_vm4, %v2612_v50, %v2337_v29  ;;  %v2733_v29 = vld [vmem:[%s4826_s7 + $0x20] sm:$0xff] }
 0x2b1   : > { %2783 = vmatpush.msra.mxu3 %v2733_v29 }
 0x2b3   : > { %2784 = vmatpush.msra.mxu3 %v2732_v12 }
 0x2b4   : > { %2598 = vrot.lane.b32.xlu1 %v1674_v63, %s3269_s29  ;;  %2566 = vrot.lane.b32.xlu0 %v1666_v2, %s3267_s30  ;;  %v1590_v2 = vld [vmem:[#allocation2 + $0x111] sm:$0xff]  ;;  %s3082_s30 = sshll.u32 %s497_s28, 1 }
 0x2b5   : > { %2135 = vrot.lane.b32.xlu2 %v1579_v60, %s3281_s22  ;;  %2785 = vmatpush.msra.mxu3 %v2731_v49  ;;  %v1574_v60 = vld [vmem:[#allocation2 + $0x112] sm:$0xff]  ;;  %s499_s27 = scalar_lea.vmem %s4828_s9, %s3082_s30 }
 0x2b6   : > { %v2369_v39 = vpop.permute.xlu1 %2368  ;;  %v2591_v51 = vpop.permute.xlu0 %2590 }
 0x2b7   : > { %v2561_v30 = vpop.permute.xlu2 %2560  ;;  %v2683_v47 = vsel %vm2234_vm11, %v2675_v54, %v2591_v51  ;;  %v2628_v4 = vsel %vm2172_vm5, %v2620_v42, %v2369_v39  ;;  %2786 = vmatpush.msra.mxu3 %v2730_v28 }
 0x2b8   : > { %v2636_v9 = vsel %vm544_vm0, %v2628_v4, %v2401_v37  ;;  %v4893_v4 = vld [vmem:[#allocation28_spill] sm:$0xff] }
 0x2bc   : > { %2702 = vrot.lane.b32.xlu1 %v2683_v47, %s3282_s17  ;;  %2137 = vrot.lane.b32.xlu0 %v1580_v31, %s3281_s22 }
 0x2bd   : > { %2700 = vrot.lane.b32.xlu2 %v2682_v48, %s3282_s17 }
 0x2be   : > { %v2465_v17 = vpop.permute.xlu1 %2464  ;;  %v2433_v24 = vpop.permute.xlu0 %2432 }
 0x2bf   : > { %v2371_v36 = vpop.permute.xlu2 %2370  ;;  %v2644_v3 = vsel %vm2189_vm6, %v2636_v9, %v2433_v24 }
 0x2c0   : > { %v2652_v52 = vsel %vm2198_vm7, %v2644_v3, %v2465_v17 }
 0x2c1   : > { %v2660_v22 = vsel %vm2207_vm8, %v2652_v52, %v4611_v19  ;;  %v2729_v19 = vld [vmem:[%s4826_s7] sm:$0xff] }
 0x2c2   : > { %2787 = vmatpush.msra.mxu3 %v2729_v19 }
 0x2c4   : > { %2141 = vrot.lane.b32.xlu1 %v1582_v10, %s3281_s22 }
 0x2c5   : > { %2139 = vrot.lane.b32.xlu2 %v1581_v15, %s3281_s22 }
 0x2c6   : > { %v2307_v8 = vpop.permute.xlu1 %2306  ;;  %v2529_v32 = vpop.permute.xlu0 %2528 }
 0x2c7   : > { %v2467_v0 = vpop.permute.xlu2 %2466  ;;  %v2668_v37 = vsel %vm2216_vm9, %v2660_v22, %v2529_v32  ;;  %v2613_v56 = vsel %vm892_vm1, %v1590_v2, %v2307_v8 }
 0x2c8   : > { %v2676_v21 = vsel %vm2225_vm10, %v2668_v37, %v2561_v30 }
 0x2cc   : > { %2143 = vrot.lane.b32.xlu1 %v4892_v59, %s3281_s22 }
 0x2ce   : > { %v2593_v11 = vpop.permute.xlu1 %2592  ;;  %v2339_v38 = vpop.permute.xlu0 %2338 }
 0x2cf   : > { %v2684_v7 = vsel %vm2234_vm11, %v2676_v21, %v2593_v11  ;;  %v2132_v16 = vpop.permute.xlu2 %2131  ;;  %v2621_v30 = vsel %vm2163_vm4, %v2613_v56, %v2339_v38  ;;  %v1592_v21 = vld [vmem:[#allocation2 + $0x131] sm:$0xff] }
 0x2d0   : > { %2704 = vrot.lane.b32.xlu0 %v2684_v7, %s3282_s17  ;;  %v2629_v51 = vsel %vm2172_vm5, %v2621_v30, %v2371_v36  ;;  %v2280_v47 = vsel %vm2279_vm3, %v4482_v20, %v2132_v16 }
 0x2d4   : > { %2145 = vrot.lane.b32.xlu1 %v1584_v58, %s3281_s22  ;;  %s3079_s22 = sshll.u32 %s4906_s10, 6 }
 0x2d6   : > { %v2435_v5 = vpop.permute.xlu1 %2434  ;;  %v2403_v63 = vpop.permute.xlu0 %2402 }
 0x2d7   : > { %v2341_v13 = vpop.permute.xlu2 %2340  ;;  %v2637_v34 = vsel %vm544_vm0, %v2629_v51, %v2403_v63 }
 0x2d8   : > { %2111 = vrot.lane.b32.xlu0 %v1574_v60, %s3280_s25  ;;  %v2645_v57 = vsel %vm2189_vm6, %v2637_v34, %v2435_v5 }
 0x2d9   : > { %v2653_v54 = vsel %vm2198_vm7, %v2645_v57, %v2467_v0 }
 0x2de   : > { %v2531_v35 = vpop.permute.xlu1 %2530  ;;  %v2499_v39 = vpop.permute.xlu0 %2498 }
 0x2df   : > { %v2373_v43 = vpop.permute.xlu2 %2372  ;;  %v2661_v46 = vsel %vm2207_vm8, %v2653_v54, %v2499_v39 }
 0x2e0   : > { %2113 = vrot.lane.b32.xlu0 %v4550_v41, %s3280_s25  ;;  %v2669_v41 = vsel %vm2216_vm9, %v2661_v46, %v2531_v35  ;;  %s3078_s25 = sshll.u32 %s3387_s26, 3 }
 0x2e6   : > { %v2563_v1 = vpop.permute.xlu1 %2562  ;;  %v2309_v61 = vpop.permute.xlu0 %2308 }
 0x2e7   : > { %v2469_v6 = vpop.permute.xlu2 %2468  ;;  %v2677_v50 = vsel %vm2225_vm10, %v2669_v41, %v2563_v1  ;;  %v2614_v20 = vsel %vm892_vm1, %v4893_v4, %v2309_v61 }
 0x2e8   : > { %v2622_v10 = vsel %vm2163_vm4, %v2614_v20, %v2341_v13 }
 0x2e9   : > { %v2630_v33 = vsel %vm2172_vm5, %v2622_v10, %v2373_v43 }
 0x2ee   : > { %v2697_v14 = vpop.permute.xlu1 %2696  ;;  %v2595_v48 = vpop.permute.xlu0 %2594 }
 0x2ef   : > { %v2134_v31 = vpop.permute.xlu2 %2133  ;;  %v2721_v18 = vsel %vm2720_vm12, %v2280_v47, %v2697_v14  ;;  %v2685_v17 = vsel %vm2234_vm11, %v2677_v50, %v2595_v48 }
 0x2f0   : > { %3144 = vmatmul.msk.f32.vlgmr.msra.gmra.mxu3 %vm2743_vm13, %v2721_v18  ;;  %2706 = vrot.lane.b32.xlu2 %v2685_v17, %s3282_s17  ;;  %v2281_v29 = vsel %vm2279_vm3, %v4434_v27, %v2134_v31 }
 0x2f6   : > { %v2437_v42 = vpop.permute.xlu1 %2436  ;;  %v2405_v24 = vpop.permute.xlu0 %2404 }
 0x2f7   : > { %v2343_v36 = vpop.permute.xlu2 %2342  ;;  %v2638_v3 = vsel %vm544_vm0, %v2630_v33, %v2405_v24 }
 0x2f8   : > { %v2646_v44 = vsel %vm2189_vm6, %v2638_v3, %v2437_v42 }
 0x2f9   : > { %v2654_v0 = vsel %vm2198_vm7, %v2646_v44, %v2469_v6 }
 0x2fe   : > { %v2533_v40 = vpop.permute.xlu1 %2532  ;;  %v2501_v9 = vpop.permute.xlu0 %2500 }
 0x2ff   : > { %v2375_v62 = vpop.permute.xlu2 %2374  ;;  %v2662_v32 = vsel %vm2207_vm8, %v2654_v0, %v2501_v9 }
 0x300   : > { %v2670_v12 = vsel %vm2216_vm9, %v2662_v32, %v2533_v40 }
 0x306   : > { %v2565_v15 = vpop.permute.xlu1 %2564  ;;  %v2311_v52 = vpop.permute.xlu0 %2310 }
 0x307   : > { %v2471_v8 = vpop.permute.xlu2 %2470  ;;  %v2678_v37 = vsel %vm2225_vm10, %v2670_v12, %v2565_v15  ;;  %v2615_v7 = vsel %vm892_vm1, %v1592_v21, %v2311_v52 }
 0x308   : > { %v2623_v5 = vsel %vm2163_vm4, %v2615_v7, %v2343_v36 }
 0x309   : > { %v2631_v13 = vsel %vm2172_vm5, %v2623_v5, %v2375_v62 }
 0x30e   : > { %v2699_v22 = vpop.permute.xlu1 %2698  ;;  %v2597_v59 = vpop.permute.xlu0 %2596 }
 0x30f   : > { %v2136_v49 = vpop.permute.xlu2 %2135  ;;  %v2722_v28 = vsel %vm2720_vm12, %v2281_v29, %v2699_v22  ;;  %v2686_v11 = vsel %vm2234_vm11, %v2678_v37, %v2597_v59 }
 0x310   : > { %3145 = vmatmul.msk.f32.gmra.mxu3 %vm2743_vm13, %v2722_v28  ;;  %2708 = vrot.lane.b32.xlu2 %v2686_v11, %s3282_s17  ;;  %v2282_v27 = vsel %vm2279_vm3, %v4503_v53, %v2136_v49 }
 0x316   : > { %v2439_v16 = vpop.permute.xlu1 %2438  ;;  %v2407_v19 = vpop.permute.xlu0 %2406 }
 0x317   : > { %v2701_v38 = vpop.permute.xlu2 %2700  ;;  %v2639_v63 = vsel %vm544_vm0, %v2631_v13, %v2407_v19  ;;  %vm2871_vm0 = vcmask 1040384  }
 0x318   : > { %v2723_v58 = vsel %vm2720_vm12, %v2282_v27, %v2701_v38  ;;  %v2647_v35 = vsel %vm2189_vm6, %v2639_v63, %v2439_v16 }
 0x319   : > { %3146 = vmatmul.msk.f32.gmra.mxu3 %vm2743_vm13, %v2723_v58  ;;  %v2655_v56 = vsel %vm2198_vm7, %v2647_v35, %v2471_v8 }
 0x31e   : > { %v2535_v60 = vpop.permute.xlu1 %2534  ;;  %v2503_v2 = vpop.permute.xlu0 %2502 }
 0x31f   : > { %v2663_v53 = vsel %vm2207_vm8, %v2655_v56, %v2503_v2  ;;  %v2140_v54 = vpop.permute.xlu2 %2139 }
 0x320   : > { %v2671_v39 = vsel %vm2216_vm9, %v2663_v53, %v2535_v60  ;;  %v2284_v46 = vsel %vm2279_vm3, %v4464_v26, %v2140_v54 }
 0x326   : > { %v2599_v43 = vpop.permute.xlu1 %2598  ;;  %v2567_v30 = vpop.permute.xlu0 %2566 }
 0x327   : > { %v2679_v51 = vsel %vm2225_vm10, %v2671_v39, %v2567_v30 }
 0x328   : > { %v2687_v34 = vsel %vm2234_vm11, %v2679_v51, %v2599_v43 }
 0x329   : > { %2710 = vrot.lane.b32.xlu2 %v2687_v34, %s3282_s17  ;;  %s489_s17 = sadd.s32 %s3079_s22, %s3078_s25 }
 0x32a   : > { %s3080_s1 = sshll.u32 %s489_s17, 3 }
 0x32b   : > { %s4760_s16 = scalar_lea.vmem %s4827_s8, %s3080_s1 }
 0x32e   : > { %v2703_v1 = vpop.permute.xlu1 %2702  ;;  %v2138_v57 = vpop.permute.xlu0 %2137 }
 0x32f   : > { %v2283_v6 = vsel %vm2279_vm3, %v4500_v23, %v2138_v57 }
 0x330   : > { %v2724_v61 = vsel %vm2720_vm12, %v2283_v6, %v2703_v1 }
 0x331   : > { %3147 = vmatmul.msk.f32.gmra.mxu3 %vm2743_vm13, %v2724_v61 }
 0x336   : > { %v2142_v14 = vpop.permute.xlu1 %2141 }
 0x337   : > { %v2285_v50 = vsel %vm2279_vm3, %v4511_v25, %v2142_v14 }
 0x33e   : > { %v2144_v26 = vpop.permute.xlu1 %2143 }
 0x342   : > { %v2705_v47 = vpop.permute.xlu0 %2704 }
 0x343   : > { %v2725_v41 = vsel %vm2720_vm12, %v2284_v46, %v2705_v47 }
 0x344   : > { %3148 = vmatmul.msk.f32.gmra.mxu3 %vm2743_vm13, %v2725_v41 }
 0x346   : > { %v2146_v4 = vpop.permute.xlu1 %2145 }
 0x34a   : > { %v2707_v31 = vpop.permute.xlu2 %2706  ;;  %v2112_v48 = vpop.permute.xlu0 %2111 }
 0x34b   : > { %v2726_v23 = vsel %vm2720_vm12, %v2285_v50, %v2707_v31  ;;  %v2277_v18 = vsel %vm2270_vm15, %v4381_v55, %v2112_v48 }
 0x34c   : > { %3149 = vmatmul.msk.f32.gmra.mxu3 %vm2743_vm13, %v2726_v23  ;;  %v2286_v42 = vsel %vm2279_vm3, %v2277_v18, %v2144_v26 }
 0x352   : > { %v2114_v25 = vpop.permute.xlu0 %2113 }
 0x353   : > { %v2278_v24 = vsel %vm2270_vm15, %v4487_v45, %v2114_v25 }
 0x354   : > { %v2287_v40 = vsel %vm2279_vm3, %v2278_v24, %v2146_v4 }
 0x36a   : > { %v2709_v17 = vpop.permute.xlu2 %2708 }
 0x36b   : > { %v2727_v36 = vsel %vm2720_vm12, %v2286_v42, %v2709_v17 }
 0x36c   : > { %3150 = vmatmul.msk.f32.gmra.mxu3 %vm2743_vm13, %v2727_v36 }
 0x373   : > { %v2789_v55 = vpop.f32.mrf.mxu3 }
 0x374   : > { %2813 = vst.msk [vmem:[%s4760_s16] sm:$0xff] %vm892_vm1, %v2789_v55  ;;  %v2842_v9 = vmul.f32 %v2789_v55, %v2789_v55  ;;  %v2821_v33 = vsel %vm892_vm1, %v2789_v55, 0.0 }
 0x376   : > { %v2850_v44 = vsel %vm892_vm1, %v2842_v9, 0.0 }
 0x383   : > { %v2711_v20 = vpop.permute.xlu2 %2710 }
 0x384   : > { %v2728_v62 = vsel %vm2720_vm12, %v2287_v40, %v2711_v20 }
 0x385   : > { %3151 = vmatmul.msk.f32.gmra.mxu3 %vm2743_vm13, %v2728_v62 }
 0x393   : > { %v2792_v10 = vpop.f32.mrf.mxu3 }
 0x394   : > { %2814 = vst.msk [vmem:[%s4760_s16 + $0x8] sm:$0xff] %vm892_vm1, %v2792_v10  ;;  %v2822_v3 = vsel %vm892_vm1, %v2792_v10, 0.0  ;;  %v2843_v15 = vmul.f32 %v2792_v10, %v2792_v10 }
 0x395   : > { %v2823_v45 = vadd.f32 %v2822_v3, %v2821_v33 }
 0x396   : > { %v2851_v8 = vsel %vm892_vm1, %v2843_v15, 0.0 }
 0x397   : > { %v2852_v52 = vadd.f32 %v2851_v8, %v2850_v44 }
 0x39c   : > { %v2795_v0 = vpop.f32.mrf.mxu3 }
 0x39d   : > { %2815 = vst.msk [vmem:[%s4760_s16 + $0x10] sm:$0xff] %vm892_vm1, %v2795_v0  ;;  %v2824_v32 = vsel %vm892_vm1, %v2795_v0, 0.0  ;;  %v2844_v29 = vmul.f32 %v2795_v0, %v2795_v0 }
 0x39e   : > { %v2825_v12 = vadd.f32 %v2824_v32, %v2823_v45 }
 0x39f   : > { %v2853_v22 = vsel %vm892_vm1, %v2844_v29, 0.0 }
 0x3a0   : > { %v2854_v37 = vadd.f32 %v2853_v22, %v2852_v52 }
 0x3b4   : > { %v2798_v49 = vpop.f32.mrf.mxu3 }
 0x3b5   : > { %2816 = vst.msk [vmem:[%s4760_s16 + $0x18] sm:$0xff] %vm892_vm1, %v2798_v49  ;;  %v2826_v59 = vsel %vm892_vm1, %v2798_v49, 0.0  ;;  %v2845_v28 = vmul.f32 %v2798_v49, %v2798_v49 }
 0x3b6   : > { %v2827_v11 = vadd.f32 %v2826_v59, %v2825_v12 }
 0x3b7   : > { %v2855_v21 = vsel %vm892_vm1, %v2845_v28, 0.0 }
 0x3b8   : > { %v2856_v7 = vadd.f32 %v2855_v21, %v2854_v37 }
 0x3c7   : > { %v2801_v16 = vpop.f32.mrf.mxu3 }
 0x3c8   : > { %2817 = vst.msk [vmem:[%s4760_s16 + $0x20] sm:$0xff] %vm892_vm1, %v2801_v16  ;;  %v2846_v19 = vmul.f32 %v2801_v16, %v2801_v16  ;;  %v2828_v58 = vsel %vm892_vm1, %v2801_v16, 0.0 }
 0x3c9   : > { %v2829_v2 = vadd.f32 %v2828_v58, %v2827_v11 }
 0x3ca   : > { %v2857_v13 = vsel %vm892_vm1, %v2846_v19, 0.0 }
 0x3cb   : > { %v2858_v53 = vadd.f32 %v2857_v13, %v2856_v7 }
 0x3cf   : > { %v2804_v27 = vpop.f32.mrf.mxu3 }
 0x3d0   : > { %2818 = vst.msk [vmem:[%s4760_s16 + $0x28] sm:$0xff] %vm892_vm1, %v2804_v27  ;;  %v2847_v5 = vmul.f32 %v2804_v27, %v2804_v27  ;;  %v2830_v63 = vsel %vm892_vm1, %v2804_v27, 0.0 }
 0x3d1   : > { %v2831_v43 = vadd.f32 %v2830_v63, %v2829_v2 }
 0x3d2   : > { %v2859_v35 = vsel %vm892_vm1, %v2847_v5, 0.0 }
 0x3d3   : > { %v2860_v30 = vadd.f32 %v2859_v35, %v2858_v53 }
 0x3ef   : > { %v2807_v38 = vpop.f32.mrf.mxu3 }
 0x3f0   : > { %2819 = vst.msk [vmem:[%s4760_s16 + $0x30] sm:$0xff] %vm892_vm1, %v2807_v38  ;;  %v2848_v60 = vmul.f32 %v2807_v38, %v2807_v38  ;;  %v2832_v56 = vsel %vm892_vm1, %v2807_v38, 0.0 }
 0x3f1   : > { %v2833_v51 = vadd.f32 %v2832_v56, %v2831_v43 }
 0x3f2   : > { %v2861_v39 = vsel %vm892_vm1, %v2848_v60, 0.0 }
 0x3f3   : > { %v2862_v6 = vadd.f32 %v2861_v39, %v2860_v30 }
 0x408   : > { %v2810_v34 = vpop.f32.mrf.mxu3 }
 0x409   : > { %2820 = vst.msk [vmem:[%s4760_s16 + $0x38] sm:$0xff] %vm892_vm1, %v2810_v34  ;;  %v2834_v1 = vsel %vm892_vm1, %v2810_v34, 0.0  ;;  %v2849_v57 = vmul.f32 %v2810_v34, %v2810_v34 }
 0x40a   : > { %v2835_v61 = vadd.f32 %v2834_v1, %v2833_v51 }
 0x40b   : > { %v2863_v54 = vsel %vm892_vm1, %v2849_v57, 0.0  ;;  %vm2873_vm1 = vcmask 25600  }
 0x40c   : > { %v2836_v46 = vrot.slane %v2835_v61, 4  ;;  %v2864_v47 = vadd.f32 %v2863_v54, %v2862_v6 }
 0x40e   : > { %v2837_v41 = vadd.f32 %v2836_v46, %v2835_v61  ;;  %v2865_v14 = vrot.slane %v2864_v47, 4 }
 0x410   : > { %v2838_v50 = vrot.slane %v2837_v41, 2  ;;  %v2866_v31 = vadd.f32 %v2865_v14, %v2864_v47 }
 0x412   : > { %v2839_v23 = vadd.f32 %v2838_v50, %v2837_v41  ;;  %v2867_v48 = vrot.slane %v2866_v31, 2 }
 0x414   : > { %v2840_v18 = vrot.slane %v2839_v23, 1  ;;  %v2868_v26 = vadd.f32 %v2867_v48, %v2866_v31 }
 0x416   : > { %v2869_v17 = vrot.slane %v2868_v26, 1  ;;  %v2841_v42 = vadd.f32 %v2840_v18, %v2839_v23 }
 0x418   : > { %v2870_v36 = vadd.f32 %v2869_v17, %v2868_v26 }
 0x41a   : > { %v2872_v55 = vsel %vm2871_vm0, %v2841_v42, %v2870_v36 }
 0x41b   : > { %2874 = vst.msk [vmem:[%s499_s27] sm:$0x3] %vm2873_vm1, %v2872_v55 }
 0x41c PF: > { %s20_s13 = sadd.s32 1, %s3264_s13   ;;  %s4894_s26 = sld [smem:[#allocation3_spill]] }
 0x41d   : > { %p17_p11 = scmp.ge.s32.totalorder %s20_s13, 18   ;;  %s4895_s30 = smov %s3256_s11 }
 0x41e   : > { %s4896_s10 = smov %s3260_s12  ;;  %s4897_s11 = smov %s4900_s14 }
 0x41f   :  { %19 = sbr.rel (!%p17_p11) target bundleno = 4 (0x4), region = 108 }
 0x422   : > { %s4898_s12 = smov %s4894_s26 }

</bundles_post_ra>
